<compile_context>
chip_gen: v6e
topology: v6e:2x2x1
jax: 0.10.0
libtpu: 0.0.40
codegen_flags: <defaults>
</compile_context>

<pallas_src>
import functools

import jax
import jax.numpy as jnp
from jax.experimental import pallas as pl
from jax.experimental.pallas import tpu as pltpu


def cnn_kernel(xcol_ref, w_ref, b_ref, o_ref):
    """One word-block grid step.

    xcol_ref: (L, R, C*K)  im2col rows for all conv positions (compute dtype)
    w_ref:    (C*K, Fp)    reshaped conv weight               (compute dtype)
    b_ref:    (1, Fp)      bias, f32
    o_ref:    (R, Fp)      f32 output block
    """
    L, R, CK = xcol_ref.shape
    Fp = o_ref.shape[-1]

    # Merge (L, R) -> L*R rows: layout-preserving (R is a sublane multiple),
    # then a single lane-dense MXU matmul with f32 accumulation.
    x2 = xcol_ref[...].reshape(L * R, CK)
    y = jnp.dot(x2, w_ref[...], preferred_element_type=jnp.float32)   # (L*R, Fp)
    y = y.reshape(L, R, Fp)

    # MaxPool1d over the full conv length == max over the leading axis
    # (element-wise VPU max between (R, Fp) slabs, no XLU).
    conv_max = jnp.max(y, axis=0)                                      # (R, Fp)

    # bias-add + ReLU commute with the max (both monotone); f32 epilogue.
    o_ref[...] = jnp.maximum(conv_max + b_ref[...], 0.0)


@functools.partial(jax.jit, static_argnames=("block_rows", "compute_dtype"))
def cnn_forward(x, w, b, *, block_rows=1024, compute_dtype=jnp.bfloat16):
    """x: (B, C, W) f32; w: (F, C, K); b: (F,). Returns (B, F) f32."""
    B, C, W = x.shape
    F, _, K = w.shape
    L = W - K + 1
    assert L >= 1, "word_length must be >= kernel_size"
    LANE = 128
    CK = C * K
    Fp = ((F + LANE - 1) // LANE) * LANE          # lane-dense output width

    # Row block: as large as reasonable for per-step amortization / MXU M dim,
    # but keep >= 2 blocks on the parallel word axis when the batch allows it
    # so v7x megacore sharding has work for both TensorCores.
    R = max(8, (block_rows // 8) * 8)
    if B > 8:
        half_rows = ((B + 1) // 2 + 7) // 8 * 8
        R = min(R, half_rows)
    else:
        R = 8
    Bp = ((B + R - 1) // R) * R                   # pad batch to a block multiple

    # ---- one-time wrapper-side layout plumbing (plain XLA ops) -------------
    # im2col via a single patches op.  Output feature ordering is channel-
    # major (index = c*K + k), matching the (C*K, F) weight reshape below.
    patches = jax.lax.conv_general_dilated_patches(
        x, filter_shape=(K,), window_strides=(1,), padding="VALID",
        dimension_numbers=("NCH", "OIH", "NCH"))              # (B, C*K, L)
    x_col = jnp.transpose(patches, (2, 0, 1))                 # (L, B, C*K)
    x_col = jnp.pad(x_col, ((0, 0), (0, Bp - B), (0, 0)))
    # Conv weight (F, C, K) -> (C*K, F), zero-padded to Fp lanes.
    w_col = jnp.pad(w.transpose(1, 2, 0).reshape(CK, F), ((0, 0), (0, Fp - F)))
    b_row = jnp.pad(b.reshape(1, F), ((0, 0), (0, Fp - F))).astype(jnp.float32)

    out = pl.pallas_call(
        cnn_kernel,
        out_shape=jax.ShapeDtypeStruct((Bp, Fp), jnp.float32),
        grid_spec=pltpu.PrefetchScalarGridSpec(
            num_scalar_prefetch=0,
            grid=(Bp // R,),                       # word blocks only; L fused
            in_specs=[
                pl.BlockSpec((L, R, CK), lambda i: (0, i, 0)),
                pl.BlockSpec((CK, Fp), lambda i: (0, 0)),
                pl.BlockSpec((1, Fp), lambda i: (0, 0)),
            ],
            out_specs=pl.BlockSpec((R, Fp), lambda i: (i, 0)),
        ),
        compiler_params=pltpu.CompilerParams(
            dimension_semantics=("parallel",),
            vmem_limit_bytes=32 * 1024 * 1024,
        ),
    )(x_col.astype(compute_dtype), w_col.astype(compute_dtype), b_row)

    # Strip batch / lane padding added for the kernel.
    return out[:B, :F]


def cnn_reference(x, w, b):
    """Pure-JAX reference of the PyTorch forward (for verification)."""
    out = jax.lax.conv_general_dilated(
        x, w, window_strides=(1,), padding="VALID",
        dimension_numbers=("NCH", "OIH", "NCH"),
    )
    out = jnp.maximum(out + b[None, :, None], 0.0)
    return jnp.max(out, axis=-1)                  # maxpool over full length + squeeze


if __name__ == "__main__":
    # Shapes consistent with CNN(char_embed_size, word_length, num_filters, k).
    batch = 200              # words in the mini-batch (not a block multiple -> exercises padding)
    char_embed_size = 32     # C (in_channels)
    word_length = 16         # W
    num_filters = 64         # F (out_channels; padded to 128 lanes internally)
    kernel_size = 5          # K

    key = jax.random.PRNGKey(0)
    kx, kw, kb = jax.random.split(key, 3)
    x = jax.random.normal(kx, (batch, char_embed_size, word_length), jnp.float32)
    w = jax.random.normal(kw, (num_filters, char_embed_size, kernel_size), jnp.float32) * 0.1
    b = jax.random.normal(kb, (num_filters,), jnp.float32) * 0.1

    ref = cnn_reference(x, w, b)

    # f32 operand path: exact check against the reference.
    out_f32 = jax.block_until_ready(cnn_forward(x, w, b, compute_dtype=jnp.float32))
    assert out_f32.shape == (batch, num_filters), out_f32.shape
    assert jnp.allclose(out_f32, ref, atol=1e-3, rtol=1e-3), "f32 mismatch vs reference"

    # Default bf16 operand path (full-rate MXU on all generations, f32
    # accumulate).  Compare against the reference evaluated on identically
    # bf16-quantized operands so the check isolates kernel correctness from
    # quantization error.
    xq = x.astype(jnp.bfloat16).astype(jnp.float32)
    wq = w.astype(jnp.bfloat16).astype(jnp.float32)
    out_bf16 = jax.block_until_ready(cnn_forward(x, w, b))
    ref_bf16 = cnn_reference(xq, wq, b)
    assert out_bf16.shape == (batch, num_filters), out_bf16.shape
    assert jnp.allclose(out_bf16, ref_bf16, atol=2e-2, rtol=2e-2), "bf16 mismatch vs reference"

    print("KERNEL_OK")
</pallas_src>

<mosaic_0001>
module attributes {stable_mosaic.version = 11 : i64} {
  func.func @cnn_kernel(%arg0: i32, %arg1: memref<12x104x160xf32, #tpu.memory_space<vmem>>, %arg2: memref<160x128xf32, #tpu.memory_space<vmem>>, %arg3: memref<1x128xf32, #tpu.memory_space<vmem>>, %arg4: memref<104x128xf32, #tpu.memory_space<vmem>>) attributes {dimension_semantics = [#tpu.dimension_semantics<parallel>], iteration_bounds = array<i64: 2>, scalar_prefetch = 0 : i64, scratch_operands = 0 : i64, tpu.core_type = #tpu.core_type<tc>, window_params = [{transform_indices = @transform_0, window_bounds = array<i64: 12, 104, 160>}, {pipeline_mode = #tpu.pipeline_mode<synchronous>, transform_indices = @transform_1, window_bounds = array<i64: 160, 128>}, {pipeline_mode = #tpu.pipeline_mode<synchronous>, transform_indices = @transform_2, window_bounds = array<i64: 1, 128>}, {transform_indices = @transform_3, window_bounds = array<i64: 104, 128>}]} {
    %c0 = arith.constant 0 : index
    %c0_0 = arith.constant 0 : index
    %c0_1 = arith.constant 0 : index
    %0 = vector.load %arg1[%c0, %c0_0, %c0_1] : memref<12x104x160xf32, #tpu.memory_space<vmem>>, vector<12x104x160xf32>
    %1 = vector.shape_cast %0 : vector<12x104x160xf32> to vector<1248x160xf32>
    %c0_2 = arith.constant 0 : index
    %c0_3 = arith.constant 0 : index
    %2 = vector.load %arg2[%c0_2, %c0_3] : memref<160x128xf32, #tpu.memory_space<vmem>>, vector<160x128xf32>
    %cst = arith.constant dense<0.000000e+00> : vector<1248x128xf32>
    %3 = tpu.matmul %1, %2, %cst {dimension_numbers = #tpu.dot_dimension_numbers<[1], [0], [0], [1], [0, 0, 1, 1], [], []>} : vector<1248x160xf32>, vector<160x128xf32>, vector<1248x128xf32> -> vector<1248x128xf32>
    %4 = vector.shape_cast %3 : vector<1248x128xf32> to vector<12x104x128xf32>
    %cst_4 = arith.constant dense<0xFF800000> : vector<104x128xf32>
    %5 = vector.multi_reduction <maximumf>, %4, %cst_4 [0] : vector<12x104x128xf32> to vector<104x128xf32>
    %c0_5 = arith.constant 0 : index
    %c0_6 = arith.constant 0 : index
    %6 = vector.load %arg3[%c0_5, %c0_6] : memref<1x128xf32, #tpu.memory_space<vmem>>, vector<1x128xf32>
    %7 = vector.broadcast %6 : vector<1x128xf32> to vector<104x128xf32>
    %8 = arith.addf %5, %7 : vector<104x128xf32>
    %cst_7 = arith.constant 0.000000e+00 : f32
    %9 = vector.broadcast %cst_7 : f32 to vector<104x128xf32>
    %10 = arith.maximumf %8, %9 : vector<104x128xf32>
    %c0_8 = arith.constant 0 : index
    %c0_9 = arith.constant 0 : index
    %11 = vector.load %arg4[%c0_8, %c0_9] : memref<104x128xf32, #tpu.memory_space<vmem>>, vector<104x128xf32>
    tpu.vector_store %arg4[%c0_8, %c0_9], %10 {strides = array<i32>} : memref<104x128xf32, #tpu.memory_space<vmem>>, vector<104x128xf32>,
    return
  }
  func.func @transform_0(%arg0: i32) -> (i32, i32, i32) {
    %c0_i32 = arith.constant 0 : i32
    %c0_i32_0 = arith.constant 0 : i32
    %c0_i32_1 = arith.constant 0 : i32
    return %c0_i32, %arg0, %c0_i32_0 : i32, i32, i32
  }
  func.func @transform_1(%arg0: i32) -> (i32, i32) {
    %c0_i32 = arith.constant 0 : i32
    %c0_i32_0 = arith.constant 0 : i32
    %c0_i32_1 = arith.constant 0 : i32
    return %c0_i32, %c0_i32_0 : i32, i32
  }
  func.func @transform_2(%arg0: i32) -> (i32, i32) {
    %c0_i32 = arith.constant 0 : i32
    %c0_i32_0 = arith.constant 0 : i32
    %c0_i32_1 = arith.constant 0 : i32
    return %c0_i32, %c0_i32_0 : i32, i32
  }
  func.func @transform_3(%arg0: i32) -> (i32, i32) {
    %c0_i32 = arith.constant 0 : i32
    %c0_i32_0 = arith.constant 0 : i32
    return %arg0, %c0_i32 : i32, i32
  }
}

</mosaic_0001>

<bundles_post_ra>
// kernel: cnn_forward.1
= control target key start
LH: loop header
LB: loop body
LE: loop exit
PB: predicated region body
PF: predicated region fallthrough
CT: control target
= control target key end

     0   :  { %s2995_s12 = smov 0   ;;  %s2997_s13 = smov 0   ;;  %s4812_s0 = inlined_call_operand.vmem [shape: f32[12,208,160], index: 0, kind: input, shape index: {}]   ;;  %s4813_s1 = inlined_call_operand.vmem [shape: f32[160,128], index: 1, kind: input, shape index: {}]   ;;  %s4814_s2 = inlined_call_operand.vmem [shape: f32[1,128], index: 2, kind: input, shape index: {}]   ;;  %s4815_s3 = inlined_call_operand.vmem [shape: f32[208,128], index: 3, kind: output, shape index: {}]  }
   0x1   :  { %s2999_s14 = smov 0  }
   0x2 LB: > { %s2713_s15 = sadd.s32 4294967295, %s2972_s14   ;;  %s3012_s16 = sadd.s32 1, %s2972_s14   ;;  %s2972_s14 = sphi %s2999_s14, %s4829_s14   ;;  %s2968_s13 = sphi %s2997_s13, %s4828_s13   ;;  %s2964_s12 = sphi %s2995_s12, %s4827_s12  }
   0x3   : > { %s17_s17 = ssub.s32 %s2972_s14, %s3012_s16  ;;  %s20_s18 = sadd.s32 1, %s2968_s13 }
   0x4   : > { %p18_p0 = scmp.eq.s32.totalorder %s17_s17, 0  ;;  %p27_p1 = scmp.ne.s32.totalorder %s2968_s13, %s2964_s12 }
   0x5   : > { %p28_p2 = scmp.eq.s32.totalorder %s2972_s14, 0  ;;  %p2716_p4 = scmp.ge.s32.totalorder %s2972_s14, 2 }
   0x6   : > { %s3021_s19 = scalar_select %p18_p0, %s2968_s13, %s20_s18  }
   0x7   : > { %p29_p3 = por %p28_p2, %p27_p1  ;;  %127 = sbr.rel (%p2716_p4) target bundleno = 173 (0xad), region = 24 }
   0xc   : > { %130 = sbr.rel (!%p29_p3) target bundleno = 173 (0xad), region = 28  ;;  %s132_s20 = sand.u32 (%p29_p3), 1, %s2968_s13  }
   0xd   : > { %s2882_s21 = smul.u32 (%p29_p3), 208, %s2972_s14 }
   0xe   : > { %s2923_s22 = smul.u32 (%p29_p3), 2496, %s132_s20 }
   0xf   : > { %s3029_s25 = scalar_lea.vmem (%p29_p3), %s4812_s0, %s2882_s21 }
  0x10   : > { %v151_v0 = vld [vmem:[%s3029_s25] sm:$0xff] (%p29_p3)  ;;  %v153_v1 = vld [vmem:[%s3029_s25 + $0x8] sm:$0xff] (%p29_p3)  ;;  %v155_v2 = vld [vmem:[%s3029_s25 + $0x10] sm:$0xff] (%p29_p3)  ;;  %s3034_s26 = scalar_lea.vmem (%p29_p3), [#allocation2], %s2923_s22 }
  0x11   : > { %152 = vst [vmem:[%s3034_s26] sm:$0xff] %v151_v0  ;;  %154 = vst [vmem:[%s3034_s26 + $0x8] sm:$0xff] %v153_v1  ;;  %v157_v3 = vld [vmem:[%s3029_s25 + $0x18] sm:$0xff]  ;;  %v159_v4 = vld [vmem:[%s3029_s25 + $0x20] sm:$0xff] }
  0x12   : > { %156 = vst [vmem:[%s3034_s26 + $0x10] sm:$0xff] %v155_v2  ;;  %v161_v5 = vld [vmem:[%s3029_s25 + $0x28] sm:$0xff]  ;;  %158 = vst [vmem:[%s3034_s26 + $0x18] sm:$0xff] %v157_v3  ;;  %v163_v6 = vld [vmem:[%s3029_s25 + $0x30] sm:$0xff] }
  0x13   : > { %160 = vst [vmem:[%s3034_s26 + $0x20] sm:$0xff] %v159_v4  ;;  %162 = vst [vmem:[%s3034_s26 + $0x28] sm:$0xff] %v161_v5  ;;  %v165_v7 = vld [vmem:[%s3029_s25 + $0x38] sm:$0xff]  ;;  %v167_v8 = vld [vmem:[%s3029_s25 + $0x40] sm:$0xff] }
  0x14   : > { %164 = vst [vmem:[%s3034_s26 + $0x30] sm:$0xff] %v163_v6  ;;  %166 = vst [vmem:[%s3034_s26 + $0x38] sm:$0xff] %v165_v7  ;;  %v169_v9 = vld [vmem:[%s3029_s25 + $0x48] sm:$0xff]  ;;  %v171_v10 = vld [vmem:[%s3029_s25 + $0x50] sm:$0xff] }
  0x15   : > { %168 = vst [vmem:[%s3034_s26 + $0x40] sm:$0xff] %v167_v8  ;;  %v173_v11 = vld [vmem:[%s3029_s25 + $0x58] sm:$0xff]  ;;  %170 = vst [vmem:[%s3034_s26 + $0x48] sm:$0xff] %v169_v9  ;;  %v175_v12 = vld [vmem:[%s3029_s25 + $0x60] sm:$0xff] }
  0x16   : > { %172 = vst [vmem:[%s3034_s26 + $0x50] sm:$0xff] %v171_v10  ;;  %174 = vst [vmem:[%s3034_s26 + $0x58] sm:$0xff] %v173_v11  ;;  %v177_v13 = vld [vmem:[%s3029_s25 + $0x68] sm:$0xff]  ;;  %v179_v14 = vld [vmem:[%s3029_s25 + $0x70] sm:$0xff] }
  0x17   : > { %176 = vst [vmem:[%s3034_s26 + $0x60] sm:$0xff] %v175_v12  ;;  %178 = vst [vmem:[%s3034_s26 + $0x68] sm:$0xff] %v177_v13  ;;  %v181_v15 = vld [vmem:[%s3029_s25 + $0x78] sm:$0xff]  ;;  %v183_v16 = vld [vmem:[%s3029_s25 + $0x80] sm:$0xff] }
  0x18   : > { %180 = vst [vmem:[%s3034_s26 + $0x70] sm:$0xff] %v179_v14  ;;  %v185_v17 = vld [vmem:[%s3029_s25 + $0x88] sm:$0xff]  ;;  %182 = vst [vmem:[%s3034_s26 + $0x78] sm:$0xff] %v181_v15  ;;  %v187_v18 = vld [vmem:[%s3029_s25 + $0x90] sm:$0xff] }
  0x19   : > { %184 = vst [vmem:[%s3034_s26 + $0x80] sm:$0xff] %v183_v16  ;;  %186 = vst [vmem:[%s3034_s26 + $0x88] sm:$0xff] %v185_v17  ;;  %v189_v19 = vld [vmem:[%s3029_s25 + $0x98] sm:$0xff]  ;;  %v191_v20 = vld [vmem:[%s3029_s25 + $0xa0] sm:$0xff] }
  0x1a   : > { %188 = vst [vmem:[%s3034_s26 + $0x90] sm:$0xff] %v187_v18  ;;  %190 = vst [vmem:[%s3034_s26 + $0x98] sm:$0xff] %v189_v19  ;;  %v193_v21 = vld [vmem:[%s3029_s25 + $0xa8] sm:$0xff]  ;;  %v195_v22 = vld [vmem:[%s3029_s25 + $0xb0] sm:$0xff] }
  0x1b   : > { %192 = vst [vmem:[%s3034_s26 + $0xa0] sm:$0xff] %v191_v20  ;;  %v197_v23 = vld [vmem:[%s3029_s25 + $0xb8] sm:$0xff]  ;;  %194 = vst [vmem:[%s3034_s26 + $0xa8] sm:$0xff] %v193_v21  ;;  %v199_v24 = vld [vmem:[%s3029_s25 + $0xc0] sm:$0xff] }
  0x1c   : > { %196 = vst [vmem:[%s3034_s26 + $0xb0] sm:$0xff] %v195_v22  ;;  %198 = vst [vmem:[%s3034_s26 + $0xb8] sm:$0xff] %v197_v23  ;;  %v201_v25 = vld [vmem:[%s3029_s25 + $0xc8] sm:$0xff]  ;;  %v203_v26 = vld [vmem:[%s3029_s25 + $0x1a0] sm:$0xff] }
  0x1d   : > { %200 = vst [vmem:[%s3034_s26 + $0xc0] sm:$0xff] %v199_v24  ;;  %202 = vst [vmem:[%s3034_s26 + $0xc8] sm:$0xff] %v201_v25  ;;  %v205_v27 = vld [vmem:[%s3029_s25 + $0x1a8] sm:$0xff]  ;;  %v207_v28 = vld [vmem:[%s3029_s25 + $0x1b0] sm:$0xff] }
  0x1e   : > { %204 = vst [vmem:[%s3034_s26 + $0xd0] sm:$0xff] %v203_v26  ;;  %v209_v29 = vld [vmem:[%s3029_s25 + $0x1b8] sm:$0xff]  ;;  %206 = vst [vmem:[%s3034_s26 + $0xd8] sm:$0xff] %v205_v27  ;;  %v211_v30 = vld [vmem:[%s3029_s25 + $0x1c0] sm:$0xff] }
  0x1f   : > { %208 = vst [vmem:[%s3034_s26 + $0xe0] sm:$0xff] %v207_v28  ;;  %210 = vst [vmem:[%s3034_s26 + $0xe8] sm:$0xff] %v209_v29  ;;  %v213_v31 = vld [vmem:[%s3029_s25 + $0x1c8] sm:$0xff]  ;;  %v215_v32 = vld [vmem:[%s3029_s25 + $0x1d0] sm:$0xff] }
  0x20   : > { %212 = vst [vmem:[%s3034_s26 + $0xf0] sm:$0xff] %v211_v30  ;;  %214 = vst [vmem:[%s3034_s26 + $0xf8] sm:$0xff] %v213_v31  ;;  %v217_v33 = vld [vmem:[%s3029_s25 + $0x1d8] sm:$0xff]  ;;  %v219_v34 = vld [vmem:[%s3029_s25 + $0x1e0] sm:$0xff] }
  0x21   : > { %216 = vst [vmem:[%s3034_s26 + $0x100] sm:$0xff] %v215_v32  ;;  %v221_v35 = vld [vmem:[%s3029_s25 + $0x1e8] sm:$0xff]  ;;  %218 = vst [vmem:[%s3034_s26 + $0x108] sm:$0xff] %v217_v33  ;;  %v223_v36 = vld [vmem:[%s3029_s25 + $0x1f0] sm:$0xff] }
  0x22   : > { %220 = vst [vmem:[%s3034_s26 + $0x110] sm:$0xff] %v219_v34  ;;  %222 = vst [vmem:[%s3034_s26 + $0x118] sm:$0xff] %v221_v35  ;;  %v225_v37 = vld [vmem:[%s3029_s25 + $0x1f8] sm:$0xff]  ;;  %v227_v38 = vld [vmem:[%s3029_s25 + $0x200] sm:$0xff] }
  0x23   : > { %224 = vst [vmem:[%s3034_s26 + $0x120] sm:$0xff] %v223_v36  ;;  %226 = vst [vmem:[%s3034_s26 + $0x128] sm:$0xff] %v225_v37  ;;  %v229_v39 = vld [vmem:[%s3029_s25 + $0x208] sm:$0xff]  ;;  %v231_v40 = vld [vmem:[%s3029_s25 + $0x210] sm:$0xff] }
  0x24   : > { %228 = vst [vmem:[%s3034_s26 + $0x130] sm:$0xff] %v227_v38  ;;  %v233_v41 = vld [vmem:[%s3029_s25 + $0x218] sm:$0xff]  ;;  %230 = vst [vmem:[%s3034_s26 + $0x138] sm:$0xff] %v229_v39  ;;  %v235_v42 = vld [vmem:[%s3029_s25 + $0x220] sm:$0xff] }
  0x25   : > { %232 = vst [vmem:[%s3034_s26 + $0x140] sm:$0xff] %v231_v40  ;;  %234 = vst [vmem:[%s3034_s26 + $0x148] sm:$0xff] %v233_v41  ;;  %v237_v43 = vld [vmem:[%s3029_s25 + $0x228] sm:$0xff]  ;;  %v239_v44 = vld [vmem:[%s3029_s25 + $0x230] sm:$0xff] }
  0x26   : > { %236 = vst [vmem:[%s3034_s26 + $0x150] sm:$0xff] %v235_v42  ;;  %238 = vst [vmem:[%s3034_s26 + $0x158] sm:$0xff] %v237_v43  ;;  %v241_v45 = vld [vmem:[%s3029_s25 + $0x238] sm:$0xff]  ;;  %v243_v46 = vld [vmem:[%s3029_s25 + $0x240] sm:$0xff] }
  0x27   : > { %240 = vst [vmem:[%s3034_s26 + $0x160] sm:$0xff] %v239_v44  ;;  %v245_v47 = vld [vmem:[%s3029_s25 + $0x248] sm:$0xff]  ;;  %242 = vst [vmem:[%s3034_s26 + $0x168] sm:$0xff] %v241_v45  ;;  %v247_v48 = vld [vmem:[%s3029_s25 + $0x250] sm:$0xff] }
  0x28   : > { %244 = vst [vmem:[%s3034_s26 + $0x170] sm:$0xff] %v243_v46  ;;  %246 = vst [vmem:[%s3034_s26 + $0x178] sm:$0xff] %v245_v47  ;;  %v249_v49 = vld [vmem:[%s3029_s25 + $0x258] sm:$0xff]  ;;  %v251_v50 = vld [vmem:[%s3029_s25 + $0x260] sm:$0xff] }
  0x29   : > { %248 = vst [vmem:[%s3034_s26 + $0x180] sm:$0xff] %v247_v48  ;;  %250 = vst [vmem:[%s3034_s26 + $0x188] sm:$0xff] %v249_v49  ;;  %v253_v51 = vld [vmem:[%s3029_s25 + $0x268] sm:$0xff]  ;;  %v255_v52 = vld [vmem:[%s3029_s25 + $0x340] sm:$0xff] }
  0x2a   : > { %252 = vst [vmem:[%s3034_s26 + $0x190] sm:$0xff] %v251_v50  ;;  %v257_v53 = vld [vmem:[%s3029_s25 + $0x348] sm:$0xff]  ;;  %254 = vst [vmem:[%s3034_s26 + $0x198] sm:$0xff] %v253_v51  ;;  %v259_v54 = vld [vmem:[%s3029_s25 + $0x350] sm:$0xff] }
  0x2b   : > { %256 = vst [vmem:[%s3034_s26 + $0x1a0] sm:$0xff] %v255_v52  ;;  %258 = vst [vmem:[%s3034_s26 + $0x1a8] sm:$0xff] %v257_v53  ;;  %v261_v55 = vld [vmem:[%s3029_s25 + $0x358] sm:$0xff]  ;;  %v263_v56 = vld [vmem:[%s3029_s25 + $0x360] sm:$0xff] }
  0x2c   : > { %260 = vst [vmem:[%s3034_s26 + $0x1b0] sm:$0xff] %v259_v54  ;;  %262 = vst [vmem:[%s3034_s26 + $0x1b8] sm:$0xff] %v261_v55  ;;  %v265_v57 = vld [vmem:[%s3029_s25 + $0x368] sm:$0xff]  ;;  %v267_v58 = vld [vmem:[%s3029_s25 + $0x370] sm:$0xff] }
  0x2d   : > { %264 = vst [vmem:[%s3034_s26 + $0x1c0] sm:$0xff] %v263_v56  ;;  %v269_v59 = vld [vmem:[%s3029_s25 + $0x378] sm:$0xff]  ;;  %266 = vst [vmem:[%s3034_s26 + $0x1c8] sm:$0xff] %v265_v57  ;;  %v271_v60 = vld [vmem:[%s3029_s25 + $0x380] sm:$0xff] }
  0x2e   : > { %268 = vst [vmem:[%s3034_s26 + $0x1d0] sm:$0xff] %v267_v58  ;;  %270 = vst [vmem:[%s3034_s26 + $0x1d8] sm:$0xff] %v269_v59  ;;  %v273_v61 = vld [vmem:[%s3029_s25 + $0x388] sm:$0xff]  ;;  %v275_v62 = vld [vmem:[%s3029_s25 + $0x390] sm:$0xff] }
  0x2f   : > { %272 = vst [vmem:[%s3034_s26 + $0x1e0] sm:$0xff] %v271_v60  ;;  %274 = vst [vmem:[%s3034_s26 + $0x1e8] sm:$0xff] %v273_v61  ;;  %v277_v63 = vld [vmem:[%s3029_s25 + $0x398] sm:$0xff]  ;;  %v279_v0 = vld [vmem:[%s3029_s25 + $0x3a0] sm:$0xff] }
  0x30   : > { %276 = vst [vmem:[%s3034_s26 + $0x1f0] sm:$0xff] %v275_v62  ;;  %v281_v1 = vld [vmem:[%s3029_s25 + $0x3a8] sm:$0xff]  ;;  %278 = vst [vmem:[%s3034_s26 + $0x1f8] sm:$0xff] %v277_v63  ;;  %v283_v2 = vld [vmem:[%s3029_s25 + $0x3b0] sm:$0xff] }
  0x31   : > { %280 = vst [vmem:[%s3034_s26 + $0x200] sm:$0xff] %v279_v0  ;;  %282 = vst [vmem:[%s3034_s26 + $0x208] sm:$0xff] %v281_v1  ;;  %v285_v3 = vld [vmem:[%s3029_s25 + $0x3b8] sm:$0xff]  ;;  %v287_v4 = vld [vmem:[%s3029_s25 + $0x3c0] sm:$0xff] }
  0x32   : > { %284 = vst [vmem:[%s3034_s26 + $0x210] sm:$0xff] %v283_v2  ;;  %286 = vst [vmem:[%s3034_s26 + $0x218] sm:$0xff] %v285_v3  ;;  %v289_v5 = vld [vmem:[%s3029_s25 + $0x3c8] sm:$0xff]  ;;  %v291_v6 = vld [vmem:[%s3029_s25 + $0x3d0] sm:$0xff] }
  0x33   : > { %288 = vst [vmem:[%s3034_s26 + $0x220] sm:$0xff] %v287_v4  ;;  %v293_v7 = vld [vmem:[%s3029_s25 + $0x3d8] sm:$0xff]  ;;  %290 = vst [vmem:[%s3034_s26 + $0x228] sm:$0xff] %v289_v5  ;;  %v295_v8 = vld [vmem:[%s3029_s25 + $0x3e0] sm:$0xff] }
  0x34   : > { %292 = vst [vmem:[%s3034_s26 + $0x230] sm:$0xff] %v291_v6  ;;  %294 = vst [vmem:[%s3034_s26 + $0x238] sm:$0xff] %v293_v7  ;;  %v297_v9 = vld [vmem:[%s3029_s25 + $0x3e8] sm:$0xff]  ;;  %v299_v10 = vld [vmem:[%s3029_s25 + $0x3f0] sm:$0xff] }
  0x35   : > { %296 = vst [vmem:[%s3034_s26 + $0x240] sm:$0xff] %v295_v8  ;;  %298 = vst [vmem:[%s3034_s26 + $0x248] sm:$0xff] %v297_v9  ;;  %v301_v11 = vld [vmem:[%s3029_s25 + $0x3f8] sm:$0xff]  ;;  %v303_v12 = vld [vmem:[%s3029_s25 + $0x400] sm:$0xff] }
  0x36   : > { %300 = vst [vmem:[%s3034_s26 + $0x250] sm:$0xff] %v299_v10  ;;  %v305_v13 = vld [vmem:[%s3029_s25 + $0x408] sm:$0xff]  ;;  %302 = vst [vmem:[%s3034_s26 + $0x258] sm:$0xff] %v301_v11  ;;  %v307_v14 = vld [vmem:[%s3029_s25 + $0x4e0] sm:$0xff] }
  0x37   : > { %304 = vst [vmem:[%s3034_s26 + $0x260] sm:$0xff] %v303_v12  ;;  %306 = vst [vmem:[%s3034_s26 + $0x268] sm:$0xff] %v305_v13  ;;  %v309_v15 = vld [vmem:[%s3029_s25 + $0x4e8] sm:$0xff]  ;;  %v311_v16 = vld [vmem:[%s3029_s25 + $0x4f0] sm:$0xff] }
  0x38   : > { %308 = vst [vmem:[%s3034_s26 + $0x270] sm:$0xff] %v307_v14  ;;  %310 = vst [vmem:[%s3034_s26 + $0x278] sm:$0xff] %v309_v15  ;;  %v313_v17 = vld [vmem:[%s3029_s25 + $0x4f8] sm:$0xff]  ;;  %v315_v18 = vld [vmem:[%s3029_s25 + $0x500] sm:$0xff] }
  0x39   : > { %312 = vst [vmem:[%s3034_s26 + $0x280] sm:$0xff] %v311_v16  ;;  %v317_v19 = vld [vmem:[%s3029_s25 + $0x508] sm:$0xff]  ;;  %314 = vst [vmem:[%s3034_s26 + $0x288] sm:$0xff] %v313_v17  ;;  %v319_v20 = vld [vmem:[%s3029_s25 + $0x510] sm:$0xff] }
  0x3a   : > { %316 = vst [vmem:[%s3034_s26 + $0x290] sm:$0xff] %v315_v18  ;;  %318 = vst [vmem:[%s3034_s26 + $0x298] sm:$0xff] %v317_v19  ;;  %v321_v21 = vld [vmem:[%s3029_s25 + $0x518] sm:$0xff]  ;;  %v323_v22 = vld [vmem:[%s3029_s25 + $0x520] sm:$0xff] }
  0x3b   : > { %320 = vst [vmem:[%s3034_s26 + $0x2a0] sm:$0xff] %v319_v20  ;;  %322 = vst [vmem:[%s3034_s26 + $0x2a8] sm:$0xff] %v321_v21  ;;  %v325_v23 = vld [vmem:[%s3029_s25 + $0x528] sm:$0xff]  ;;  %v327_v24 = vld [vmem:[%s3029_s25 + $0x530] sm:$0xff] }
  0x3c   : > { %324 = vst [vmem:[%s3034_s26 + $0x2b0] sm:$0xff] %v323_v22  ;;  %v329_v25 = vld [vmem:[%s3029_s25 + $0x538] sm:$0xff]  ;;  %326 = vst [vmem:[%s3034_s26 + $0x2b8] sm:$0xff] %v325_v23  ;;  %v331_v26 = vld [vmem:[%s3029_s25 + $0x540] sm:$0xff] }
  0x3d   : > { %328 = vst [vmem:[%s3034_s26 + $0x2c0] sm:$0xff] %v327_v24  ;;  %330 = vst [vmem:[%s3034_s26 + $0x2c8] sm:$0xff] %v329_v25  ;;  %v333_v27 = vld [vmem:[%s3029_s25 + $0x548] sm:$0xff]  ;;  %v335_v28 = vld [vmem:[%s3029_s25 + $0x550] sm:$0xff] }
  0x3e   : > { %332 = vst [vmem:[%s3034_s26 + $0x2d0] sm:$0xff] %v331_v26  ;;  %334 = vst [vmem:[%s3034_s26 + $0x2d8] sm:$0xff] %v333_v27  ;;  %v337_v29 = vld [vmem:[%s3029_s25 + $0x558] sm:$0xff]  ;;  %v339_v30 = vld [vmem:[%s3029_s25 + $0x560] sm:$0xff] }
  0x3f   : > { %336 = vst [vmem:[%s3034_s26 + $0x2e0] sm:$0xff] %v335_v28  ;;  %v341_v31 = vld [vmem:[%s3029_s25 + $0x568] sm:$0xff]  ;;  %338 = vst [vmem:[%s3034_s26 + $0x2e8] sm:$0xff] %v337_v29  ;;  %v343_v32 = vld [vmem:[%s3029_s25 + $0x570] sm:$0xff] }
  0x40   : > { %340 = vst [vmem:[%s3034_s26 + $0x2f0] sm:$0xff] %v339_v30  ;;  %342 = vst [vmem:[%s3034_s26 + $0x2f8] sm:$0xff] %v341_v31  ;;  %v345_v33 = vld [vmem:[%s3029_s25 + $0x578] sm:$0xff]  ;;  %v347_v34 = vld [vmem:[%s3029_s25 + $0x580] sm:$0xff] }
  0x41   : > { %344 = vst [vmem:[%s3034_s26 + $0x300] sm:$0xff] %v343_v32  ;;  %346 = vst [vmem:[%s3034_s26 + $0x308] sm:$0xff] %v345_v33  ;;  %v349_v35 = vld [vmem:[%s3029_s25 + $0x588] sm:$0xff]  ;;  %v351_v36 = vld [vmem:[%s3029_s25 + $0x590] sm:$0xff] }
  0x42   : > { %348 = vst [vmem:[%s3034_s26 + $0x310] sm:$0xff] %v347_v34  ;;  %v353_v37 = vld [vmem:[%s3029_s25 + $0x598] sm:$0xff]  ;;  %350 = vst [vmem:[%s3034_s26 + $0x318] sm:$0xff] %v349_v35  ;;  %v355_v38 = vld [vmem:[%s3029_s25 + $0x5a0] sm:$0xff] }
  0x43   : > { %352 = vst [vmem:[%s3034_s26 + $0x320] sm:$0xff] %v351_v36  ;;  %354 = vst [vmem:[%s3034_s26 + $0x328] sm:$0xff] %v353_v37  ;;  %v357_v39 = vld [vmem:[%s3029_s25 + $0x5a8] sm:$0xff]  ;;  %v359_v40 = vld [vmem:[%s3029_s25 + $0x680] sm:$0xff] }
  0x44   : > { %356 = vst [vmem:[%s3034_s26 + $0x330] sm:$0xff] %v355_v38  ;;  %358 = vst [vmem:[%s3034_s26 + $0x338] sm:$0xff] %v357_v39  ;;  %v361_v41 = vld [vmem:[%s3029_s25 + $0x688] sm:$0xff]  ;;  %v363_v42 = vld [vmem:[%s3029_s25 + $0x690] sm:$0xff] }
  0x45   : > { %360 = vst [vmem:[%s3034_s26 + $0x340] sm:$0xff] %v359_v40  ;;  %v365_v43 = vld [vmem:[%s3029_s25 + $0x698] sm:$0xff]  ;;  %362 = vst [vmem:[%s3034_s26 + $0x348] sm:$0xff] %v361_v41  ;;  %v367_v44 = vld [vmem:[%s3029_s25 + $0x6a0] sm:$0xff] }
  0x46   : > { %364 = vst [vmem:[%s3034_s26 + $0x350] sm:$0xff] %v363_v42  ;;  %366 = vst [vmem:[%s3034_s26 + $0x358] sm:$0xff] %v365_v43  ;;  %v369_v45 = vld [vmem:[%s3029_s25 + $0x6a8] sm:$0xff]  ;;  %v371_v46 = vld [vmem:[%s3029_s25 + $0x6b0] sm:$0xff] }
  0x47   : > { %368 = vst [vmem:[%s3034_s26 + $0x360] sm:$0xff] %v367_v44  ;;  %370 = vst [vmem:[%s3034_s26 + $0x368] sm:$0xff] %v369_v45  ;;  %v373_v47 = vld [vmem:[%s3029_s25 + $0x6b8] sm:$0xff]  ;;  %v375_v48 = vld [vmem:[%s3029_s25 + $0x6c0] sm:$0xff] }
  0x48   : > { %372 = vst [vmem:[%s3034_s26 + $0x370] sm:$0xff] %v371_v46  ;;  %v377_v49 = vld [vmem:[%s3029_s25 + $0x6c8] sm:$0xff]  ;;  %374 = vst [vmem:[%s3034_s26 + $0x378] sm:$0xff] %v373_v47  ;;  %v379_v50 = vld [vmem:[%s3029_s25 + $0x6d0] sm:$0xff] }
  0x49   : > { %376 = vst [vmem:[%s3034_s26 + $0x380] sm:$0xff] %v375_v48  ;;  %378 = vst [vmem:[%s3034_s26 + $0x388] sm:$0xff] %v377_v49  ;;  %v381_v51 = vld [vmem:[%s3029_s25 + $0x6d8] sm:$0xff]  ;;  %v383_v52 = vld [vmem:[%s3029_s25 + $0x6e0] sm:$0xff] }
  0x4a   : > { %380 = vst [vmem:[%s3034_s26 + $0x390] sm:$0xff] %v379_v50  ;;  %382 = vst [vmem:[%s3034_s26 + $0x398] sm:$0xff] %v381_v51  ;;  %v385_v53 = vld [vmem:[%s3029_s25 + $0x6e8] sm:$0xff]  ;;  %v387_v54 = vld [vmem:[%s3029_s25 + $0x6f0] sm:$0xff] }
  0x4b   : > { %384 = vst [vmem:[%s3034_s26 + $0x3a0] sm:$0xff] %v383_v52  ;;  %v389_v55 = vld [vmem:[%s3029_s25 + $0x6f8] sm:$0xff]  ;;  %386 = vst [vmem:[%s3034_s26 + $0x3a8] sm:$0xff] %v385_v53  ;;  %v391_v56 = vld [vmem:[%s3029_s25 + $0x700] sm:$0xff] }
  0x4c   : > { %388 = vst [vmem:[%s3034_s26 + $0x3b0] sm:$0xff] %v387_v54  ;;  %390 = vst [vmem:[%s3034_s26 + $0x3b8] sm:$0xff] %v389_v55  ;;  %v393_v57 = vld [vmem:[%s3029_s25 + $0x708] sm:$0xff]  ;;  %v395_v58 = vld [vmem:[%s3029_s25 + $0x710] sm:$0xff] }
  0x4d   : > { %392 = vst [vmem:[%s3034_s26 + $0x3c0] sm:$0xff] %v391_v56  ;;  %394 = vst [vmem:[%s3034_s26 + $0x3c8] sm:$0xff] %v393_v57  ;;  %v397_v59 = vld [vmem:[%s3029_s25 + $0x718] sm:$0xff]  ;;  %v399_v60 = vld [vmem:[%s3029_s25 + $0x720] sm:$0xff] }
  0x4e   : > { %396 = vst [vmem:[%s3034_s26 + $0x3d0] sm:$0xff] %v395_v58  ;;  %v401_v61 = vld [vmem:[%s3029_s25 + $0x728] sm:$0xff]  ;;  %398 = vst [vmem:[%s3034_s26 + $0x3d8] sm:$0xff] %v397_v59  ;;  %v403_v62 = vld [vmem:[%s3029_s25 + $0x730] sm:$0xff] }
  0x4f   : > { %400 = vst [vmem:[%s3034_s26 + $0x3e0] sm:$0xff] %v399_v60  ;;  %402 = vst [vmem:[%s3034_s26 + $0x3e8] sm:$0xff] %v401_v61  ;;  %v405_v63 = vld [vmem:[%s3029_s25 + $0x738] sm:$0xff]  ;;  %v407_v0 = vld [vmem:[%s3029_s25 + $0x740] sm:$0xff] }
  0x50   : > { %404 = vst [vmem:[%s3034_s26 + $0x3f0] sm:$0xff] %v403_v62  ;;  %406 = vst [vmem:[%s3034_s26 + $0x3f8] sm:$0xff] %v405_v63  ;;  %v409_v1 = vld [vmem:[%s3029_s25 + $0x748] sm:$0xff]  ;;  %v411_v2 = vld [vmem:[%s3029_s25 + $0x820] sm:$0xff] }
  0x51   : > { %408 = vst [vmem:[%s3034_s26 + $0x400] sm:$0xff] %v407_v0  ;;  %v413_v3 = vld [vmem:[%s3029_s25 + $0x828] sm:$0xff]  ;;  %410 = vst [vmem:[%s3034_s26 + $0x408] sm:$0xff] %v409_v1  ;;  %v415_v4 = vld [vmem:[%s3029_s25 + $0x830] sm:$0xff] }
  0x52   : > { %412 = vst [vmem:[%s3034_s26 + $0x410] sm:$0xff] %v411_v2  ;;  %414 = vst [vmem:[%s3034_s26 + $0x418] sm:$0xff] %v413_v3  ;;  %v417_v5 = vld [vmem:[%s3029_s25 + $0x838] sm:$0xff]  ;;  %v419_v6 = vld [vmem:[%s3029_s25 + $0x840] sm:$0xff] }
  0x53   : > { %416 = vst [vmem:[%s3034_s26 + $0x420] sm:$0xff] %v415_v4  ;;  %418 = vst [vmem:[%s3034_s26 + $0x428] sm:$0xff] %v417_v5  ;;  %v421_v7 = vld [vmem:[%s3029_s25 + $0x848] sm:$0xff]  ;;  %v423_v8 = vld [vmem:[%s3029_s25 + $0x850] sm:$0xff] }
  0x54   : > { %420 = vst [vmem:[%s3034_s26 + $0x430] sm:$0xff] %v419_v6  ;;  %v425_v9 = vld [vmem:[%s3029_s25 + $0x858] sm:$0xff]  ;;  %422 = vst [vmem:[%s3034_s26 + $0x438] sm:$0xff] %v421_v7  ;;  %v427_v10 = vld [vmem:[%s3029_s25 + $0x860] sm:$0xff] }
  0x55   : > { %424 = vst [vmem:[%s3034_s26 + $0x440] sm:$0xff] %v423_v8  ;;  %426 = vst [vmem:[%s3034_s26 + $0x448] sm:$0xff] %v425_v9  ;;  %v429_v11 = vld [vmem:[%s3029_s25 + $0x868] sm:$0xff]  ;;  %v431_v12 = vld [vmem:[%s3029_s25 + $0x870] sm:$0xff] }
  0x56   : > { %428 = vst [vmem:[%s3034_s26 + $0x450] sm:$0xff] %v427_v10  ;;  %430 = vst [vmem:[%s3034_s26 + $0x458] sm:$0xff] %v429_v11  ;;  %v433_v13 = vld [vmem:[%s3029_s25 + $0x878] sm:$0xff]  ;;  %v435_v14 = vld [vmem:[%s3029_s25 + $0x880] sm:$0xff] }
  0x57   : > { %432 = vst [vmem:[%s3034_s26 + $0x460] sm:$0xff] %v431_v12  ;;  %v437_v15 = vld [vmem:[%s3029_s25 + $0x888] sm:$0xff]  ;;  %434 = vst [vmem:[%s3034_s26 + $0x468] sm:$0xff] %v433_v13  ;;  %v439_v16 = vld [vmem:[%s3029_s25 + $0x890] sm:$0xff] }
  0x58   : > { %436 = vst [vmem:[%s3034_s26 + $0x470] sm:$0xff] %v435_v14  ;;  %438 = vst [vmem:[%s3034_s26 + $0x478] sm:$0xff] %v437_v15  ;;  %v441_v17 = vld [vmem:[%s3029_s25 + $0x898] sm:$0xff]  ;;  %v443_v18 = vld [vmem:[%s3029_s25 + $0x8a0] sm:$0xff] }
  0x59   : > { %440 = vst [vmem:[%s3034_s26 + $0x480] sm:$0xff] %v439_v16  ;;  %442 = vst [vmem:[%s3034_s26 + $0x488] sm:$0xff] %v441_v17  ;;  %v445_v19 = vld [vmem:[%s3029_s25 + $0x8a8] sm:$0xff]  ;;  %v447_v20 = vld [vmem:[%s3029_s25 + $0x8b0] sm:$0xff] }
  0x5a   : > { %444 = vst [vmem:[%s3034_s26 + $0x490] sm:$0xff] %v443_v18  ;;  %v449_v21 = vld [vmem:[%s3029_s25 + $0x8b8] sm:$0xff]  ;;  %446 = vst [vmem:[%s3034_s26 + $0x498] sm:$0xff] %v445_v19  ;;  %v451_v22 = vld [vmem:[%s3029_s25 + $0x8c0] sm:$0xff] }
  0x5b   : > { %448 = vst [vmem:[%s3034_s26 + $0x4a0] sm:$0xff] %v447_v20  ;;  %450 = vst [vmem:[%s3034_s26 + $0x4a8] sm:$0xff] %v449_v21  ;;  %v453_v23 = vld [vmem:[%s3029_s25 + $0x8c8] sm:$0xff]  ;;  %v455_v24 = vld [vmem:[%s3029_s25 + $0x8d0] sm:$0xff] }
  0x5c   : > { %452 = vst [vmem:[%s3034_s26 + $0x4b0] sm:$0xff] %v451_v22  ;;  %454 = vst [vmem:[%s3034_s26 + $0x4b8] sm:$0xff] %v453_v23  ;;  %v457_v25 = vld [vmem:[%s3029_s25 + $0x8d8] sm:$0xff]  ;;  %v459_v26 = vld [vmem:[%s3029_s25 + $0x8e0] sm:$0xff] }
  0x5d   : > { %456 = vst [vmem:[%s3034_s26 + $0x4c0] sm:$0xff] %v455_v24  ;;  %v461_v27 = vld [vmem:[%s3029_s25 + $0x8e8] sm:$0xff]  ;;  %458 = vst [vmem:[%s3034_s26 + $0x4c8] sm:$0xff] %v457_v25  ;;  %v463_v28 = vld [vmem:[%s3029_s25 + $0x9c0] sm:$0xff] }
  0x5e   : > { %460 = vst [vmem:[%s3034_s26 + $0x4d0] sm:$0xff] %v459_v26  ;;  %462 = vst [vmem:[%s3034_s26 + $0x4d8] sm:$0xff] %v461_v27  ;;  %v465_v29 = vld [vmem:[%s3029_s25 + $0x9c8] sm:$0xff]  ;;  %v467_v30 = vld [vmem:[%s3029_s25 + $0x9d0] sm:$0xff] }
  0x5f   : > { %464 = vst [vmem:[%s3034_s26 + $0x4e0] sm:$0xff] %v463_v28  ;;  %466 = vst [vmem:[%s3034_s26 + $0x4e8] sm:$0xff] %v465_v29  ;;  %v469_v31 = vld [vmem:[%s3029_s25 + $0x9d8] sm:$0xff]  ;;  %v471_v32 = vld [vmem:[%s3029_s25 + $0x9e0] sm:$0xff] }
  0x60   : > { %468 = vst [vmem:[%s3034_s26 + $0x4f0] sm:$0xff] %v467_v30  ;;  %v473_v33 = vld [vmem:[%s3029_s25 + $0x9e8] sm:$0xff]  ;;  %470 = vst [vmem:[%s3034_s26 + $0x4f8] sm:$0xff] %v469_v31  ;;  %v475_v34 = vld [vmem:[%s3029_s25 + $0x9f0] sm:$0xff] }
  0x61   : > { %472 = vst [vmem:[%s3034_s26 + $0x500] sm:$0xff] %v471_v32  ;;  %474 = vst [vmem:[%s3034_s26 + $0x508] sm:$0xff] %v473_v33  ;;  %v477_v35 = vld [vmem:[%s3029_s25 + $0x9f8] sm:$0xff]  ;;  %v479_v36 = vld [vmem:[%s3029_s25 + $0xa00] sm:$0xff] }
  0x62   : > { %476 = vst [vmem:[%s3034_s26 + $0x510] sm:$0xff] %v475_v34  ;;  %478 = vst [vmem:[%s3034_s26 + $0x518] sm:$0xff] %v477_v35  ;;  %v481_v37 = vld [vmem:[%s3029_s25 + $0xa08] sm:$0xff]  ;;  %v483_v38 = vld [vmem:[%s3029_s25 + $0xa10] sm:$0xff] }
  0x63   : > { %480 = vst [vmem:[%s3034_s26 + $0x520] sm:$0xff] %v479_v36  ;;  %v485_v39 = vld [vmem:[%s3029_s25 + $0xa18] sm:$0xff]  ;;  %482 = vst [vmem:[%s3034_s26 + $0x528] sm:$0xff] %v481_v37  ;;  %v487_v40 = vld [vmem:[%s3029_s25 + $0xa20] sm:$0xff] }
  0x64   : > { %484 = vst [vmem:[%s3034_s26 + $0x530] sm:$0xff] %v483_v38  ;;  %486 = vst [vmem:[%s3034_s26 + $0x538] sm:$0xff] %v485_v39  ;;  %v489_v41 = vld [vmem:[%s3029_s25 + $0xa28] sm:$0xff]  ;;  %v491_v42 = vld [vmem:[%s3029_s25 + $0xa30] sm:$0xff] }
  0x65   : > { %488 = vst [vmem:[%s3034_s26 + $0x540] sm:$0xff] %v487_v40  ;;  %490 = vst [vmem:[%s3034_s26 + $0x548] sm:$0xff] %v489_v41  ;;  %v493_v43 = vld [vmem:[%s3029_s25 + $0xa38] sm:$0xff]  ;;  %v495_v44 = vld [vmem:[%s3029_s25 + $0xa40] sm:$0xff] }
  0x66   : > { %492 = vst [vmem:[%s3034_s26 + $0x550] sm:$0xff] %v491_v42  ;;  %v497_v45 = vld [vmem:[%s3029_s25 + $0xa48] sm:$0xff]  ;;  %494 = vst [vmem:[%s3034_s26 + $0x558] sm:$0xff] %v493_v43  ;;  %v499_v46 = vld [vmem:[%s3029_s25 + $0xa50] sm:$0xff] }
  0x67   : > { %496 = vst [vmem:[%s3034_s26 + $0x560] sm:$0xff] %v495_v44  ;;  %498 = vst [vmem:[%s3034_s26 + $0x568] sm:$0xff] %v497_v45  ;;  %v501_v47 = vld [vmem:[%s3029_s25 + $0xa58] sm:$0xff]  ;;  %v503_v48 = vld [vmem:[%s3029_s25 + $0xa60] sm:$0xff] }
  0x68   : > { %500 = vst [vmem:[%s3034_s26 + $0x570] sm:$0xff] %v499_v46  ;;  %502 = vst [vmem:[%s3034_s26 + $0x578] sm:$0xff] %v501_v47  ;;  %v505_v49 = vld [vmem:[%s3029_s25 + $0xa68] sm:$0xff]  ;;  %v507_v50 = vld [vmem:[%s3029_s25 + $0xa70] sm:$0xff] }
  0x69   : > { %504 = vst [vmem:[%s3034_s26 + $0x580] sm:$0xff] %v503_v48  ;;  %v509_v51 = vld [vmem:[%s3029_s25 + $0xa78] sm:$0xff]  ;;  %506 = vst [vmem:[%s3034_s26 + $0x588] sm:$0xff] %v505_v49  ;;  %v511_v52 = vld [vmem:[%s3029_s25 + $0xa80] sm:$0xff] }
  0x6a   : > { %508 = vst [vmem:[%s3034_s26 + $0x590] sm:$0xff] %v507_v50  ;;  %510 = vst [vmem:[%s3034_s26 + $0x598] sm:$0xff] %v509_v51  ;;  %v513_v53 = vld [vmem:[%s3029_s25 + $0xa88] sm:$0xff]  ;;  %v515_v54 = vld [vmem:[%s3029_s25 + $0xb60] sm:$0xff] }
  0x6b   : > { %512 = vst [vmem:[%s3034_s26 + $0x5a0] sm:$0xff] %v511_v52  ;;  %514 = vst [vmem:[%s3034_s26 + $0x5a8] sm:$0xff] %v513_v53  ;;  %v517_v55 = vld [vmem:[%s3029_s25 + $0xb68] sm:$0xff]  ;;  %v519_v56 = vld [vmem:[%s3029_s25 + $0xb70] sm:$0xff] }
  0x6c   : > { %516 = vst [vmem:[%s3034_s26 + $0x5b0] sm:$0xff] %v515_v54  ;;  %v521_v57 = vld [vmem:[%s3029_s25 + $0xb78] sm:$0xff]  ;;  %518 = vst [vmem:[%s3034_s26 + $0x5b8] sm:$0xff] %v517_v55  ;;  %v523_v58 = vld [vmem:[%s3029_s25 + $0xb80] sm:$0xff] }
  0x6d   : > { %520 = vst [vmem:[%s3034_s26 + $0x5c0] sm:$0xff] %v519_v56  ;;  %522 = vst [vmem:[%s3034_s26 + $0x5c8] sm:$0xff] %v521_v57  ;;  %v525_v59 = vld [vmem:[%s3029_s25 + $0xb88] sm:$0xff]  ;;  %v527_v60 = vld [vmem:[%s3029_s25 + $0xb90] sm:$0xff] }
  0x6e   : > { %524 = vst [vmem:[%s3034_s26 + $0x5d0] sm:$0xff] %v523_v58  ;;  %526 = vst [vmem:[%s3034_s26 + $0x5d8] sm:$0xff] %v525_v59  ;;  %v529_v61 = vld [vmem:[%s3029_s25 + $0xb98] sm:$0xff]  ;;  %v531_v62 = vld [vmem:[%s3029_s25 + $0xba0] sm:$0xff] }
  0x6f   : > { %528 = vst [vmem:[%s3034_s26 + $0x5e0] sm:$0xff] %v527_v60  ;;  %v533_v63 = vld [vmem:[%s3029_s25 + $0xba8] sm:$0xff]  ;;  %530 = vst [vmem:[%s3034_s26 + $0x5e8] sm:$0xff] %v529_v61  ;;  %v535_v0 = vld [vmem:[%s3029_s25 + $0xbb0] sm:$0xff] }
  0x70   : > { %532 = vst [vmem:[%s3034_s26 + $0x5f0] sm:$0xff] %v531_v62  ;;  %534 = vst [vmem:[%s3034_s26 + $0x5f8] sm:$0xff] %v533_v63  ;;  %v537_v1 = vld [vmem:[%s3029_s25 + $0xbb8] sm:$0xff]  ;;  %v539_v2 = vld [vmem:[%s3029_s25 + $0xbc0] sm:$0xff] }
  0x71   : > { %536 = vst [vmem:[%s3034_s26 + $0x600] sm:$0xff] %v535_v0  ;;  %538 = vst [vmem:[%s3034_s26 + $0x608] sm:$0xff] %v537_v1  ;;  %v541_v3 = vld [vmem:[%s3029_s25 + $0xbc8] sm:$0xff]  ;;  %v543_v4 = vld [vmem:[%s3029_s25 + $0xbd0] sm:$0xff] }
  0x72   : > { %540 = vst [vmem:[%s3034_s26 + $0x610] sm:$0xff] %v539_v2  ;;  %v545_v5 = vld [vmem:[%s3029_s25 + $0xbd8] sm:$0xff]  ;;  %542 = vst [vmem:[%s3034_s26 + $0x618] sm:$0xff] %v541_v3  ;;  %v547_v6 = vld [vmem:[%s3029_s25 + $0xbe0] sm:$0xff] }
  0x73   : > { %544 = vst [vmem:[%s3034_s26 + $0x620] sm:$0xff] %v543_v4  ;;  %546 = vst [vmem:[%s3034_s26 + $0x628] sm:$0xff] %v545_v5  ;;  %v549_v7 = vld [vmem:[%s3029_s25 + $0xbe8] sm:$0xff]  ;;  %v551_v8 = vld [vmem:[%s3029_s25 + $0xbf0] sm:$0xff] }
  0x74   : > { %548 = vst [vmem:[%s3034_s26 + $0x630] sm:$0xff] %v547_v6  ;;  %550 = vst [vmem:[%s3034_s26 + $0x638] sm:$0xff] %v549_v7  ;;  %v553_v9 = vld [vmem:[%s3029_s25 + $0xbf8] sm:$0xff]  ;;  %v555_v10 = vld [vmem:[%s3029_s25 + $0xc00] sm:$0xff] }
  0x75   : > { %552 = vst [vmem:[%s3034_s26 + $0x640] sm:$0xff] %v551_v8  ;;  %v557_v11 = vld [vmem:[%s3029_s25 + $0xc08] sm:$0xff]  ;;  %554 = vst [vmem:[%s3034_s26 + $0x648] sm:$0xff] %v553_v9  ;;  %v559_v12 = vld [vmem:[%s3029_s25 + $0xc10] sm:$0xff] }
  0x76   : > { %556 = vst [vmem:[%s3034_s26 + $0x650] sm:$0xff] %v555_v10  ;;  %558 = vst [vmem:[%s3034_s26 + $0x658] sm:$0xff] %v557_v11  ;;  %v561_v13 = vld [vmem:[%s3029_s25 + $0xc18] sm:$0xff]  ;;  %v563_v14 = vld [vmem:[%s3029_s25 + $0xc20] sm:$0xff] }
  0x77   : > { %560 = vst [vmem:[%s3034_s26 + $0x660] sm:$0xff] %v559_v12  ;;  %562 = vst [vmem:[%s3034_s26 + $0x668] sm:$0xff] %v561_v13  ;;  %v565_v15 = vld [vmem:[%s3029_s25 + $0xc28] sm:$0xff]  ;;  %v567_v16 = vld [vmem:[%s3029_s25 + $0xd00] sm:$0xff] }
  0x78   : > { %564 = vst [vmem:[%s3034_s26 + $0x670] sm:$0xff] %v563_v14  ;;  %v569_v17 = vld [vmem:[%s3029_s25 + $0xd08] sm:$0xff]  ;;  %566 = vst [vmem:[%s3034_s26 + $0x678] sm:$0xff] %v565_v15  ;;  %v571_v18 = vld [vmem:[%s3029_s25 + $0xd10] sm:$0xff] }
  0x79   : > { %568 = vst [vmem:[%s3034_s26 + $0x680] sm:$0xff] %v567_v16  ;;  %570 = vst [vmem:[%s3034_s26 + $0x688] sm:$0xff] %v569_v17  ;;  %v573_v19 = vld [vmem:[%s3029_s25 + $0xd18] sm:$0xff]  ;;  %v575_v20 = vld [vmem:[%s3029_s25 + $0xd20] sm:$0xff] }
  0x7a   : > { %572 = vst [vmem:[%s3034_s26 + $0x690] sm:$0xff] %v571_v18  ;;  %574 = vst [vmem:[%s3034_s26 + $0x698] sm:$0xff] %v573_v19  ;;  %v577_v21 = vld [vmem:[%s3029_s25 + $0xd28] sm:$0xff]  ;;  %v579_v22 = vld [vmem:[%s3029_s25 + $0xd30] sm:$0xff] }
  0x7b   : > { %576 = vst [vmem:[%s3034_s26 + $0x6a0] sm:$0xff] %v575_v20  ;;  %v581_v23 = vld [vmem:[%s3029_s25 + $0xd38] sm:$0xff]  ;;  %578 = vst [vmem:[%s3034_s26 + $0x6a8] sm:$0xff] %v577_v21  ;;  %v583_v24 = vld [vmem:[%s3029_s25 + $0xd40] sm:$0xff] }
  0x7c   : > { %580 = vst [vmem:[%s3034_s26 + $0x6b0] sm:$0xff] %v579_v22  ;;  %582 = vst [vmem:[%s3034_s26 + $0x6b8] sm:$0xff] %v581_v23  ;;  %v585_v25 = vld [vmem:[%s3029_s25 + $0xd48] sm:$0xff]  ;;  %v587_v26 = vld [vmem:[%s3029_s25 + $0xd50] sm:$0xff] }
  0x7d   : > { %584 = vst [vmem:[%s3034_s26 + $0x6c0] sm:$0xff] %v583_v24  ;;  %586 = vst [vmem:[%s3034_s26 + $0x6c8] sm:$0xff] %v585_v25  ;;  %v589_v27 = vld [vmem:[%s3029_s25 + $0xd58] sm:$0xff]  ;;  %v591_v28 = vld [vmem:[%s3029_s25 + $0xd60] sm:$0xff] }
  0x7e   : > { %588 = vst [vmem:[%s3034_s26 + $0x6d0] sm:$0xff] %v587_v26  ;;  %v593_v29 = vld [vmem:[%s3029_s25 + $0xd68] sm:$0xff]  ;;  %590 = vst [vmem:[%s3034_s26 + $0x6d8] sm:$0xff] %v589_v27  ;;  %v595_v30 = vld [vmem:[%s3029_s25 + $0xd70] sm:$0xff] }
  0x7f   : > { %592 = vst [vmem:[%s3034_s26 + $0x6e0] sm:$0xff] %v591_v28  ;;  %594 = vst [vmem:[%s3034_s26 + $0x6e8] sm:$0xff] %v593_v29  ;;  %v597_v31 = vld [vmem:[%s3029_s25 + $0xd78] sm:$0xff]  ;;  %v599_v32 = vld [vmem:[%s3029_s25 + $0xd80] sm:$0xff] }
  0x80   : > { %596 = vst [vmem:[%s3034_s26 + $0x6f0] sm:$0xff] %v595_v30  ;;  %598 = vst [vmem:[%s3034_s26 + $0x6f8] sm:$0xff] %v597_v31  ;;  %v601_v33 = vld [vmem:[%s3029_s25 + $0xd88] sm:$0xff]  ;;  %v603_v34 = vld [vmem:[%s3029_s25 + $0xd90] sm:$0xff] }
  0x81   : > { %600 = vst [vmem:[%s3034_s26 + $0x700] sm:$0xff] %v599_v32  ;;  %v605_v35 = vld [vmem:[%s3029_s25 + $0xd98] sm:$0xff]  ;;  %602 = vst [vmem:[%s3034_s26 + $0x708] sm:$0xff] %v601_v33  ;;  %v607_v36 = vld [vmem:[%s3029_s25 + $0xda0] sm:$0xff] }
  0x82   : > { %604 = vst [vmem:[%s3034_s26 + $0x710] sm:$0xff] %v603_v34  ;;  %606 = vst [vmem:[%s3034_s26 + $0x718] sm:$0xff] %v605_v35  ;;  %v609_v37 = vld [vmem:[%s3029_s25 + $0xda8] sm:$0xff]  ;;  %v611_v38 = vld [vmem:[%s3029_s25 + $0xdb0] sm:$0xff] }
  0x83   : > { %608 = vst [vmem:[%s3034_s26 + $0x720] sm:$0xff] %v607_v36  ;;  %610 = vst [vmem:[%s3034_s26 + $0x728] sm:$0xff] %v609_v37  ;;  %v613_v39 = vld [vmem:[%s3029_s25 + $0xdb8] sm:$0xff]  ;;  %v615_v40 = vld [vmem:[%s3029_s25 + $0xdc0] sm:$0xff] }
  0x84   : > { %612 = vst [vmem:[%s3034_s26 + $0x730] sm:$0xff] %v611_v38  ;;  %v617_v41 = vld [vmem:[%s3029_s25 + $0xdc8] sm:$0xff]  ;;  %614 = vst [vmem:[%s3034_s26 + $0x738] sm:$0xff] %v613_v39  ;;  %v619_v42 = vld [vmem:[%s3029_s25 + $0xea0] sm:$0xff] }
  0x85   : > { %616 = vst [vmem:[%s3034_s26 + $0x740] sm:$0xff] %v615_v40  ;;  %618 = vst [vmem:[%s3034_s26 + $0x748] sm:$0xff] %v617_v41  ;;  %v621_v43 = vld [vmem:[%s3029_s25 + $0xea8] sm:$0xff]  ;;  %v623_v44 = vld [vmem:[%s3029_s25 + $0xeb0] sm:$0xff] }
  0x86   : > { %620 = vst [vmem:[%s3034_s26 + $0x750] sm:$0xff] %v619_v42  ;;  %622 = vst [vmem:[%s3034_s26 + $0x758] sm:$0xff] %v621_v43  ;;  %v625_v45 = vld [vmem:[%s3029_s25 + $0xeb8] sm:$0xff]  ;;  %v627_v46 = vld [vmem:[%s3029_s25 + $0xec0] sm:$0xff] }
  0x87   : > { %624 = vst [vmem:[%s3034_s26 + $0x760] sm:$0xff] %v623_v44  ;;  %v629_v47 = vld [vmem:[%s3029_s25 + $0xec8] sm:$0xff]  ;;  %626 = vst [vmem:[%s3034_s26 + $0x768] sm:$0xff] %v625_v45  ;;  %v631_v48 = vld [vmem:[%s3029_s25 + $0xed0] sm:$0xff] }
  0x88   : > { %628 = vst [vmem:[%s3034_s26 + $0x770] sm:$0xff] %v627_v46  ;;  %630 = vst [vmem:[%s3034_s26 + $0x778] sm:$0xff] %v629_v47  ;;  %v633_v49 = vld [vmem:[%s3029_s25 + $0xed8] sm:$0xff]  ;;  %v635_v50 = vld [vmem:[%s3029_s25 + $0xee0] sm:$0xff] }
  0x89   : > { %632 = vst [vmem:[%s3034_s26 + $0x780] sm:$0xff] %v631_v48  ;;  %634 = vst [vmem:[%s3034_s26 + $0x788] sm:$0xff] %v633_v49  ;;  %v637_v51 = vld [vmem:[%s3029_s25 + $0xee8] sm:$0xff]  ;;  %v639_v52 = vld [vmem:[%s3029_s25 + $0xef0] sm:$0xff] }
  0x8a   : > { %636 = vst [vmem:[%s3034_s26 + $0x790] sm:$0xff] %v635_v50  ;;  %v641_v53 = vld [vmem:[%s3029_s25 + $0xef8] sm:$0xff]  ;;  %638 = vst [vmem:[%s3034_s26 + $0x798] sm:$0xff] %v637_v51  ;;  %v643_v54 = vld [vmem:[%s3029_s25 + $0xf00] sm:$0xff] }
  0x8b   : > { %640 = vst [vmem:[%s3034_s26 + $0x7a0] sm:$0xff] %v639_v52  ;;  %642 = vst [vmem:[%s3034_s26 + $0x7a8] sm:$0xff] %v641_v53  ;;  %v645_v55 = vld [vmem:[%s3029_s25 + $0xf08] sm:$0xff]  ;;  %v647_v56 = vld [vmem:[%s3029_s25 + $0xf10] sm:$0xff] }
  0x8c   : > { %644 = vst [vmem:[%s3034_s26 + $0x7b0] sm:$0xff] %v643_v54  ;;  %646 = vst [vmem:[%s3034_s26 + $0x7b8] sm:$0xff] %v645_v55  ;;  %v649_v57 = vld [vmem:[%s3029_s25 + $0xf18] sm:$0xff]  ;;  %v651_v58 = vld [vmem:[%s3029_s25 + $0xf20] sm:$0xff] }
  0x8d   : > { %648 = vst [vmem:[%s3034_s26 + $0x7c0] sm:$0xff] %v647_v56  ;;  %v653_v59 = vld [vmem:[%s3029_s25 + $0xf28] sm:$0xff]  ;;  %650 = vst [vmem:[%s3034_s26 + $0x7c8] sm:$0xff] %v649_v57  ;;  %v655_v60 = vld [vmem:[%s3029_s25 + $0xf30] sm:$0xff] }
  0x8e   : > { %652 = vst [vmem:[%s3034_s26 + $0x7d0] sm:$0xff] %v651_v58  ;;  %654 = vst [vmem:[%s3034_s26 + $0x7d8] sm:$0xff] %v653_v59  ;;  %v657_v61 = vld [vmem:[%s3029_s25 + $0xf38] sm:$0xff]  ;;  %v659_v62 = vld [vmem:[%s3029_s25 + $0xf40] sm:$0xff] }
  0x8f   : > { %656 = vst [vmem:[%s3034_s26 + $0x7e0] sm:$0xff] %v655_v60  ;;  %658 = vst [vmem:[%s3034_s26 + $0x7e8] sm:$0xff] %v657_v61  ;;  %v661_v63 = vld [vmem:[%s3029_s25 + $0xf48] sm:$0xff]  ;;  %v663_v0 = vld [vmem:[%s3029_s25 + $0xf50] sm:$0xff] }
  0x90   : > { %660 = vst [vmem:[%s3034_s26 + $0x7f0] sm:$0xff] %v659_v62  ;;  %v665_v1 = vld [vmem:[%s3029_s25 + $0xf58] sm:$0xff]  ;;  %662 = vst [vmem:[%s3034_s26 + $0x7f8] sm:$0xff] %v661_v63  ;;  %v667_v2 = vld [vmem:[%s3029_s25 + $0xf60] sm:$0xff] }
  0x91   : > { %664 = vst [vmem:[%s3034_s26 + $0x800] sm:$0xff] %v663_v0  ;;  %666 = vst [vmem:[%s3034_s26 + $0x808] sm:$0xff] %v665_v1  ;;  %v669_v3 = vld [vmem:[%s3029_s25 + $0xf68] sm:$0xff]  ;;  %v671_v4 = vld [vmem:[%s3029_s25 + $0x1040] sm:$0xff] }
  0x92   : > { %668 = vst [vmem:[%s3034_s26 + $0x810] sm:$0xff] %v667_v2  ;;  %670 = vst [vmem:[%s3034_s26 + $0x818] sm:$0xff] %v669_v3  ;;  %v673_v5 = vld [vmem:[%s3029_s25 + $0x1048] sm:$0xff]  ;;  %v675_v6 = vld [vmem:[%s3029_s25 + $0x1050] sm:$0xff] }
  0x93   : > { %672 = vst [vmem:[%s3034_s26 + $0x820] sm:$0xff] %v671_v4  ;;  %v677_v7 = vld [vmem:[%s3029_s25 + $0x1058] sm:$0xff]  ;;  %674 = vst [vmem:[%s3034_s26 + $0x828] sm:$0xff] %v673_v5  ;;  %v679_v8 = vld [vmem:[%s3029_s25 + $0x1060] sm:$0xff] }
  0x94   : > { %676 = vst [vmem:[%s3034_s26 + $0x830] sm:$0xff] %v675_v6  ;;  %678 = vst [vmem:[%s3034_s26 + $0x838] sm:$0xff] %v677_v7  ;;  %v681_v9 = vld [vmem:[%s3029_s25 + $0x1068] sm:$0xff]  ;;  %v683_v10 = vld [vmem:[%s3029_s25 + $0x1070] sm:$0xff] }
  0x95   : > { %680 = vst [vmem:[%s3034_s26 + $0x840] sm:$0xff] %v679_v8  ;;  %682 = vst [vmem:[%s3034_s26 + $0x848] sm:$0xff] %v681_v9  ;;  %v685_v11 = vld [vmem:[%s3029_s25 + $0x1078] sm:$0xff]  ;;  %v687_v12 = vld [vmem:[%s3029_s25 + $0x1080] sm:$0xff] }
  0x96   : > { %684 = vst [vmem:[%s3034_s26 + $0x850] sm:$0xff] %v683_v10  ;;  %v689_v13 = vld [vmem:[%s3029_s25 + $0x1088] sm:$0xff]  ;;  %686 = vst [vmem:[%s3034_s26 + $0x858] sm:$0xff] %v685_v11  ;;  %v691_v14 = vld [vmem:[%s3029_s25 + $0x1090] sm:$0xff] }
  0x97   : > { %688 = vst [vmem:[%s3034_s26 + $0x860] sm:$0xff] %v687_v12  ;;  %690 = vst [vmem:[%s3034_s26 + $0x868] sm:$0xff] %v689_v13  ;;  %v693_v15 = vld [vmem:[%s3029_s25 + $0x1098] sm:$0xff]  ;;  %v695_v16 = vld [vmem:[%s3029_s25 + $0x10a0] sm:$0xff] }
  0x98   : > { %692 = vst [vmem:[%s3034_s26 + $0x870] sm:$0xff] %v691_v14  ;;  %694 = vst [vmem:[%s3034_s26 + $0x878] sm:$0xff] %v693_v15  ;;  %v697_v17 = vld [vmem:[%s3029_s25 + $0x10a8] sm:$0xff]  ;;  %v699_v18 = vld [vmem:[%s3029_s25 + $0x10b0] sm:$0xff] }
  0x99   : > { %696 = vst [vmem:[%s3034_s26 + $0x880] sm:$0xff] %v695_v16  ;;  %v701_v19 = vld [vmem:[%s3029_s25 + $0x10b8] sm:$0xff]  ;;  %698 = vst [vmem:[%s3034_s26 + $0x888] sm:$0xff] %v697_v17  ;;  %v703_v20 = vld [vmem:[%s3029_s25 + $0x10c0] sm:$0xff] }
  0x9a   : > { %700 = vst [vmem:[%s3034_s26 + $0x890] sm:$0xff] %v699_v18  ;;  %702 = vst [vmem:[%s3034_s26 + $0x898] sm:$0xff] %v701_v19  ;;  %v705_v21 = vld [vmem:[%s3029_s25 + $0x10c8] sm:$0xff]  ;;  %v707_v22 = vld [vmem:[%s3029_s25 + $0x10d0] sm:$0xff] }
  0x9b   : > { %704 = vst [vmem:[%s3034_s26 + $0x8a0] sm:$0xff] %v703_v20  ;;  %706 = vst [vmem:[%s3034_s26 + $0x8a8] sm:$0xff] %v705_v21  ;;  %v709_v23 = vld [vmem:[%s3029_s25 + $0x10d8] sm:$0xff]  ;;  %v711_v24 = vld [vmem:[%s3029_s25 + $0x10e0] sm:$0xff] }
  0x9c   : > { %708 = vst [vmem:[%s3034_s26 + $0x8b0] sm:$0xff] %v707_v22  ;;  %v713_v25 = vld [vmem:[%s3029_s25 + $0x10e8] sm:$0xff]  ;;  %710 = vst [vmem:[%s3034_s26 + $0x8b8] sm:$0xff] %v709_v23  ;;  %v715_v26 = vld [vmem:[%s3029_s25 + $0x10f0] sm:$0xff] }
  0x9d   : > { %712 = vst [vmem:[%s3034_s26 + $0x8c0] sm:$0xff] %v711_v24  ;;  %714 = vst [vmem:[%s3034_s26 + $0x8c8] sm:$0xff] %v713_v25  ;;  %v717_v27 = vld [vmem:[%s3029_s25 + $0x10f8] sm:$0xff]  ;;  %v719_v28 = vld [vmem:[%s3029_s25 + $0x1100] sm:$0xff] }
  0x9e   : > { %716 = vst [vmem:[%s3034_s26 + $0x8d0] sm:$0xff] %v715_v26  ;;  %718 = vst [vmem:[%s3034_s26 + $0x8d8] sm:$0xff] %v717_v27  ;;  %v721_v29 = vld [vmem:[%s3029_s25 + $0x1108] sm:$0xff]  ;;  %v723_v30 = vld [vmem:[%s3029_s25 + $0x11e0] sm:$0xff] }
  0x9f   : > { %720 = vst [vmem:[%s3034_s26 + $0x8e0] sm:$0xff] %v719_v28  ;;  %v725_v31 = vld [vmem:[%s3029_s25 + $0x11e8] sm:$0xff]  ;;  %722 = vst [vmem:[%s3034_s26 + $0x8e8] sm:$0xff] %v721_v29  ;;  %v727_v32 = vld [vmem:[%s3029_s25 + $0x11f0] sm:$0xff] }
  0xa0   : > { %724 = vst [vmem:[%s3034_s26 + $0x8f0] sm:$0xff] %v723_v30  ;;  %726 = vst [vmem:[%s3034_s26 + $0x8f8] sm:$0xff] %v725_v31  ;;  %v729_v33 = vld [vmem:[%s3029_s25 + $0x11f8] sm:$0xff]  ;;  %v731_v34 = vld [vmem:[%s3029_s25 + $0x1200] sm:$0xff] }
  0xa1   : > { %728 = vst [vmem:[%s3034_s26 + $0x900] sm:$0xff] %v727_v32  ;;  %730 = vst [vmem:[%s3034_s26 + $0x908] sm:$0xff] %v729_v33  ;;  %v733_v35 = vld [vmem:[%s3029_s25 + $0x1208] sm:$0xff]  ;;  %v735_v36 = vld [vmem:[%s3029_s25 + $0x1210] sm:$0xff] }
  0xa2   : > { %732 = vst [vmem:[%s3034_s26 + $0x910] sm:$0xff] %v731_v34  ;;  %v737_v37 = vld [vmem:[%s3029_s25 + $0x1218] sm:$0xff]  ;;  %734 = vst [vmem:[%s3034_s26 + $0x918] sm:$0xff] %v733_v35  ;;  %v739_v38 = vld [vmem:[%s3029_s25 + $0x1220] sm:$0xff] }
  0xa3   : > { %736 = vst [vmem:[%s3034_s26 + $0x920] sm:$0xff] %v735_v36  ;;  %738 = vst [vmem:[%s3034_s26 + $0x928] sm:$0xff] %v737_v37  ;;  %v741_v39 = vld [vmem:[%s3029_s25 + $0x1228] sm:$0xff]  ;;  %v743_v40 = vld [vmem:[%s3029_s25 + $0x1230] sm:$0xff] }
  0xa4   : > { %740 = vst [vmem:[%s3034_s26 + $0x930] sm:$0xff] %v739_v38  ;;  %742 = vst [vmem:[%s3034_s26 + $0x938] sm:$0xff] %v741_v39  ;;  %v745_v41 = vld [vmem:[%s3029_s25 + $0x1238] sm:$0xff]  ;;  %v747_v42 = vld [vmem:[%s3029_s25 + $0x1240] sm:$0xff] }
  0xa5   : > { %744 = vst [vmem:[%s3034_s26 + $0x940] sm:$0xff] %v743_v40  ;;  %v749_v43 = vld [vmem:[%s3029_s25 + $0x1248] sm:$0xff]  ;;  %746 = vst [vmem:[%s3034_s26 + $0x948] sm:$0xff] %v745_v41  ;;  %v751_v44 = vld [vmem:[%s3029_s25 + $0x1250] sm:$0xff] }
  0xa6   : > { %748 = vst [vmem:[%s3034_s26 + $0x950] sm:$0xff] %v747_v42  ;;  %750 = vst [vmem:[%s3034_s26 + $0x958] sm:$0xff] %v749_v43  ;;  %v753_v45 = vld [vmem:[%s3029_s25 + $0x1258] sm:$0xff]  ;;  %v755_v46 = vld [vmem:[%s3029_s25 + $0x1260] sm:$0xff] }
  0xa7   : > { %752 = vst [vmem:[%s3034_s26 + $0x960] sm:$0xff] %v751_v44  ;;  %754 = vst [vmem:[%s3034_s26 + $0x968] sm:$0xff] %v753_v45  ;;  %v757_v47 = vld [vmem:[%s3029_s25 + $0x1268] sm:$0xff]  ;;  %v759_v48 = vld [vmem:[%s3029_s25 + $0x1270] sm:$0xff] }
  0xa8   : > { %756 = vst [vmem:[%s3034_s26 + $0x970] sm:$0xff] %v755_v46  ;;  %v761_v49 = vld [vmem:[%s3029_s25 + $0x1278] sm:$0xff]  ;;  %758 = vst [vmem:[%s3034_s26 + $0x978] sm:$0xff] %v757_v47  ;;  %v763_v50 = vld [vmem:[%s3029_s25 + $0x1280] sm:$0xff] }
  0xa9   : > { %760 = vst [vmem:[%s3034_s26 + $0x980] sm:$0xff] %v759_v48  ;;  %762 = vst [vmem:[%s3034_s26 + $0x988] sm:$0xff] %v761_v49  ;;  %v765_v51 = vld [vmem:[%s3029_s25 + $0x1288] sm:$0xff]  ;;  %v767_v52 = vld [vmem:[%s3029_s25 + $0x1290] sm:$0xff] }
  0xaa   : > { %764 = vst [vmem:[%s3034_s26 + $0x990] sm:$0xff] %v763_v50  ;;  %766 = vst [vmem:[%s3034_s26 + $0x998] sm:$0xff] %v765_v51  ;;  %v769_v53 = vld [vmem:[%s3029_s25 + $0x1298] sm:$0xff]  ;;  %v771_v54 = vld [vmem:[%s3029_s25 + $0x12a0] sm:$0xff] }
  0xab   : > { %768 = vst [vmem:[%s3034_s26 + $0x9a0] sm:$0xff] %v767_v52  ;;  %v773_v55 = vld [vmem:[%s3029_s25 + $0x12a8] sm:$0xff]  ;;  %770 = vst [vmem:[%s3034_s26 + $0x9a8] sm:$0xff] %v769_v53 }
  0xac   : > { %772 = vst [vmem:[%s3034_s26 + $0x9b0] sm:$0xff] %v771_v54  ;;  %774 = vst [vmem:[%s3034_s26 + $0x9b8] sm:$0xff] %v773_v55 }
  0xad PF: > { %p2719_p5 = scmp.ge.s32.totalorder %s2972_s14, 1  ;;  %p779_p6 = scmp.lt.s32.totalorder %s2972_s14, 3 }
  0xaf   : > { %p780_p7 = pnand %p2719_p5, %p779_p6 }
  0xb0   : > { %s786_s26 = sand.u32 (!%p780_p7), 1, %s2964_s12   ;;  %s810_s27 = smul.u32 (!%p780_p7), 13, %s2713_s15 }
  0xb1   : > { %783 = sbr.rel (%p780_p7) target bundleno = 733 (0x2dd), region = 51 }
  0xb2   : > { %s2924_s4 = smul.u32 (!%p780_p7), 2496, %s786_s26  ;;  %p811_p8 = scmp.lt.s32.totalorder (!%p780_p7), %s810_s27, 25 }
  0xb4   : > { %s3733_s10 = scalar_lea.vmem (!%p780_p7), [#allocation2], %s2924_s4 }
  0xb6   : > { %v1143_v56 = vld [vmem:[%s4813_s1 + $0x78] sm:$0xff]  ;;  %v2974_v57 = vmov 0.0   ;;  %v1142_v58 = vld [vmem:[%s4813_s1 + $0x70] sm:$0xff]  ;;  %v1141_v59 = vld [vmem:[%s4813_s1 + $0x68] sm:$0xff]  ;;  %vm1148_vm0 = vcmask 261120   ;;  %s4831_s27 = smov (!%p811_p8, %s810_s27), 25 }
  0xb7   : > { %1617 = vmatprep.subr.mxu0 %v2974_v57  ;;  %2883 = vmatprep.subr.mxu1 %v2974_v57  ;;  %v1140_v60 = vld [vmem:[%s4813_s1 + $0x60] sm:$0xff]  ;;  %v1139_v61 = vld [vmem:[%s4813_s1 + $0x58] sm:$0xff]  ;;  %v1138_v62 = vld [vmem:[%s4813_s1 + $0x50] sm:$0xff]  ;;  %s2720_s28 = sshll.u32 %s4831_s27, 3 }
  0xb8   : > { %1618 = vmatpush1.msra.mxu0 %v1143_v56  ;;  %2903 = vmatpush1.msra.mxu1 %v1143_v56  ;;  %v1137_v63 = vld [vmem:[%s4813_s1 + $0x48] sm:$0xff]  ;;  %v1136_v0 = vld [vmem:[%s4813_s1 + $0x40] sm:$0xff]  ;;  %v1135_v1 = vld [vmem:[%s4813_s1 + $0x38] sm:$0xff]  ;;  %s4724_s4 = scalar_lea.vmem %s4815_s3, %s2720_s28 }
  0xb9   : > { %1619 = vmatprep.subr.mxu0 %v2974_v57  ;;  %2884 = vmatprep.subr.mxu1 %v2974_v57  ;;  %v1134_v2 = vld [vmem:[%s4813_s1 + $0x30] sm:$0xff]  ;;  %v1133_v3 = vld [vmem:[%s4813_s1 + $0x28] sm:$0xff]  ;;  %v1132_v4 = vld [vmem:[%s4813_s1 + $0x20] sm:$0xff] }
  0xba   : > { %1620 = vmatpush1.msra.mxu0 %v1142_v58  ;;  %2904 = vmatpush1.msra.mxu1 %v1142_v58  ;;  %v1131_v5 = vld [vmem:[%s4813_s1 + $0x18] sm:$0xff]  ;;  %v1130_v6 = vld [vmem:[%s4813_s1 + $0x10] sm:$0xff]  ;;  %v1129_v7 = vld [vmem:[%s4813_s1 + $0x8] sm:$0xff] }
  0xbb   : > { %1621 = vmatprep.subr.mxu0 %v2974_v57  ;;  %2885 = vmatprep.subr.mxu1 %v2974_v57  ;;  %v817_v8 = vld [vmem:[%s3733_s10 + $0x8] sm:$0xff]  ;;  %v1128_v9 = vld [vmem:[%s4813_s1] sm:$0xff]  ;;  %v1147_v10 = vld [vmem:[%s4813_s1 + $0x98] sm:$0xff] }
  0xbc   : > { %1622 = vmatpush1.msra.mxu0 %v1141_v59  ;;  %2905 = vmatpush1.msra.mxu1 %v1141_v59  ;;  %v1146_v11 = vld [vmem:[%s4813_s1 + $0x90] sm:$0xff]  ;;  %v1145_v12 = vld [vmem:[%s4813_s1 + $0x88] sm:$0xff]  ;;  %v1144_v13 = vld [vmem:[%s4813_s1 + $0x80] sm:$0xff] }
  0xbd   : > { %1623 = vmatprep.subr.mxu0 %v2974_v57  ;;  %2886 = vmatprep.subr.mxu1 %v2974_v57  ;;  %v816_v14 = vld [vmem:[%s3733_s10] sm:$0xff]  ;;  %v819_v15 = vld [vmem:[%s3733_s10 + $0x18] sm:$0xff]  ;;  %v973_v16 = vld [vmem:[%s3733_s10 + $0x4e8] sm:$0xff] }
  0xbe   : > { %1624 = vmatpush1.msra.mxu0 %v1140_v60  ;;  %2906 = vmatpush1.msra.mxu1 %v1140_v60  ;;  %v972_v17 = vld [vmem:[%s3733_s10 + $0x4e0] sm:$0xff]  ;;  %v975_v18 = vld [vmem:[%s3733_s10 + $0x4f8] sm:$0xff]  ;;  %v818_v19 = vld [vmem:[%s3733_s10 + $0x10] sm:$0xff] }
  0xbf   : > { %1625 = vmatprep.subr.mxu0 %v2974_v57  ;;  %2887 = vmatprep.subr.mxu1 %v2974_v57  ;;  %v821_v20 = vld [vmem:[%s3733_s10 + $0x28] sm:$0xff]  ;;  %v974_v21 = vld [vmem:[%s3733_s10 + $0x4f0] sm:$0xff]  ;;  %v820_v23 = vld [vmem:[%s3733_s10 + $0x20] sm:$0xff] }
  0xc0   : > { %1626 = vmatpush1.msra.mxu0 %v1139_v61  ;;  %2907 = vmatpush1.msra.mxu1 %v1139_v61  ;;  %v977_v22 = vld [vmem:[%s3733_s10 + $0x508] sm:$0xff]  ;;  %v823_v24 = vld [vmem:[%s3733_s10 + $0x38] sm:$0xff]  ;;  %v976_v25 = vld [vmem:[%s3733_s10 + $0x500] sm:$0xff] }
  0xc1   : > { %1627 = vmatprep.subr.mxu0 %v2974_v57  ;;  %2888 = vmatprep.subr.mxu1 %v2974_v57  ;;  %v979_v26 = vld [vmem:[%s3733_s10 + $0x518] sm:$0xff]  ;;  %v822_v27 = vld [vmem:[%s3733_s10 + $0x30] sm:$0xff]  ;;  %v825_v28 = vld [vmem:[%s3733_s10 + $0x48] sm:$0xff] }
  0xc2   : > { %1628 = vmatpush1.msra.mxu0 %v1138_v62  ;;  %2908 = vmatpush1.msra.mxu1 %v1138_v62  ;;  %v978_v29 = vld [vmem:[%s3733_s10 + $0x510] sm:$0xff]  ;;  %v981_v30 = vld [vmem:[%s3733_s10 + $0x528] sm:$0xff]  ;;  %v824_v31 = vld [vmem:[%s3733_s10 + $0x40] sm:$0xff] }
  0xc3   : > { %1629 = vmatprep.subr.mxu0 %v2974_v57  ;;  %2889 = vmatprep.subr.mxu1 %v2974_v57  ;;  %v827_v32 = vld [vmem:[%s3733_s10 + $0x58] sm:$0xff]  ;;  %v980_v33 = vld [vmem:[%s3733_s10 + $0x520] sm:$0xff]  ;;  %v826_v35 = vld [vmem:[%s3733_s10 + $0x50] sm:$0xff] }
  0xc4   : > { %1630 = vmatpush1.msra.mxu0 %v1137_v63  ;;  %2909 = vmatpush1.msra.mxu1 %v1137_v63  ;;  %v983_v34 = vld [vmem:[%s3733_s10 + $0x538] sm:$0xff]  ;;  %v829_v36 = vld [vmem:[%s3733_s10 + $0x68] sm:$0xff]  ;;  %v982_v37 = vld [vmem:[%s3733_s10 + $0x530] sm:$0xff] }
  0xc5   : > { %1631 = vmatprep.subr.mxu0 %v2974_v57  ;;  %2890 = vmatprep.subr.mxu1 %v2974_v57  ;;  %v985_v38 = vld [vmem:[%s3733_s10 + $0x548] sm:$0xff]  ;;  %v828_v39 = vld [vmem:[%s3733_s10 + $0x60] sm:$0xff]  ;;  %v831_v40 = vld [vmem:[%s3733_s10 + $0x78] sm:$0xff] }
  0xc6   : > { %1632 = vmatpush1.msra.mxu0 %v1136_v0  ;;  %2910 = vmatpush1.msra.mxu1 %v1136_v0  ;;  %v984_v41 = vld [vmem:[%s3733_s10 + $0x540] sm:$0xff]  ;;  %v987_v42 = vld [vmem:[%s3733_s10 + $0x558] sm:$0xff]  ;;  %v830_v43 = vld [vmem:[%s3733_s10 + $0x70] sm:$0xff] }
  0xc7   : > { %1633 = vmatprep.subr.mxu0 %v2974_v57  ;;  %2891 = vmatprep.subr.mxu1 %v2974_v57  ;;  %v833_v44 = vld [vmem:[%s3733_s10 + $0x88] sm:$0xff]  ;;  %v986_v45 = vld [vmem:[%s3733_s10 + $0x550] sm:$0xff]  ;;  %v832_v47 = vld [vmem:[%s3733_s10 + $0x80] sm:$0xff] }
  0xc8   : > { %1634 = vmatpush1.msra.mxu0 %v1135_v1  ;;  %2911 = vmatpush1.msra.mxu1 %v1135_v1  ;;  %v989_v46 = vld [vmem:[%s3733_s10 + $0x568] sm:$0xff]  ;;  %v835_v48 = vld [vmem:[%s3733_s10 + $0x98] sm:$0xff]  ;;  %v988_v49 = vld [vmem:[%s3733_s10 + $0x560] sm:$0xff] }
  0xc9   : > { %1635 = vmatprep.subr.mxu0 %v2974_v57  ;;  %2892 = vmatprep.subr.mxu1 %v2974_v57  ;;  %v991_v50 = vld [vmem:[%s3733_s10 + $0x578] sm:$0xff]  ;;  %v834_v51 = vld [vmem:[%s3733_s10 + $0x90] sm:$0xff]  ;;  %v837_v52 = vld [vmem:[%s3733_s10 + $0xa8] sm:$0xff] }
  0xca   : > { %1636 = vmatpush1.msra.mxu0 %v1134_v2  ;;  %2912 = vmatpush1.msra.mxu1 %v1134_v2  ;;  %v990_v53 = vld [vmem:[%s3733_s10 + $0x570] sm:$0xff]  ;;  %v993_v54 = vld [vmem:[%s3733_s10 + $0x588] sm:$0xff]  ;;  %v836_v55 = vld [vmem:[%s3733_s10 + $0xa0] sm:$0xff] }
  0xcb   : > { %1637 = vmatprep.subr.mxu0 %v2974_v57  ;;  %2893 = vmatprep.subr.mxu1 %v2974_v57  ;;  %v839_v56 = vld [vmem:[%s3733_s10 + $0xb8] sm:$0xff]  ;;  %v838_v59 = vld [vmem:[%s3733_s10 + $0xb0] sm:$0xff]  ;;  %v841_v60 = vld [vmem:[%s3733_s10 + $0xc8] sm:$0xff] }
  0xcc   : > { %1638 = vmatpush1.msra.mxu0 %v1133_v3  ;;  %2913 = vmatpush1.msra.mxu1 %v1133_v3  ;;  %v995_v58 = vld [vmem:[%s3733_s10 + $0x598] sm:$0xff]  ;;  %v994_v61 = vld [vmem:[%s3733_s10 + $0x590] sm:$0xff]  ;;  %v997_v62 = vld [vmem:[%s3733_s10 + $0x5a8] sm:$0xff] }
  0xcd   : > { %1639 = vmatprep.subr.mxu0 %v2974_v57  ;;  %2894 = vmatprep.subr.mxu1 %v2974_v57  ;;  %v840_v63 = vld [vmem:[%s3733_s10 + $0xc0] sm:$0xff]  ;;  %v843_v0 = vld [vmem:[%s3733_s10 + $0xd8] sm:$0xff]  ;;  %v842_v3 = vld [vmem:[%s3733_s10 + $0xd0] sm:$0xff] }
  0xce   : > { %1640 = vmatpush1.msra.mxu0 %v1132_v4  ;;  %2914 = vmatpush1.msra.mxu1 %v1132_v4  ;;  %v996_v1 = vld [vmem:[%s3733_s10 + $0x5a0] sm:$0xff]  ;;  %v999_v2 = vld [vmem:[%s3733_s10 + $0x5b8] sm:$0xff]  ;;  %v845_v4 = vld [vmem:[%s3733_s10 + $0xe8] sm:$0xff] }
  0xcf   : > { %1641 = vmatprep.subr.mxu0 %v2974_v57  ;;  %2895 = vmatprep.subr.mxu1 %v2974_v57 }
  0xd0   : > { %1642 = vmatpush1.msra.mxu0 %v1131_v5  ;;  %2915 = vmatpush1.msra.mxu1 %v1131_v5  ;;  %v998_v5 = vld [vmem:[%s3733_s10 + $0x5b0] sm:$0xff] }
  0xd1   : > { %1643 = vmatprep.subr.mxu0 %v2974_v57  ;;  %2896 = vmatprep.subr.mxu1 %v2974_v57 }
  0xd2   : > { %1644 = vmatpush1.msra.mxu0 %v1130_v6  ;;  %2916 = vmatpush1.msra.mxu1 %v1130_v6  ;;  %v1001_v6 = vld [vmem:[%s3733_s10 + $0x5c8] sm:$0xff] }
  0xd3   : > { %1645 = vmatprep.subr.mxu0 %v2974_v57  ;;  %2897 = vmatprep.subr.mxu1 %v2974_v57 }
  0xd4   : > { %1646 = vmatpush1.msra.mxu0 %v1129_v7  ;;  %2917 = vmatpush1.msra.mxu1 %v1129_v7  ;;  %v844_v7 = vld [vmem:[%s3733_s10 + $0xe0] sm:$0xff] }
  0xd5   : > { %1647 = vmatprep.subr.mxu0 %v2974_v57  ;;  %2721 = vmatprep.mubr.msk.f32.mxu0 %vm1148_vm0, %v817_v8  ;;  %v847_v8 = vld [vmem:[%s3733_s10 + $0xf8] sm:$0xff] }
  0xd6   : > { %1648 = vmatpush1.msra.mxu0 %v1128_v9  ;;  %2898 = vmatprep.subr.mxu1 %v2974_v57 }
  0xd7   : > { %1673 = vmatprep.subr.mxu0 %v2974_v57  ;;  %2918 = vmatpush1.msra.mxu1 %v1128_v9  ;;  %v1000_v9 = vld [vmem:[%s3733_s10 + $0x5c0] sm:$0xff] }
  0xd8   : > { %1674 = vmatpush2.msra.mxu0 %v1147_v10  ;;  %2899 = vmatprep.subr.mxu1 %v2974_v57 }
  0xd9   : > { %1675 = vmatprep.subr.mxu0 %v2974_v57  ;;  %2919 = vmatpush2.msra.mxu1 %v1147_v10  ;;  %v1003_v10 = vld [vmem:[%s3733_s10 + $0x5d8] sm:$0xff] }
  0xda   : > { %1676 = vmatpush2.msra.mxu0 %v1146_v11  ;;  %2900 = vmatprep.subr.mxu1 %v2974_v57 }
  0xdb   : > { %1677 = vmatprep.subr.mxu0 %v2974_v57  ;;  %2920 = vmatpush2.msra.mxu1 %v1146_v11  ;;  %v846_v11 = vld [vmem:[%s3733_s10 + $0xf0] sm:$0xff] }
  0xdc   : > { %1678 = vmatpush2.msra.mxu0 %v1145_v12  ;;  %2901 = vmatprep.subr.mxu1 %v2974_v57 }
  0xdd   : > { %1679 = vmatprep.subr.mxu0 %v2974_v57  ;;  %2921 = vmatpush2.msra.mxu1 %v1145_v12  ;;  %v849_v12 = vld [vmem:[%s3733_s10 + $0x108] sm:$0xff] }
  0xde   : > { %1680 = vmatpush2.msra.mxu0 %v1144_v13  ;;  %2902 = vmatprep.subr.mxu1 %v2974_v57  ;;  %v992_v57 = vld [vmem:[%s3733_s10 + $0x580] sm:$0xff] }
  0xdf   : > { %1682 = vmatmul.mubr.f32.vlgmr.msra.gmra.mxu0 %v816_v14  ;;  %2922 = vmatpush2.msra.mxu1 %v1144_v13  ;;  %v1002_v13 = vld [vmem:[%s3733_s10 + $0x5d0] sm:$0xff]  ;;  %v1005_v14 = vld [vmem:[%s3733_s10 + $0x5e8] sm:$0xff] }
  0xe0   : > { %2722 = vmatprep.mubr.msk.f32.mxu0 %vm1148_vm0, %v819_v15  ;;  %2799 = vmatprep.mubr.msk.f32.mxu1 %vm1148_vm0, %v973_v16  ;;  %v848_v15 = vld [vmem:[%s3733_s10 + $0x100] sm:$0xff]  ;;  %v851_v16 = vld [vmem:[%s3733_s10 + $0x118] sm:$0xff] }
  0xe1   : > { %2072 = vmatmul.mubr.f32.vlgmr.msra.gmra.mxu1 %v972_v17  ;;  %v1004_v17 = vld [vmem:[%s3733_s10 + $0x5e0] sm:$0xff] }
  0xe2   : > { %2800 = vmatprep.mubr.msk.f32.mxu1 %vm1148_vm0, %v975_v18  ;;  %v1007_v18 = vld [vmem:[%s3733_s10 + $0x5f8] sm:$0xff] }
  0xe3   : > { %1687 = vmatmul.mubr.f32.gmra.mxu0 %v818_v19  ;;  %v850_v19 = vld [vmem:[%s3733_s10 + $0x110] sm:$0xff] }
  0xe4   : > { %2723 = vmatprep.mubr.msk.f32.mxu0 %vm1148_vm0, %v821_v20  ;;  %v853_v20 = vld [vmem:[%s3733_s10 + $0x128] sm:$0xff] }
  0xe5   : > { %2077 = vmatmul.mubr.f32.gmra.mxu1 %v974_v21  ;;  %v1006_v21 = vld [vmem:[%s3733_s10 + $0x5f0] sm:$0xff] }
  0xe6   : > { %2801 = vmatprep.mubr.msk.f32.mxu1 %vm1148_vm0, %v977_v22  ;;  %v1009_v22 = vld [vmem:[%s3733_s10 + $0x608] sm:$0xff] }
  0xe7   : > { %1692 = vmatmul.mubr.f32.gmra.mxu0 %v820_v23  ;;  %v852_v23 = vld [vmem:[%s3733_s10 + $0x120] sm:$0xff] }
  0xe8   : > { %2724 = vmatprep.mubr.msk.f32.mxu0 %vm1148_vm0, %v823_v24  ;;  %v855_v24 = vld [vmem:[%s3733_s10 + $0x138] sm:$0xff] }
  0xe9   : > { %2082 = vmatmul.mubr.f32.gmra.mxu1 %v976_v25  ;;  %v1008_v25 = vld [vmem:[%s3733_s10 + $0x600] sm:$0xff] }
  0xea   : > { %2802 = vmatprep.mubr.msk.f32.mxu1 %vm1148_vm0, %v979_v26  ;;  %v1011_v26 = vld [vmem:[%s3733_s10 + $0x618] sm:$0xff] }
  0xeb   : > { %1697 = vmatmul.mubr.f32.gmra.mxu0 %v822_v27  ;;  %v854_v27 = vld [vmem:[%s3733_s10 + $0x130] sm:$0xff] }
  0xec   : > { %2725 = vmatprep.mubr.msk.f32.mxu0 %vm1148_vm0, %v825_v28  ;;  %v857_v28 = vld [vmem:[%s3733_s10 + $0x148] sm:$0xff] }
  0xed   : > { %2087 = vmatmul.mubr.f32.gmra.mxu1 %v978_v29  ;;  %v1010_v29 = vld [vmem:[%s3733_s10 + $0x610] sm:$0xff] }
  0xee   : > { %2803 = vmatprep.mubr.msk.f32.mxu1 %vm1148_vm0, %v981_v30  ;;  %v1013_v30 = vld [vmem:[%s3733_s10 + $0x628] sm:$0xff] }
  0xef   : > { %1702 = vmatmul.mubr.f32.gmra.mxu0 %v824_v31  ;;  %v856_v31 = vld [vmem:[%s3733_s10 + $0x140] sm:$0xff] }
  0xf0   : > { %2726 = vmatprep.mubr.msk.f32.mxu0 %vm1148_vm0, %v827_v32  ;;  %v859_v32 = vld [vmem:[%s3733_s10 + $0x158] sm:$0xff] }
  0xf1   : > { %2092 = vmatmul.mubr.f32.gmra.mxu1 %v980_v33  ;;  %v1012_v33 = vld [vmem:[%s3733_s10 + $0x620] sm:$0xff] }
  0xf2   : > { %2804 = vmatprep.mubr.msk.f32.mxu1 %vm1148_vm0, %v983_v34  ;;  %v1015_v34 = vld [vmem:[%s3733_s10 + $0x638] sm:$0xff] }
  0xf3   : > { %1707 = vmatmul.mubr.f32.gmra.mxu0 %v826_v35  ;;  %v858_v35 = vld [vmem:[%s3733_s10 + $0x150] sm:$0xff] }
  0xf4   : > { %2727 = vmatprep.mubr.msk.f32.mxu0 %vm1148_vm0, %v829_v36  ;;  %v861_v36 = vld [vmem:[%s3733_s10 + $0x168] sm:$0xff] }
  0xf5   : > { %2097 = vmatmul.mubr.f32.gmra.mxu1 %v982_v37  ;;  %v1014_v37 = vld [vmem:[%s3733_s10 + $0x630] sm:$0xff] }
  0xf6   : > { %2805 = vmatprep.mubr.msk.f32.mxu1 %vm1148_vm0, %v985_v38  ;;  %v1017_v38 = vld [vmem:[%s3733_s10 + $0x648] sm:$0xff] }
  0xf7   : > { %1712 = vmatmul.mubr.f32.gmra.mxu0 %v828_v39  ;;  %v860_v39 = vld [vmem:[%s3733_s10 + $0x160] sm:$0xff] }
  0xf8   : > { %2728 = vmatprep.mubr.msk.f32.mxu0 %vm1148_vm0, %v831_v40  ;;  %v863_v40 = vld [vmem:[%s3733_s10 + $0x178] sm:$0xff] }
  0xf9   : > { %2102 = vmatmul.mubr.f32.gmra.mxu1 %v984_v41  ;;  %v1016_v41 = vld [vmem:[%s3733_s10 + $0x640] sm:$0xff] }
  0xfa   : > { %2806 = vmatprep.mubr.msk.f32.mxu1 %vm1148_vm0, %v987_v42  ;;  %v1019_v42 = vld [vmem:[%s3733_s10 + $0x658] sm:$0xff] }
  0xfb   : > { %1717 = vmatmul.mubr.f32.gmra.mxu0 %v830_v43  ;;  %v862_v43 = vld [vmem:[%s3733_s10 + $0x170] sm:$0xff] }
  0xfc   : > { %2729 = vmatprep.mubr.msk.f32.mxu0 %vm1148_vm0, %v833_v44  ;;  %v865_v44 = vld [vmem:[%s3733_s10 + $0x188] sm:$0xff] }
  0xfd   : > { %2107 = vmatmul.mubr.f32.gmra.mxu1 %v986_v45  ;;  %v1018_v45 = vld [vmem:[%s3733_s10 + $0x650] sm:$0xff] }
  0xfe   : > { %2807 = vmatprep.mubr.msk.f32.mxu1 %vm1148_vm0, %v989_v46  ;;  %v1021_v46 = vld [vmem:[%s3733_s10 + $0x668] sm:$0xff] }
  0xff   : > { %1722 = vmatmul.mubr.f32.gmra.mxu0 %v832_v47  ;;  %v864_v47 = vld [vmem:[%s3733_s10 + $0x180] sm:$0xff] }
 0x100   : > { %2730 = vmatprep.mubr.msk.f32.mxu0 %vm1148_vm0, %v835_v48  ;;  %v867_v48 = vld [vmem:[%s3733_s10 + $0x198] sm:$0xff] }
 0x101   : > { %2112 = vmatmul.mubr.f32.gmra.mxu1 %v988_v49  ;;  %v1020_v49 = vld [vmem:[%s3733_s10 + $0x660] sm:$0xff] }
 0x102   : > { %2808 = vmatprep.mubr.msk.f32.mxu1 %vm1148_vm0, %v991_v50  ;;  %v1023_v50 = vld [vmem:[%s3733_s10 + $0x678] sm:$0xff] }
 0x103   : > { %1727 = vmatmul.mubr.f32.gmra.mxu0 %v834_v51  ;;  %v866_v51 = vld [vmem:[%s3733_s10 + $0x190] sm:$0xff] }
 0x104   : > { %2731 = vmatprep.mubr.msk.f32.mxu0 %vm1148_vm0, %v837_v52  ;;  %v869_v52 = vld [vmem:[%s3733_s10 + $0x1a8] sm:$0xff] }
 0x105   : > { %2117 = vmatmul.mubr.f32.gmra.mxu1 %v990_v53  ;;  %v1022_v53 = vld [vmem:[%s3733_s10 + $0x670] sm:$0xff] }
 0x106   : > { %2809 = vmatprep.mubr.msk.f32.mxu1 %vm1148_vm0, %v993_v54  ;;  %v1025_v54 = vld [vmem:[%s3733_s10 + $0x688] sm:$0xff] }
 0x107   : > { %1732 = vmatmul.mubr.f32.gmra.mxu0 %v836_v55  ;;  %v868_v55 = vld [vmem:[%s3733_s10 + $0x1a0] sm:$0xff] }
 0x108   : > { %2732 = vmatprep.mubr.msk.f32.mxu0 %vm1148_vm0, %v839_v56  ;;  %v871_v56 = vld [vmem:[%s3733_s10 + $0x1b8] sm:$0xff] }
 0x109   : > { %2122 = vmatmul.mubr.f32.gmra.mxu1 %v992_v57  ;;  %v1024_v57 = vld [vmem:[%s3733_s10 + $0x680] sm:$0xff] }
 0x10a   : > { %2810 = vmatprep.mubr.msk.f32.mxu1 %vm1148_vm0, %v995_v58  ;;  %v1027_v58 = vld [vmem:[%s3733_s10 + $0x698] sm:$0xff] }
 0x10b   : > { %1737 = vmatmul.mubr.f32.gmra.mxu0 %v838_v59  ;;  %v870_v59 = vld [vmem:[%s3733_s10 + $0x1b0] sm:$0xff] }
 0x10c   : > { %2733 = vmatprep.mubr.msk.f32.mxu0 %vm1148_vm0, %v841_v60  ;;  %v873_v60 = vld [vmem:[%s3733_s10 + $0x1c8] sm:$0xff] }
 0x10d   : > { %2127 = vmatmul.mubr.f32.gmra.mxu1 %v994_v61  ;;  %v1026_v61 = vld [vmem:[%s3733_s10 + $0x690] sm:$0xff] }
 0x10e   : > { %2811 = vmatprep.mubr.msk.f32.mxu1 %vm1148_vm0, %v997_v62  ;;  %v1029_v62 = vld [vmem:[%s3733_s10 + $0x6a8] sm:$0xff] }
 0x10f   : > { %1742 = vmatmul.mubr.f32.gmra.mxu0 %v840_v63  ;;  %v872_v63 = vld [vmem:[%s3733_s10 + $0x1c0] sm:$0xff] }
 0x110   : > { %2734 = vmatprep.mubr.msk.f32.mxu0 %vm1148_vm0, %v843_v0  ;;  %v875_v0 = vld [vmem:[%s3733_s10 + $0x1d8] sm:$0xff] }
 0x111   : > { %2132 = vmatmul.mubr.f32.gmra.mxu1 %v996_v1  ;;  %v1028_v1 = vld [vmem:[%s3733_s10 + $0x6a0] sm:$0xff] }
 0x112   : > { %2812 = vmatprep.mubr.msk.f32.mxu1 %vm1148_vm0, %v999_v2  ;;  %v1031_v2 = vld [vmem:[%s3733_s10 + $0x6b8] sm:$0xff] }
 0x113   : > { %1747 = vmatmul.mubr.f32.gmra.mxu0 %v842_v3  ;;  %v874_v3 = vld [vmem:[%s3733_s10 + $0x1d0] sm:$0xff] }
 0x114   : > { %2735 = vmatprep.mubr.msk.f32.mxu0 %vm1148_vm0, %v845_v4  ;;  %v877_v4 = vld [vmem:[%s3733_s10 + $0x1e8] sm:$0xff] }
 0x115   : > { %2137 = vmatmul.mubr.f32.gmra.mxu1 %v998_v5  ;;  %v1030_v5 = vld [vmem:[%s3733_s10 + $0x6b0] sm:$0xff] }
 0x116   : > { %2813 = vmatprep.mubr.msk.f32.mxu1 %vm1148_vm0, %v1001_v6  ;;  %v1033_v6 = vld [vmem:[%s3733_s10 + $0x6c8] sm:$0xff] }
 0x117   : > { %1752 = vmatmul.mubr.f32.gmra.mxu0 %v844_v7  ;;  %v876_v7 = vld [vmem:[%s3733_s10 + $0x1e0] sm:$0xff] }
 0x118   : > { %2736 = vmatprep.mubr.msk.f32.mxu0 %vm1148_vm0, %v847_v8  ;;  %v879_v8 = vld [vmem:[%s3733_s10 + $0x1f8] sm:$0xff] }
 0x119   : > { %2142 = vmatmul.mubr.f32.gmra.mxu1 %v1000_v9  ;;  %v1032_v9 = vld [vmem:[%s3733_s10 + $0x6c0] sm:$0xff] }
 0x11a   : > { %2814 = vmatprep.mubr.msk.f32.mxu1 %vm1148_vm0, %v1003_v10  ;;  %v1035_v10 = vld [vmem:[%s3733_s10 + $0x6d8] sm:$0xff] }
 0x11b   : > { %1757 = vmatmul.mubr.f32.gmra.mxu0 %v846_v11  ;;  %v878_v11 = vld [vmem:[%s3733_s10 + $0x1f0] sm:$0xff] }
 0x11c   : > { %2737 = vmatprep.mubr.msk.f32.mxu0 %vm1148_vm0, %v849_v12  ;;  %v881_v12 = vld [vmem:[%s3733_s10 + $0x208] sm:$0xff] }
 0x11d   : > { %2147 = vmatmul.mubr.f32.gmra.mxu1 %v1002_v13  ;;  %v1034_v13 = vld [vmem:[%s3733_s10 + $0x6d0] sm:$0xff] }
 0x11e   : > { %2815 = vmatprep.mubr.msk.f32.mxu1 %vm1148_vm0, %v1005_v14  ;;  %v1037_v14 = vld [vmem:[%s3733_s10 + $0x6e8] sm:$0xff] }
 0x11f   : > { %1762 = vmatmul.mubr.f32.gmra.mxu0 %v848_v15  ;;  %v880_v15 = vld [vmem:[%s3733_s10 + $0x200] sm:$0xff] }
 0x120   : > { %2738 = vmatprep.mubr.msk.f32.mxu0 %vm1148_vm0, %v851_v16  ;;  %v883_v16 = vld [vmem:[%s3733_s10 + $0x218] sm:$0xff] }
 0x121   : > { %2152 = vmatmul.mubr.f32.gmra.mxu1 %v1004_v17  ;;  %v1036_v17 = vld [vmem:[%s3733_s10 + $0x6e0] sm:$0xff] }
 0x122   : > { %2816 = vmatprep.mubr.msk.f32.mxu1 %vm1148_vm0, %v1007_v18  ;;  %v1039_v18 = vld [vmem:[%s3733_s10 + $0x6f8] sm:$0xff] }
 0x123   : > { %1767 = vmatmul.mubr.f32.gmra.mxu0 %v850_v19  ;;  %v882_v19 = vld [vmem:[%s3733_s10 + $0x210] sm:$0xff] }
 0x124   : > { %2739 = vmatprep.mubr.msk.f32.mxu0 %vm1148_vm0, %v853_v20  ;;  %v885_v20 = vld [vmem:[%s3733_s10 + $0x228] sm:$0xff] }
 0x125   : > { %2157 = vmatmul.mubr.f32.gmra.mxu1 %v1006_v21  ;;  %v1038_v21 = vld [vmem:[%s3733_s10 + $0x6f0] sm:$0xff] }
 0x126   : > { %2817 = vmatprep.mubr.msk.f32.mxu1 %vm1148_vm0, %v1009_v22  ;;  %v1041_v22 = vld [vmem:[%s3733_s10 + $0x708] sm:$0xff] }
 0x127   : > { %1772 = vmatmul.mubr.f32.gmra.mxu0 %v852_v23  ;;  %v884_v23 = vld [vmem:[%s3733_s10 + $0x220] sm:$0xff] }
 0x128   : > { %2740 = vmatprep.mubr.msk.f32.mxu0 %vm1148_vm0, %v855_v24  ;;  %v887_v24 = vld [vmem:[%s3733_s10 + $0x238] sm:$0xff] }
 0x129   : > { %2162 = vmatmul.mubr.f32.gmra.mxu1 %v1008_v25  ;;  %v1040_v25 = vld [vmem:[%s3733_s10 + $0x700] sm:$0xff] }
 0x12a   : > { %2818 = vmatprep.mubr.msk.f32.mxu1 %vm1148_vm0, %v1011_v26  ;;  %v1043_v26 = vld [vmem:[%s3733_s10 + $0x718] sm:$0xff] }
 0x12b   : > { %1777 = vmatmul.mubr.f32.gmra.mxu0 %v854_v27  ;;  %v886_v27 = vld [vmem:[%s3733_s10 + $0x230] sm:$0xff] }
 0x12c   : > { %2741 = vmatprep.mubr.msk.f32.mxu0 %vm1148_vm0, %v857_v28  ;;  %v889_v28 = vld [vmem:[%s3733_s10 + $0x248] sm:$0xff] }
 0x12d   : > { %2167 = vmatmul.mubr.f32.gmra.mxu1 %v1010_v29  ;;  %v1042_v29 = vld [vmem:[%s3733_s10 + $0x710] sm:$0xff] }
 0x12e   : > { %2819 = vmatprep.mubr.msk.f32.mxu1 %vm1148_vm0, %v1013_v30  ;;  %v1045_v30 = vld [vmem:[%s3733_s10 + $0x728] sm:$0xff] }
 0x12f   : > { %1782 = vmatmul.mubr.f32.gmra.mxu0 %v856_v31  ;;  %v888_v31 = vld [vmem:[%s3733_s10 + $0x240] sm:$0xff] }
 0x130   : > { %2742 = vmatprep.mubr.msk.f32.mxu0 %vm1148_vm0, %v859_v32  ;;  %v891_v32 = vld [vmem:[%s3733_s10 + $0x258] sm:$0xff] }
 0x131   : > { %2172 = vmatmul.mubr.f32.gmra.mxu1 %v1012_v33  ;;  %v1044_v33 = vld [vmem:[%s3733_s10 + $0x720] sm:$0xff] }
 0x132   : > { %2820 = vmatprep.mubr.msk.f32.mxu1 %vm1148_vm0, %v1015_v34  ;;  %v1047_v34 = vld [vmem:[%s3733_s10 + $0x738] sm:$0xff] }
 0x133   : > { %1787 = vmatmul.mubr.f32.gmra.mxu0 %v858_v35  ;;  %v890_v35 = vld [vmem:[%s3733_s10 + $0x250] sm:$0xff] }
 0x134   : > { %2743 = vmatprep.mubr.msk.f32.mxu0 %vm1148_vm0, %v861_v36  ;;  %v893_v36 = vld [vmem:[%s3733_s10 + $0x268] sm:$0xff] }
 0x135   : > { %2177 = vmatmul.mubr.f32.gmra.mxu1 %v1014_v37  ;;  %v1046_v37 = vld [vmem:[%s3733_s10 + $0x730] sm:$0xff] }
 0x136   : > { %2821 = vmatprep.mubr.msk.f32.mxu1 %vm1148_vm0, %v1017_v38  ;;  %v1049_v38 = vld [vmem:[%s3733_s10 + $0x748] sm:$0xff] }
 0x137   : > { %1792 = vmatmul.mubr.f32.gmra.mxu0 %v860_v39  ;;  %v892_v39 = vld [vmem:[%s3733_s10 + $0x260] sm:$0xff] }
 0x138   : > { %2744 = vmatprep.mubr.msk.f32.mxu0 %vm1148_vm0, %v863_v40  ;;  %v895_v40 = vld [vmem:[%s3733_s10 + $0x278] sm:$0xff] }
 0x139   : > { %2182 = vmatmul.mubr.f32.gmra.mxu1 %v1016_v41  ;;  %v1048_v41 = vld [vmem:[%s3733_s10 + $0x740] sm:$0xff] }
 0x13a   : > { %2822 = vmatprep.mubr.msk.f32.mxu1 %vm1148_vm0, %v1019_v42  ;;  %v1051_v42 = vld [vmem:[%s3733_s10 + $0x758] sm:$0xff] }
 0x13b   : > { %1797 = vmatmul.mubr.f32.gmra.mxu0 %v862_v43  ;;  %v894_v43 = vld [vmem:[%s3733_s10 + $0x270] sm:$0xff] }
 0x13c   : > { %2745 = vmatprep.mubr.msk.f32.mxu0 %vm1148_vm0, %v865_v44  ;;  %v897_v44 = vld [vmem:[%s3733_s10 + $0x288] sm:$0xff] }
 0x13d   : > { %2187 = vmatmul.mubr.f32.gmra.mxu1 %v1018_v45  ;;  %v1050_v45 = vld [vmem:[%s3733_s10 + $0x750] sm:$0xff] }
 0x13e   : > { %2823 = vmatprep.mubr.msk.f32.mxu1 %vm1148_vm0, %v1021_v46  ;;  %v1053_v46 = vld [vmem:[%s3733_s10 + $0x768] sm:$0xff] }
 0x13f   : > { %1802 = vmatmul.mubr.f32.gmra.mxu0 %v864_v47  ;;  %v896_v47 = vld [vmem:[%s3733_s10 + $0x280] sm:$0xff] }
 0x140   : > { %2746 = vmatprep.mubr.msk.f32.mxu0 %vm1148_vm0, %v867_v48  ;;  %v899_v48 = vld [vmem:[%s3733_s10 + $0x298] sm:$0xff] }
 0x141   : > { %2192 = vmatmul.mubr.f32.gmra.mxu1 %v1020_v49  ;;  %v1052_v49 = vld [vmem:[%s3733_s10 + $0x760] sm:$0xff] }
 0x142   : > { %2824 = vmatprep.mubr.msk.f32.mxu1 %vm1148_vm0, %v1023_v50  ;;  %v1055_v50 = vld [vmem:[%s3733_s10 + $0x778] sm:$0xff] }
 0x143   : > { %1807 = vmatmul.mubr.f32.gmra.mxu0 %v866_v51  ;;  %v898_v51 = vld [vmem:[%s3733_s10 + $0x290] sm:$0xff] }
 0x144   : > { %2747 = vmatprep.mubr.msk.f32.mxu0 %vm1148_vm0, %v869_v52  ;;  %v901_v52 = vld [vmem:[%s3733_s10 + $0x2a8] sm:$0xff] }
 0x145   : > { %2197 = vmatmul.mubr.f32.gmra.mxu1 %v1022_v53  ;;  %v1054_v53 = vld [vmem:[%s3733_s10 + $0x770] sm:$0xff] }
 0x146   : > { %2825 = vmatprep.mubr.msk.f32.mxu1 %vm1148_vm0, %v1025_v54  ;;  %v1057_v54 = vld [vmem:[%s3733_s10 + $0x788] sm:$0xff] }
 0x147   : > { %1812 = vmatmul.mubr.f32.gmra.mxu0 %v868_v55  ;;  %v900_v55 = vld [vmem:[%s3733_s10 + $0x2a0] sm:$0xff] }
 0x148   : > { %2748 = vmatprep.mubr.msk.f32.mxu0 %vm1148_vm0, %v871_v56  ;;  %v903_v56 = vld [vmem:[%s3733_s10 + $0x2b8] sm:$0xff] }
 0x149   : > { %2202 = vmatmul.mubr.f32.gmra.mxu1 %v1024_v57  ;;  %v1056_v57 = vld [vmem:[%s3733_s10 + $0x780] sm:$0xff] }
 0x14a   : > { %2826 = vmatprep.mubr.msk.f32.mxu1 %vm1148_vm0, %v1027_v58  ;;  %v1059_v58 = vld [vmem:[%s3733_s10 + $0x798] sm:$0xff] }
 0x14b   : > { %1817 = vmatmul.mubr.f32.gmra.mxu0 %v870_v59  ;;  %v902_v59 = vld [vmem:[%s3733_s10 + $0x2b0] sm:$0xff] }
 0x14c   : > { %2749 = vmatprep.mubr.msk.f32.mxu0 %vm1148_vm0, %v873_v60  ;;  %v905_v60 = vld [vmem:[%s3733_s10 + $0x2c8] sm:$0xff] }
 0x14d   : > { %2207 = vmatmul.mubr.f32.gmra.mxu1 %v1026_v61  ;;  %v1058_v61 = vld [vmem:[%s3733_s10 + $0x790] sm:$0xff] }
 0x14e   : > { %2827 = vmatprep.mubr.msk.f32.mxu1 %vm1148_vm0, %v1029_v62  ;;  %v1061_v62 = vld [vmem:[%s3733_s10 + $0x7a8] sm:$0xff] }
 0x14f   : > { %1822 = vmatmul.mubr.f32.gmra.mxu0 %v872_v63  ;;  %v904_v63 = vld [vmem:[%s3733_s10 + $0x2c0] sm:$0xff] }
 0x150   : > { %2750 = vmatprep.mubr.msk.f32.mxu0 %vm1148_vm0, %v875_v0  ;;  %v907_v0 = vld [vmem:[%s3733_s10 + $0x2d8] sm:$0xff] }
 0x151   : > { %2212 = vmatmul.mubr.f32.gmra.mxu1 %v1028_v1  ;;  %v1060_v1 = vld [vmem:[%s3733_s10 + $0x7a0] sm:$0xff] }
 0x152   : > { %2828 = vmatprep.mubr.msk.f32.mxu1 %vm1148_vm0, %v1031_v2  ;;  %v1063_v2 = vld [vmem:[%s3733_s10 + $0x7b8] sm:$0xff] }
 0x153   : > { %1827 = vmatmul.mubr.f32.gmra.mxu0 %v874_v3  ;;  %v906_v3 = vld [vmem:[%s3733_s10 + $0x2d0] sm:$0xff] }
 0x154   : > { %2751 = vmatprep.mubr.msk.f32.mxu0 %vm1148_vm0, %v877_v4  ;;  %v909_v4 = vld [vmem:[%s3733_s10 + $0x2e8] sm:$0xff] }
 0x155   : > { %2217 = vmatmul.mubr.f32.gmra.mxu1 %v1030_v5  ;;  %v1062_v5 = vld [vmem:[%s3733_s10 + $0x7b0] sm:$0xff] }
 0x156   : > { %2829 = vmatprep.mubr.msk.f32.mxu1 %vm1148_vm0, %v1033_v6  ;;  %v1065_v6 = vld [vmem:[%s3733_s10 + $0x7c8] sm:$0xff] }
 0x157   : > { %1832 = vmatmul.mubr.f32.gmra.mxu0 %v876_v7  ;;  %v908_v7 = vld [vmem:[%s3733_s10 + $0x2e0] sm:$0xff] }
 0x158   : > { %2752 = vmatprep.mubr.msk.f32.mxu0 %vm1148_vm0, %v879_v8  ;;  %v911_v8 = vld [vmem:[%s3733_s10 + $0x2f8] sm:$0xff] }
 0x159   : > { %2222 = vmatmul.mubr.f32.gmra.mxu1 %v1032_v9  ;;  %v1064_v9 = vld [vmem:[%s3733_s10 + $0x7c0] sm:$0xff] }
 0x15a   : > { %2830 = vmatprep.mubr.msk.f32.mxu1 %vm1148_vm0, %v1035_v10  ;;  %v1067_v10 = vld [vmem:[%s3733_s10 + $0x7d8] sm:$0xff] }
 0x15b   : > { %1837 = vmatmul.mubr.f32.gmra.mxu0 %v878_v11  ;;  %v910_v11 = vld [vmem:[%s3733_s10 + $0x2f0] sm:$0xff] }
 0x15c   : > { %2753 = vmatprep.mubr.msk.f32.mxu0 %vm1148_vm0, %v881_v12  ;;  %v913_v12 = vld [vmem:[%s3733_s10 + $0x308] sm:$0xff] }
 0x15d   : > { %2227 = vmatmul.mubr.f32.gmra.mxu1 %v1034_v13  ;;  %v1066_v13 = vld [vmem:[%s3733_s10 + $0x7d0] sm:$0xff] }
 0x15e   : > { %2831 = vmatprep.mubr.msk.f32.mxu1 %vm1148_vm0, %v1037_v14  ;;  %v1069_v14 = vld [vmem:[%s3733_s10 + $0x7e8] sm:$0xff] }
 0x15f   : > { %1842 = vmatmul.mubr.f32.gmra.mxu0 %v880_v15  ;;  %v912_v15 = vld [vmem:[%s3733_s10 + $0x300] sm:$0xff] }
 0x160   : > { %2754 = vmatprep.mubr.msk.f32.mxu0 %vm1148_vm0, %v883_v16  ;;  %v915_v16 = vld [vmem:[%s3733_s10 + $0x318] sm:$0xff] }
 0x161   : > { %2232 = vmatmul.mubr.f32.gmra.mxu1 %v1036_v17  ;;  %v1068_v17 = vld [vmem:[%s3733_s10 + $0x7e0] sm:$0xff] }
 0x162   : > { %2832 = vmatprep.mubr.msk.f32.mxu1 %vm1148_vm0, %v1039_v18 }
 0x163   : > { %1847 = vmatmul.mubr.f32.gmra.mxu0 %v882_v19  ;;  %v1071_v19 = vld [vmem:[%s3733_s10 + $0x7f8] sm:$0xff] }
 0x164   : > { %2755 = vmatprep.mubr.msk.f32.mxu0 %vm1148_vm0, %v885_v20  ;;  %v914_v20 = vld [vmem:[%s3733_s10 + $0x310] sm:$0xff] }
 0x165   : > { %2237 = vmatmul.mubr.f32.gmra.mxu1 %v1038_v21 }
 0x166   : > { %2833 = vmatprep.mubr.msk.f32.mxu1 %vm1148_vm0, %v1041_v22  ;;  %v917_v22 = vld [vmem:[%s3733_s10 + $0x328] sm:$0xff] }
 0x167   : > { %1852 = vmatmul.mubr.f32.gmra.mxu0 %v884_v23 }
 0x168   : > { %2756 = vmatprep.mubr.msk.f32.mxu0 %vm1148_vm0, %v887_v24 }
 0x169   : > { %2242 = vmatmul.mubr.f32.gmra.mxu1 %v1040_v25  ;;  %v1070_v25 = vld [vmem:[%s3733_s10 + $0x7f0] sm:$0xff] }
 0x16a   : > { %2834 = vmatprep.mubr.msk.f32.mxu1 %vm1148_vm0, %v1043_v26 }
 0x16b   : > { %1857 = vmatmul.mubr.f32.gmra.mxu0 %v886_v27 }
 0x16c   : > { %2757 = vmatprep.mubr.msk.f32.mxu0 %vm1148_vm0, %v889_v28  ;;  %v1073_v28 = vld [vmem:[%s3733_s10 + $0x808] sm:$0xff] }
 0x16d   : > { %2247 = vmatmul.mubr.f32.gmra.mxu1 %v1042_v29  ;;  %v916_v29 = vld [vmem:[%s3733_s10 + $0x320] sm:$0xff] }
 0x16e   : > { %2835 = vmatprep.mubr.msk.f32.mxu1 %vm1148_vm0, %v1045_v30 }
 0x16f   : > { %1862 = vmatmul.mubr.f32.gmra.mxu0 %v888_v31  ;;  %v919_v31 = vld [vmem:[%s3733_s10 + $0x338] sm:$0xff] }
 0x170   : > { %2758 = vmatprep.mubr.msk.f32.mxu0 %vm1148_vm0, %v891_v32 }
 0x171   : > { %2252 = vmatmul.mubr.f32.gmra.mxu1 %v1044_v33 }
 0x172   : > { %2836 = vmatprep.mubr.msk.f32.mxu1 %vm1148_vm0, %v1047_v34  ;;  %v1072_v34 = vld [vmem:[%s3733_s10 + $0x800] sm:$0xff] }
 0x173   : > { %1867 = vmatmul.mubr.f32.gmra.mxu0 %v890_v35 }
 0x174   : > { %2759 = vmatprep.mubr.msk.f32.mxu0 %vm1148_vm0, %v893_v36 }
 0x175   : > { %2257 = vmatmul.mubr.f32.gmra.mxu1 %v1046_v37  ;;  %v1075_v37 = vld [vmem:[%s3733_s10 + $0x818] sm:$0xff] }
 0x176   : > { %2837 = vmatprep.mubr.msk.f32.mxu1 %vm1148_vm0, %v1049_v38  ;;  %v918_v38 = vld [vmem:[%s3733_s10 + $0x330] sm:$0xff] }
 0x177   : > { %1872 = vmatmul.mubr.f32.gmra.mxu0 %v892_v39 }
 0x178   : > { %2760 = vmatprep.mubr.msk.f32.mxu0 %vm1148_vm0, %v895_v40  ;;  %v921_v40 = vld [vmem:[%s3733_s10 + $0x348] sm:$0xff] }
 0x179   : > { %2262 = vmatmul.mubr.f32.gmra.mxu1 %v1048_v41 }
 0x17a   : > { %2838 = vmatprep.mubr.msk.f32.mxu1 %vm1148_vm0, %v1051_v42 }
 0x17b   : > { %1877 = vmatmul.mubr.f32.gmra.mxu0 %v894_v43  ;;  %v1074_v43 = vld [vmem:[%s3733_s10 + $0x810] sm:$0xff] }
 0x17c   : > { %2761 = vmatprep.mubr.msk.f32.mxu0 %vm1148_vm0, %v897_v44 }
 0x17d   : > { %2267 = vmatmul.mubr.f32.gmra.mxu1 %v1050_v45 }
 0x17e   : > { %2839 = vmatprep.mubr.msk.f32.mxu1 %vm1148_vm0, %v1053_v46  ;;  %v1077_v46 = vld [vmem:[%s3733_s10 + $0x828] sm:$0xff] }
 0x17f   : > { %1882 = vmatmul.mubr.f32.gmra.mxu0 %v896_v47  ;;  %v920_v47 = vld [vmem:[%s3733_s10 + $0x340] sm:$0xff] }
 0x180   : > { %2762 = vmatprep.mubr.msk.f32.mxu0 %vm1148_vm0, %v899_v48 }
 0x181   : > { %2272 = vmatmul.mubr.f32.gmra.mxu1 %v1052_v49  ;;  %v923_v49 = vld [vmem:[%s3733_s10 + $0x358] sm:$0xff] }
 0x182   : > { %2840 = vmatprep.mubr.msk.f32.mxu1 %vm1148_vm0, %v1055_v50 }
 0x183   : > { %1887 = vmatmul.mubr.f32.gmra.mxu0 %v898_v51 }
 0x184   : > { %2763 = vmatprep.mubr.msk.f32.mxu0 %vm1148_vm0, %v901_v52  ;;  %v1076_v52 = vld [vmem:[%s3733_s10 + $0x820] sm:$0xff] }
 0x185   : > { %2277 = vmatmul.mubr.f32.gmra.mxu1 %v1054_v53 }
 0x186   : > { %2841 = vmatprep.mubr.msk.f32.mxu1 %vm1148_vm0, %v1057_v54 }
 0x187   : > { %1892 = vmatmul.mubr.f32.gmra.mxu0 %v900_v55  ;;  %v1079_v55 = vld [vmem:[%s3733_s10 + $0x838] sm:$0xff] }
 0x188   : > { %2764 = vmatprep.mubr.msk.f32.mxu0 %vm1148_vm0, %v903_v56  ;;  %v922_v56 = vld [vmem:[%s3733_s10 + $0x350] sm:$0xff] }
 0x189   : > { %2282 = vmatmul.mubr.f32.gmra.mxu1 %v1056_v57 }
 0x18a   : > { %2842 = vmatprep.mubr.msk.f32.mxu1 %vm1148_vm0, %v1059_v58  ;;  %v925_v58 = vld [vmem:[%s3733_s10 + $0x368] sm:$0xff] }
 0x18b   : > { %1897 = vmatmul.mubr.f32.gmra.mxu0 %v902_v59 }
 0x18c   : > { %2765 = vmatprep.mubr.msk.f32.mxu0 %vm1148_vm0, %v905_v60 }
 0x18d   : > { %2287 = vmatmul.mubr.f32.gmra.mxu1 %v1058_v61  ;;  %v1078_v61 = vld [vmem:[%s3733_s10 + $0x830] sm:$0xff] }
 0x18e   : > { %2843 = vmatprep.mubr.msk.f32.mxu1 %vm1148_vm0, %v1061_v62 }
 0x18f   : > { %1902 = vmatmul.mubr.f32.gmra.mxu0 %v904_v63 }
 0x190   : > { %2766 = vmatprep.mubr.msk.f32.mxu0 %vm1148_vm0, %v907_v0  ;;  %v1081_v0 = vld [vmem:[%s3733_s10 + $0x848] sm:$0xff] }
 0x191   : > { %2292 = vmatmul.mubr.f32.gmra.mxu1 %v1060_v1  ;;  %v924_v1 = vld [vmem:[%s3733_s10 + $0x360] sm:$0xff] }
 0x192   : > { %2844 = vmatprep.mubr.msk.f32.mxu1 %vm1148_vm0, %v1063_v2 }
 0x193   : > { %1907 = vmatmul.mubr.f32.gmra.mxu0 %v906_v3  ;;  %v927_v3 = vld [vmem:[%s3733_s10 + $0x378] sm:$0xff] }
 0x194   : > { %2767 = vmatprep.mubr.msk.f32.mxu0 %vm1148_vm0, %v909_v4 }
 0x195   : > { %2297 = vmatmul.mubr.f32.gmra.mxu1 %v1062_v5 }
 0x196   : > { %2845 = vmatprep.mubr.msk.f32.mxu1 %vm1148_vm0, %v1065_v6  ;;  %v1080_v6 = vld [vmem:[%s3733_s10 + $0x840] sm:$0xff] }
 0x197   : > { %1912 = vmatmul.mubr.f32.gmra.mxu0 %v908_v7 }
 0x198   : > { %2768 = vmatprep.mubr.msk.f32.mxu0 %vm1148_vm0, %v911_v8 }
 0x199   : > { %2302 = vmatmul.mubr.f32.gmra.mxu1 %v1064_v9  ;;  %v1083_v9 = vld [vmem:[%s3733_s10 + $0x858] sm:$0xff] }
 0x19a   : > { %2846 = vmatprep.mubr.msk.f32.mxu1 %vm1148_vm0, %v1067_v10  ;;  %v926_v10 = vld [vmem:[%s3733_s10 + $0x370] sm:$0xff] }
 0x19b   : > { %1917 = vmatmul.mubr.f32.gmra.mxu0 %v910_v11 }
 0x19c   : > { %2769 = vmatprep.mubr.msk.f32.mxu0 %vm1148_vm0, %v913_v12  ;;  %v929_v12 = vld [vmem:[%s3733_s10 + $0x388] sm:$0xff] }
 0x19d   : > { %2307 = vmatmul.mubr.f32.gmra.mxu1 %v1066_v13 }
 0x19e   : > { %2847 = vmatprep.mubr.msk.f32.mxu1 %vm1148_vm0, %v1069_v14 }
 0x19f   : > { %v4057_v18 = vpop.f32.mrf.mxu0  ;;  %1922 = vmatmul.mubr.f32.gmra.mxu0 %v912_v15  ;;  %v1082_v15 = vld [vmem:[%s3733_s10 + $0x850] sm:$0xff] }
 0x1a0   : > { %2770 = vmatprep.mubr.msk.f32.mxu0 %vm1148_vm0, %v915_v16 }
 0x1a1   : > { %v1685_v21 = vpop.f32.mrf.mxu0  ;;  %v4063_v23 = vpop.f32.mrf.mxu1  ;;  %2312 = vmatmul.mubr.f32.gmra.mxu1 %v1068_v17 }
 0x1a2   : > { %v2462_v24 = vmax.f32 %v4057_v18, %v4063_v23  ;;  %2848 = vmatprep.mubr.msk.f32.mxu1 %vm1148_vm0, %v1071_v19  ;;  %v1085_v19 = vld [vmem:[%s3733_s10 + $0x868] sm:$0xff] }
 0x1a3   : > { %v4069_v26 = vpop.f32.mrf.mxu0  ;;  %1927 = vmatmul.mubr.f32.gmra.mxu0 %v914_v20  ;;  %v2075_v27 = vpop.f32.mrf.mxu1  ;;  %v928_v20 = vld [vmem:[%s3733_s10 + $0x380] sm:$0xff] }
 0x1a4   : > { %2771 = vmatprep.mubr.msk.f32.mxu0 %vm1148_vm0, %v917_v22  ;;  %v931_v22 = vld [vmem:[%s3733_s10 + $0x398] sm:$0xff] }
 0x1a5   : > { %v1690_v30 = vpop.f32.mrf.mxu0  ;;  %v4075_v32 = vpop.f32.mrf.mxu1  ;;  %2317 = vmatmul.mubr.f32.gmra.mxu1 %v1070_v25 }
 0x1a6   : > { %v2473_v33 = vmax.f32 %v4069_v26, %v4075_v32  ;;  %2849 = vmatprep.mubr.msk.f32.mxu1 %vm1148_vm0, %v1073_v28  ;;  %v1084_v28 = vld [vmem:[%s3733_s10 + $0x860] sm:$0xff] }
 0x1a7   : > { %v4081_v35 = vpop.f32.mrf.mxu0  ;;  %1932 = vmatmul.mubr.f32.gmra.mxu0 %v916_v29  ;;  %v2080_v36 = vpop.f32.mrf.mxu1 }
 0x1a8   : > { %2772 = vmatprep.mubr.msk.f32.mxu0 %vm1148_vm0, %v919_v31  ;;  %v1087_v31 = vld [vmem:[%s3733_s10 + $0x878] sm:$0xff] }
 0x1a9   : > { %v1695_v39 = vpop.f32.mrf.mxu0  ;;  %v4087_v41 = vpop.f32.mrf.mxu1  ;;  %2322 = vmatmul.mubr.f32.gmra.mxu1 %v1072_v34  ;;  %v930_v34 = vld [vmem:[%s3733_s10 + $0x390] sm:$0xff] }
 0x1aa   : > { %v2484_v42 = vmax.f32 %v4081_v35, %v4087_v41  ;;  %2850 = vmatprep.mubr.msk.f32.mxu1 %vm1148_vm0, %v1075_v37  ;;  %v933_v37 = vld [vmem:[%s3733_s10 + $0x3a8] sm:$0xff] }
 0x1ab   : > { %v4093_v44 = vpop.f32.mrf.mxu0  ;;  %1937 = vmatmul.mubr.f32.gmra.mxu0 %v918_v38  ;;  %v2085_v45 = vpop.f32.mrf.mxu1 }
 0x1ac   : > { %2773 = vmatprep.mubr.msk.f32.mxu0 %vm1148_vm0, %v921_v40  ;;  %v1086_v40 = vld [vmem:[%s3733_s10 + $0x870] sm:$0xff] }
 0x1ad   : > { %v1700_v48 = vpop.f32.mrf.mxu0  ;;  %v4099_v50 = vpop.f32.mrf.mxu1  ;;  %2327 = vmatmul.mubr.f32.gmra.mxu1 %v1074_v43 }
 0x1ae   : > { %v2495_v51 = vmax.f32 %v4093_v44, %v4099_v50  ;;  %2851 = vmatprep.mubr.msk.f32.mxu1 %vm1148_vm0, %v1077_v46  ;;  %v1089_v46 = vld [vmem:[%s3733_s10 + $0x888] sm:$0xff] }
 0x1af   : > { %v4105_v53 = vpop.f32.mrf.mxu0  ;;  %1942 = vmatmul.mubr.f32.gmra.mxu0 %v920_v47  ;;  %v2090_v54 = vpop.f32.mrf.mxu1  ;;  %v932_v47 = vld [vmem:[%s3733_s10 + $0x3a0] sm:$0xff] }
 0x1b0   : > { %2774 = vmatprep.mubr.msk.f32.mxu0 %vm1148_vm0, %v923_v49  ;;  %v935_v49 = vld [vmem:[%s3733_s10 + $0x3b8] sm:$0xff] }
 0x1b1   : > { %v1705_v57 = vpop.f32.mrf.mxu0  ;;  %v4111_v59 = vpop.f32.mrf.mxu1  ;;  %2332 = vmatmul.mubr.f32.gmra.mxu1 %v1076_v52 }
 0x1b2   : > { %v2506_v60 = vmax.f32 %v4105_v53, %v4111_v59  ;;  %2852 = vmatprep.mubr.msk.f32.mxu1 %vm1148_vm0, %v1079_v55  ;;  %v1088_v55 = vld [vmem:[%s3733_s10 + $0x880] sm:$0xff] }
 0x1b3   : > { %v4117_v62 = vpop.f32.mrf.mxu0  ;;  %1947 = vmatmul.mubr.f32.gmra.mxu0 %v922_v56  ;;  %v2095_v63 = vpop.f32.mrf.mxu1 }
 0x1b4   : > { %2775 = vmatprep.mubr.msk.f32.mxu0 %vm1148_vm0, %v925_v58  ;;  %v1091_v58 = vld [vmem:[%s3733_s10 + $0x898] sm:$0xff] }
 0x1b5   : > { %v1710_v2 = vpop.f32.mrf.mxu0  ;;  %v4123_v4 = vpop.f32.mrf.mxu1  ;;  %2337 = vmatmul.mubr.f32.gmra.mxu1 %v1078_v61  ;;  %v934_v61 = vld [vmem:[%s3733_s10 + $0x3b0] sm:$0xff] }
 0x1b6   : > { %v2517_v5 = vmax.f32 %v4117_v62, %v4123_v4  ;;  %2853 = vmatprep.mubr.msk.f32.mxu1 %vm1148_vm0, %v1081_v0  ;;  %v937_v0 = vld [vmem:[%s3733_s10 + $0x3c8] sm:$0xff] }
 0x1b7   : > { %v4129_v7 = vpop.f32.mrf.mxu0  ;;  %1952 = vmatmul.mubr.f32.gmra.mxu0 %v924_v1  ;;  %v2100_v8 = vpop.f32.mrf.mxu1 }
 0x1b8   : > { %2776 = vmatprep.mubr.msk.f32.mxu0 %vm1148_vm0, %v927_v3  ;;  %v1090_v3 = vld [vmem:[%s3733_s10 + $0x890] sm:$0xff] }
 0x1b9   : > { %v1715_v11 = vpop.f32.mrf.mxu0  ;;  %v4135_v13 = vpop.f32.mrf.mxu1  ;;  %2342 = vmatmul.mubr.f32.gmra.mxu1 %v1080_v6 }
 0x1ba   : > { %v2528_v14 = vmax.f32 %v4129_v7, %v4135_v13  ;;  %2854 = vmatprep.mubr.msk.f32.mxu1 %vm1148_vm0, %v1083_v9  ;;  %v1093_v9 = vld [vmem:[%s3733_s10 + $0x8a8] sm:$0xff] }
 0x1bb   : > { %v4141_v16 = vpop.f32.mrf.mxu0  ;;  %1957 = vmatmul.mubr.f32.gmra.mxu0 %v926_v10  ;;  %v2105_v17 = vpop.f32.mrf.mxu1  ;;  %v936_v10 = vld [vmem:[%s3733_s10 + $0x3c0] sm:$0xff] }
 0x1bc   : > { %2777 = vmatprep.mubr.msk.f32.mxu0 %vm1148_vm0, %v929_v12  ;;  %v939_v12 = vld [vmem:[%s3733_s10 + $0x3d8] sm:$0xff] }
 0x1bd   : > { %v1720_v21 = vpop.f32.mrf.mxu0  ;;  %v4147_v25 = vpop.f32.mrf.mxu1  ;;  %2347 = vmatmul.mubr.f32.gmra.mxu1 %v1082_v15 }
 0x1be   : > { %v2539_v27 = vmax.f32 %v4141_v16, %v4147_v25  ;;  %2855 = vmatprep.mubr.msk.f32.mxu1 %vm1148_vm0, %v1085_v19  ;;  %v1092_v19 = vld [vmem:[%s3733_s10 + $0x8a0] sm:$0xff] }
 0x1bf   : > { %v4153_v29 = vpop.f32.mrf.mxu0  ;;  %1962 = vmatmul.mubr.f32.gmra.mxu0 %v928_v20  ;;  %v2110_v30 = vpop.f32.mrf.mxu1 }
 0x1c0   : > { %2778 = vmatprep.mubr.msk.f32.mxu0 %vm1148_vm0, %v931_v22  ;;  %v1095_v22 = vld [vmem:[%s3733_s10 + $0x8b8] sm:$0xff] }
 0x1c1   : > { %v1725_v36 = vpop.f32.mrf.mxu0  ;;  %v4159_v38 = vpop.f32.mrf.mxu1  ;;  %2352 = vmatmul.mubr.f32.gmra.mxu1 %v1084_v28  ;;  %v938_v28 = vld [vmem:[%s3733_s10 + $0x3d0] sm:$0xff] }
 0x1c2   : > { %v2550_v39 = vmax.f32 %v4153_v29, %v4159_v38  ;;  %2856 = vmatprep.mubr.msk.f32.mxu1 %vm1148_vm0, %v1087_v31  ;;  %v941_v31 = vld [vmem:[%s3733_s10 + $0x3e8] sm:$0xff] }
 0x1c3   : > { %v4165_v43 = vpop.f32.mrf.mxu0  ;;  %1967 = vmatmul.mubr.f32.gmra.mxu0 %v930_v34  ;;  %v2115_v45 = vpop.f32.mrf.mxu1 }
 0x1c4   : > { %2779 = vmatprep.mubr.msk.f32.mxu0 %vm1148_vm0, %v933_v37  ;;  %v1094_v37 = vld [vmem:[%s3733_s10 + $0x8b0] sm:$0xff] }
 0x1c5   : > { %v1730_v48 = vpop.f32.mrf.mxu0  ;;  %v4171_v52 = vpop.f32.mrf.mxu1  ;;  %2357 = vmatmul.mubr.f32.gmra.mxu1 %v1086_v40 }
 0x1c6   : > { %v2561_v54 = vmax.f32 %v4165_v43, %v4171_v52  ;;  %2857 = vmatprep.mubr.msk.f32.mxu1 %vm1148_vm0, %v1089_v46  ;;  %v1097_v46 = vld [vmem:[%s3733_s10 + $0x8c8] sm:$0xff]  ;;  %v940_v48 = vld [vmem:[%s3733_s10 + $0x3e0] sm:$0xff] }
 0x1c7   : > { %v4177_v56 = vpop.f32.mrf.mxu0  ;;  %1972 = vmatmul.mubr.f32.gmra.mxu0 %v932_v47  ;;  %v2120_v57 = vpop.f32.mrf.mxu1 }
 0x1c8   : > { %2780 = vmatprep.mubr.msk.f32.mxu0 %vm1148_vm0, %v935_v49 }
 0x1c9   : > { %v1735_v63 = vpop.f32.mrf.mxu0  ;;  %v4183_v1 = vpop.f32.mrf.mxu1  ;;  %2362 = vmatmul.mubr.f32.gmra.mxu1 %v1088_v55  ;;  %v943_v55 = vld [vmem:[%s3733_s10 + $0x3f8] sm:$0xff] }
 0x1ca   : > { %v2572_v2 = vmax.f32 %v4177_v56, %v4183_v1  ;;  %2858 = vmatprep.mubr.msk.f32.mxu1 %vm1148_vm0, %v1091_v58 }
 0x1cb   : > { %v4189_v6 = vpop.f32.mrf.mxu0  ;;  %1977 = vmatmul.mubr.f32.gmra.mxu0 %v934_v61  ;;  %v2125_v8 = vpop.f32.mrf.mxu1  ;;  %v1096_v61 = vld [vmem:[%s3733_s10 + $0x8c0] sm:$0xff] }
 0x1cc   : > { %2781 = vmatprep.mubr.msk.f32.mxu0 %vm1148_vm0, %v937_v0  ;;  %v942_v0 = vld [vmem:[%s3733_s10 + $0x3f0] sm:$0xff]  ;;  %v945_v8 = vld [vmem:[%s3733_s10 + $0x408] sm:$0xff] }
 0x1cd   : > { %v1740_v11 = vpop.f32.mrf.mxu0  ;;  %v4195_v15 = vpop.f32.mrf.mxu1  ;;  %2367 = vmatmul.mubr.f32.gmra.mxu1 %v1090_v3 }
 0x1ce   : > { %v2583_v17 = vmax.f32 %v4189_v6, %v4195_v15  ;;  %2859 = vmatprep.mubr.msk.f32.mxu1 %vm1148_vm0, %v1093_v9  ;;  %v1098_v11 = vld [vmem:[%s3733_s10 + $0x8d0] sm:$0xff] }
 0x1cf   : > { %v4201_v20 = vpop.f32.mrf.mxu0  ;;  %1982 = vmatmul.mubr.f32.gmra.mxu0 %v936_v10  ;;  %v2130_v21 = vpop.f32.mrf.mxu1 }
 0x1d0   : > { %2782 = vmatprep.mubr.msk.f32.mxu0 %vm1148_vm0, %v939_v12 }
 0x1d1   : > { %v1745_v30 = vpop.f32.mrf.mxu0  ;;  %v4207_v34 = vpop.f32.mrf.mxu1  ;;  %2372 = vmatmul.mubr.f32.gmra.mxu1 %v1092_v19  ;;  %v944_v19 = vld [vmem:[%s3733_s10 + $0x400] sm:$0xff] }
 0x1d2   : > { %v2594_v36 = vmax.f32 %v4201_v20, %v4207_v34  ;;  %2860 = vmatprep.mubr.msk.f32.mxu1 %vm1148_vm0, %v1095_v22  ;;  %v947_v22 = vld [vmem:[%s3733_s10 + $0x418] sm:$0xff] }
 0x1d3   : > { %v1748_v40 = vpop.f32.mrf.mxu0  ;;  %1987 = vmatmul.mubr.f32.gmra.mxu0 %v938_v28  ;;  %v2135_v45 = vpop.f32.mrf.mxu1 }
 0x1d4   : > { %v4217_v47 = vmax.f32 %v2462_v24, %v1748_v40  ;;  %2783 = vmatprep.mubr.msk.f32.mxu0 %vm1148_vm0, %v941_v31  ;;  %v1099_v24 = vld [vmem:[%s3733_s10 + $0x8d8] sm:$0xff]  ;;  %v1100_v31 = vld [vmem:[%s3733_s10 + $0x8e0] sm:$0xff]  ;;  %v946_v40 = vld [vmem:[%s3733_s10 + $0x410] sm:$0xff] }
 0x1d5   : > { %v1750_v49 = vpop.f32.mrf.mxu0  ;;  %v4222_v57 = vpop.f32.mrf.mxu1  ;;  %2377 = vmatmul.mubr.f32.gmra.mxu1 %v1094_v37 }
 0x1d6   : > { %v2464_v58 = vmax.f32 %v4217_v47, %v4222_v57  ;;  %2861 = vmatprep.mubr.msk.f32.mxu1 %vm1148_vm0, %v1097_v46  ;;  %v949_v46 = vld [vmem:[%s3733_s10 + $0x428] sm:$0xff] }
 0x1d7   : > { %v1753_v18 = vpop.f32.mrf.mxu0  ;;  %1992 = vmatmul.mubr.f32.gmra.mxu0 %v940_v48  ;;  %v2140_v23 = vpop.f32.mrf.mxu1 }
 0x1d8   : > { %v4232_v63 = vmax.f32 %v2473_v33, %v1753_v18  ;;  %2784 = vmatprep.mubr.msk.f32.mxu0 %vm1148_vm0, %v943_v55  ;;  %v1101_v33 = vld [vmem:[%s3733_s10 + $0x8e8] sm:$0xff]  ;;  %v1102_v55 = vld [vmem:[%s3733_s10 + $0x8f0] sm:$0xff]  ;;  %v948_v18 = vld [vmem:[%s3733_s10 + $0x420] sm:$0xff] }
 0x1d9   : > { %v1755_v3 = vpop.f32.mrf.mxu0  ;;  %v4237_v9 = vpop.f32.mrf.mxu1  ;;  %2382 = vmatmul.mubr.f32.gmra.mxu1 %v1096_v61 }
 0x1da   : > { %v2475_v10 = vmax.f32 %v4232_v63, %v4237_v9  ;;  %2862 = vmatprep.mubr.msk.f32.mxu1 %vm1148_vm0, %v1099_v24  ;;  %v951_v24 = vld [vmem:[%s3733_s10 + $0x438] sm:$0xff] }
 0x1db   : > { %v1758_v26 = vpop.f32.mrf.mxu0  ;;  %1997 = vmatmul.mubr.f32.gmra.mxu0 %v942_v0  ;;  %v2145_v32 = vpop.f32.mrf.mxu1  ;;  %v1127_v9 = vld [vmem:[%s3733_s10 + $0x9b8] sm:$0xff] }
 0x1dc   : > { %v4247_v12 = vmax.f32 %v2484_v42, %v1758_v26  ;;  %2785 = vmatprep.mubr.msk.f32.mxu0 %vm1148_vm0, %v945_v8  ;;  %v1103_v42 = vld [vmem:[%s3733_s10 + $0x8f8] sm:$0xff]  ;;  %v1104_v8 = vld [vmem:[%s3733_s10 + $0x900] sm:$0xff]  ;;  %v950_v26 = vld [vmem:[%s3733_s10 + $0x430] sm:$0xff] }
 0x1dd   : > { %v1760_v21 = vpop.f32.mrf.mxu0  ;;  %v4252_v28 = vpop.f32.mrf.mxu1  ;;  %2387 = vmatmul.mubr.f32.gmra.mxu1 %v1098_v11 }
 0x1de   : > { %v2486_v30 = vmax.f32 %v4247_v12, %v4252_v28  ;;  %2863 = vmatprep.mubr.msk.f32.mxu1 %vm1148_vm0, %v1101_v33  ;;  %v953_v33 = vld [vmem:[%s3733_s10 + $0x448] sm:$0xff] }
 0x1df   : > { %v1763_v35 = vpop.f32.mrf.mxu0  ;;  %2002 = vmatmul.mubr.f32.gmra.mxu0 %v944_v19  ;;  %v2150_v41 = vpop.f32.mrf.mxu1 }
 0x1e0   : > { %v4262_v37 = vmax.f32 %v2495_v51, %v1763_v35  ;;  %2786 = vmatprep.mubr.msk.f32.mxu0 %vm1148_vm0, %v947_v22  ;;  %v1105_v51 = vld [vmem:[%s3733_s10 + $0x908] sm:$0xff]  ;;  %v1106_v22 = vld [vmem:[%s3733_s10 + $0x910] sm:$0xff]  ;;  %v952_v35 = vld [vmem:[%s3733_s10 + $0x440] sm:$0xff] }
 0x1e1   : > { %v1765_v45 = vpop.f32.mrf.mxu0  ;;  %v4267_v48 = vpop.f32.mrf.mxu1  ;;  %2392 = vmatmul.mubr.f32.gmra.mxu1 %v1100_v31 }
 0x1e2   : > { %v2497_v49 = vmax.f32 %v4262_v37, %v4267_v48  ;;  %2864 = vmatprep.mubr.msk.f32.mxu1 %vm1148_vm0, %v1103_v42  ;;  %v955_v42 = vld [vmem:[%s3733_s10 + $0x458] sm:$0xff] }
 0x1e3   : > { %v1768_v44 = vpop.f32.mrf.mxu0  ;;  %2007 = vmatmul.mubr.f32.gmra.mxu0 %v946_v40  ;;  %v2155_v50 = vpop.f32.mrf.mxu1 }
 0x1e4   : > { %v4277_v61 = vmax.f32 %v2506_v60, %v1768_v44  ;;  %2787 = vmatprep.mubr.msk.f32.mxu0 %vm1148_vm0, %v949_v46  ;;  %v1107_v60 = vld [vmem:[%s3733_s10 + $0x918] sm:$0xff]  ;;  %v1108_v46 = vld [vmem:[%s3733_s10 + $0x920] sm:$0xff]  ;;  %v954_v44 = vld [vmem:[%s3733_s10 + $0x450] sm:$0xff] }
 0x1e5   : > { %v1770_v23 = vpop.f32.mrf.mxu0  ;;  %v4282_v0 = vpop.f32.mrf.mxu1  ;;  %2397 = vmatmul.mubr.f32.gmra.mxu1 %v1102_v55 }
 0x1e6   : > { %v2508_v3 = vmax.f32 %v4277_v61, %v4282_v0  ;;  %2865 = vmatprep.mubr.msk.f32.mxu1 %vm1148_vm0, %v1105_v51  ;;  %v957_v51 = vld [vmem:[%s3733_s10 + $0x468] sm:$0xff] }
 0x1e7   : > { %v1773_v53 = vpop.f32.mrf.mxu0  ;;  %2012 = vmatmul.mubr.f32.gmra.mxu0 %v948_v18  ;;  %v2160_v59 = vpop.f32.mrf.mxu1 }
 0x1e8   : > { %v4292_v11 = vmax.f32 %v2517_v5, %v1773_v53  ;;  %2788 = vmatprep.mubr.msk.f32.mxu0 %vm1148_vm0, %v951_v24  ;;  %v1109_v5 = vld [vmem:[%s3733_s10 + $0x928] sm:$0xff]  ;;  %v1110_v24 = vld [vmem:[%s3733_s10 + $0x930] sm:$0xff]  ;;  %v956_v53 = vld [vmem:[%s3733_s10 + $0x460] sm:$0xff] }
 0x1e9   : > { %v1775_v32 = vpop.f32.mrf.mxu0  ;;  %v4297_v19 = vpop.f32.mrf.mxu1  ;;  %2402 = vmatmul.mubr.f32.gmra.mxu1 %v1104_v8 }
 0x1ea   : > { %v2519_v21 = vmax.f32 %v4292_v11, %v4297_v19  ;;  %2866 = vmatprep.mubr.msk.f32.mxu1 %vm1148_vm0, %v1107_v60  ;;  %v959_v60 = vld [vmem:[%s3733_s10 + $0x478] sm:$0xff] }
 0x1eb   : > { %v1778_v62 = vpop.f32.mrf.mxu0  ;;  %2017 = vmatmul.mubr.f32.gmra.mxu0 %v950_v26  ;;  %v2165_v4 = vpop.f32.mrf.mxu1 }
 0x1ec   : > { %v4307_v31 = vmax.f32 %v2528_v14, %v1778_v62  ;;  %2789 = vmatprep.mubr.msk.f32.mxu0 %vm1148_vm0, %v953_v33  ;;  %v1111_v14 = vld [vmem:[%s3733_s10 + $0x938] sm:$0xff]  ;;  %v1112_v33 = vld [vmem:[%s3733_s10 + $0x940] sm:$0xff]  ;;  %v958_v62 = vld [vmem:[%s3733_s10 + $0x470] sm:$0xff] }
 0x1ed   : > { %v1780_v41 = vpop.f32.mrf.mxu0  ;;  %v4312_v40 = vpop.f32.mrf.mxu1  ;;  %2407 = vmatmul.mubr.f32.gmra.mxu1 %v1106_v22 }
 0x1ee   : > { %v2530_v45 = vmax.f32 %v4307_v31, %v4312_v40  ;;  %2867 = vmatprep.mubr.msk.f32.mxu1 %vm1148_vm0, %v1109_v5  ;;  %v961_v5 = vld [vmem:[%s3733_s10 + $0x488] sm:$0xff] }
 0x1ef   : > { %v1783_v7 = vpop.f32.mrf.mxu0  ;;  %2022 = vmatmul.mubr.f32.gmra.mxu0 %v952_v35  ;;  %v2170_v13 = vpop.f32.mrf.mxu1 }
 0x1f0   : > { %v4322_v55 = vmax.f32 %v2539_v27, %v1783_v7  ;;  %2790 = vmatprep.mubr.msk.f32.mxu0 %vm1148_vm0, %v955_v42  ;;  %v1113_v27 = vld [vmem:[%s3733_s10 + $0x948] sm:$0xff]  ;;  %v1114_v42 = vld [vmem:[%s3733_s10 + $0x950] sm:$0xff]  ;;  %v960_v7 = vld [vmem:[%s3733_s10 + $0x480] sm:$0xff] }
 0x1f1   : > { %v1785_v50 = vpop.f32.mrf.mxu0  ;;  %v4327_v18 = vpop.f32.mrf.mxu1  ;;  %2412 = vmatmul.mubr.f32.gmra.mxu1 %v1108_v46 }
 0x1f2   : > { %v2541_v23 = vmax.f32 %v4322_v55, %v4327_v18  ;;  %2868 = vmatprep.mubr.msk.f32.mxu1 %vm1148_vm0, %v1111_v14  ;;  %v963_v14 = vld [vmem:[%s3733_s10 + $0x498] sm:$0xff] }
 0x1f3   : > { %v1788_v16 = vpop.f32.mrf.mxu0  ;;  %2027 = vmatmul.mubr.f32.gmra.mxu0 %v954_v44  ;;  %v2175_v25 = vpop.f32.mrf.mxu1 }
 0x1f4   : > { %v4337_v8 = vmax.f32 %v2550_v39, %v1788_v16  ;;  %2791 = vmatprep.mubr.msk.f32.mxu0 %vm1148_vm0, %v957_v51  ;;  %v1115_v39 = vld [vmem:[%s3733_s10 + $0x958] sm:$0xff]  ;;  %v1116_v51 = vld [vmem:[%s3733_s10 + $0x960] sm:$0xff]  ;;  %v962_v16 = vld [vmem:[%s3733_s10 + $0x490] sm:$0xff] }
 0x1f5   : > { %v1790_v59 = vpop.f32.mrf.mxu0  ;;  %v4342_v26 = vpop.f32.mrf.mxu1  ;;  %2417 = vmatmul.mubr.f32.gmra.mxu1 %v1110_v24 }
 0x1f6   : > { %v2552_v32 = vmax.f32 %v4337_v8, %v4342_v26  ;;  %2869 = vmatprep.mubr.msk.f32.mxu1 %vm1148_vm0, %v1113_v27  ;;  %v965_v27 = vld [vmem:[%s3733_s10 + $0x4a8] sm:$0xff] }
 0x1f7   : > { %v1793_v29 = vpop.f32.mrf.mxu0  ;;  %2032 = vmatmul.mubr.f32.gmra.mxu0 %v956_v53  ;;  %v2180_v38 = vpop.f32.mrf.mxu1 }
 0x1f8   : > { %v4352_v22 = vmax.f32 %v2561_v54, %v1793_v29  ;;  %2792 = vmatprep.mubr.msk.f32.mxu0 %vm1148_vm0, %v959_v60  ;;  %v1117_v54 = vld [vmem:[%s3733_s10 + $0x968] sm:$0xff]  ;;  %v1118_v60 = vld [vmem:[%s3733_s10 + $0x970] sm:$0xff]  ;;  %v964_v29 = vld [vmem:[%s3733_s10 + $0x4a0] sm:$0xff] }
 0x1f9   : > { %v1795_v4 = vpop.f32.mrf.mxu0  ;;  %v4357_v35 = vpop.f32.mrf.mxu1  ;;  %2422 = vmatmul.mubr.f32.gmra.mxu1 %v1112_v33 }
 0x1fa   : > { %v2563_v41 = vmax.f32 %v4352_v22, %v4357_v35  ;;  %2870 = vmatprep.mubr.msk.f32.mxu1 %vm1148_vm0, %v1115_v39  ;;  %v967_v39 = vld [vmem:[%s3733_s10 + $0x4b8] sm:$0xff] }
 0x1fb   : > { %v1798_v43 = vpop.f32.mrf.mxu0  ;;  %2037 = vmatmul.mubr.f32.gmra.mxu0 %v958_v62  ;;  %v2185_v52 = vpop.f32.mrf.mxu1 }
 0x1fc   : > { %v4367_v46 = vmax.f32 %v2572_v2, %v1798_v43  ;;  %2793 = vmatprep.mubr.msk.f32.mxu0 %vm1148_vm0, %v961_v5  ;;  %v1119_v2 = vld [vmem:[%s3733_s10 + $0x978] sm:$0xff]  ;;  %v1120_v5 = vld [vmem:[%s3733_s10 + $0x980] sm:$0xff]  ;;  %v966_v43 = vld [vmem:[%s3733_s10 + $0x4b0] sm:$0xff] }
 0x1fd   : > { %v1800_v13 = vpop.f32.mrf.mxu0  ;;  %v4372_v44 = vpop.f32.mrf.mxu1  ;;  %2427 = vmatmul.mubr.f32.gmra.mxu1 %v1114_v42 }
 0x1fe   : > { %v2574_v50 = vmax.f32 %v4367_v46, %v4372_v44  ;;  %2871 = vmatprep.mubr.msk.f32.mxu1 %vm1148_vm0, %v1117_v54  ;;  %v969_v54 = vld [vmem:[%s3733_s10 + $0x4c8] sm:$0xff] }
 0x1ff   : > { %v1803_v56 = vpop.f32.mrf.mxu0  ;;  %2042 = vmatmul.mubr.f32.gmra.mxu0 %v960_v7  ;;  %v2190_v1 = vpop.f32.mrf.mxu1 }
 0x200   : > { %v4382_v24 = vmax.f32 %v2583_v17, %v1803_v56  ;;  %2794 = vmatprep.mubr.msk.f32.mxu0 %vm1148_vm0, %v963_v14  ;;  %v1121_v17 = vld [vmem:[%s3733_s10 + $0x988] sm:$0xff]  ;;  %v1122_v14 = vld [vmem:[%s3733_s10 + $0x990] sm:$0xff]  ;;  %v968_v56 = vld [vmem:[%s3733_s10 + $0x4c0] sm:$0xff] }
 0x201   : > { %v1805_v25 = vpop.f32.mrf.mxu0  ;;  %v4387_v53 = vpop.f32.mrf.mxu1  ;;  %2432 = vmatmul.mubr.f32.gmra.mxu1 %v1116_v51 }
 0x202   : > { %v2585_v59 = vmax.f32 %v4382_v24, %v4387_v53  ;;  %2872 = vmatprep.mubr.msk.f32.mxu1 %vm1148_vm0, %v1119_v2  ;;  %v971_v2 = vld [vmem:[%s3733_s10 + $0x4d8] sm:$0xff] }
 0x203   : > { %v1808_v6 = vpop.f32.mrf.mxu0  ;;  %2047 = vmatmul.mubr.f32.gmra.mxu0 %v962_v16  ;;  %v2195_v15 = vpop.f32.mrf.mxu1 }
 0x204   : > { %v4397_v33 = vmax.f32 %v2594_v36, %v1808_v6  ;;  %2795 = vmatprep.mubr.msk.f32.mxu0 %vm1148_vm0, %v965_v27  ;;  %v1123_v36 = vld [vmem:[%s3733_s10 + $0x998] sm:$0xff]  ;;  %v1124_v27 = vld [vmem:[%s3733_s10 + $0x9a0] sm:$0xff]  ;;  %v970_v6 = vld [vmem:[%s3733_s10 + $0x4d0] sm:$0xff] }
 0x205   : > { %v1810_v38 = vpop.f32.mrf.mxu0  ;;  %v4402_v62 = vpop.f32.mrf.mxu1  ;;  %2437 = vmatmul.mubr.f32.gmra.mxu1 %v1118_v60 }
 0x206   : > { %v2596_v4 = vmax.f32 %v4397_v33, %v4402_v62  ;;  %2873 = vmatprep.mubr.msk.f32.mxu1 %vm1148_vm0, %v1121_v17  ;;  %v1126_v38 = vld [vmem:[%s3733_s10 + $0x9b0] sm:$0xff] }
 0x207   : > { %v1813_v20 = vpop.f32.mrf.mxu0  ;;  %2052 = vmatmul.mubr.f32.gmra.mxu0 %v964_v29  ;;  %v2200_v34 = vpop.f32.mrf.mxu1 }
 0x208   : > { %v4412_v42 = vmax.f32 %v2464_v58, %v1813_v20  ;;  %2796 = vmatprep.mubr.msk.f32.mxu0 %vm1148_vm0, %v967_v39  ;;  %v1125_v58 = vld [vmem:[%s3733_s10 + $0x9a8] sm:$0xff] }
 0x209   : > { %v1815_v52 = vpop.f32.mrf.mxu0  ;;  %v4417_v7 = vpop.f32.mrf.mxu1  ;;  %2442 = vmatmul.mubr.f32.gmra.mxu1 %v1120_v5 }
 0x20a   : > { %v2466_v13 = vmax.f32 %v4412_v42, %v4417_v7  ;;  %2874 = vmatprep.mubr.msk.f32.mxu1 %vm1148_vm0, %v1123_v36 }
 0x20b   : > { %v1818_v47 = vpop.f32.mrf.mxu0  ;;  %2057 = vmatmul.mubr.f32.gmra.mxu0 %v966_v43  ;;  %v2205_v57 = vpop.f32.mrf.mxu1 }
 0x20c   : > { %v4427_v51 = vmax.f32 %v2475_v10, %v1818_v47  ;;  %2797 = vmatprep.mubr.msk.f32.mxu0 %vm1148_vm0, %v969_v54 }
 0x20d   : > { %v1820_v1 = vpop.f32.mrf.mxu0  ;;  %v4432_v16 = vpop.f32.mrf.mxu1  ;;  %2447 = vmatmul.mubr.f32.gmra.mxu1 %v1122_v14 }
 0x20e   : > { %v2477_v25 = vmax.f32 %v4427_v51, %v4432_v16  ;;  %2875 = vmatprep.mubr.msk.f32.mxu1 %vm1148_vm0, %v1125_v58 }
 0x20f   : > { %v1823_v60 = vpop.f32.mrf.mxu0  ;;  %2062 = vmatmul.mubr.f32.gmra.mxu0 %v968_v56  ;;  %v2210_v63 = vpop.f32.mrf.mxu1 }
 0x210   : > { %v4442_v10 = vmax.f32 %v2486_v30, %v1823_v60  ;;  %2798 = vmatprep.mubr.msk.f32.mxu0 %vm1148_vm0, %v971_v2 }
 0x211   : > { %v1825_v15 = vpop.f32.mrf.mxu0  ;;  %v4446_v17 = vpop.f32.mrf.mxu1  ;;  %2452 = vmatmul.mubr.f32.gmra.mxu1 %v1124_v27 }
 0x212   : > { %v2488_v29 = vmax.f32 %v4442_v10, %v4446_v17  ;;  %2876 = vmatprep.mubr.msk.f32.mxu1 %vm1148_vm0, %v1127_v9 }
 0x213   : > { %v1828_v39 = vpop.f32.mrf.mxu0  ;;  %2067 = vmatmul.mubr.f32.gmra.mxu0 %v970_v6  ;;  %v2215_v5 = vpop.f32.mrf.mxu1 }
 0x214   : > { %v4455_v12 = vmax.f32 %v2497_v49, %v1828_v39 }
 0x215   : > { %v1830_v28 = vpop.f32.mrf.mxu0  ;;  %v4457_v30 = vpop.f32.mrf.mxu1  ;;  %2457 = vmatmul.mubr.f32.gmra.mxu1 %v1126_v38 }
 0x216   : > { %v2499_v20 = vmax.f32 %v4455_v12, %v4457_v30 }
 0x217   : > { %v1833_v34 = vpop.f32.mrf.mxu0  ;;  %v2220_v36 = vpop.f32.mrf.mxu1 }
 0x218   : > { %v4464_v43 = vmax.f32 %v2508_v3, %v1833_v34 }
 0x219   : > { %v1835_v52 = vpop.f32.mrf.mxu0  ;;  %v4466_v54 = vpop.f32.mrf.mxu1 }
 0x21a   : > { %v2510_v37 = vmax.f32 %v4464_v43, %v4466_v54 }
 0x21b   : > { %v1838_v48 = vpop.f32.mrf.mxu0  ;;  %v2225_v49 = vpop.f32.mrf.mxu1 }
 0x21c   : > { %v4473_v14 = vmax.f32 %v2519_v21, %v1838_v48 }
 0x21d   : > { %v1840_v47 = vpop.f32.mrf.mxu0  ;;  %v4475_v57 = vpop.f32.mrf.mxu1 }
 0x21e   : > { %v2521_v61 = vmax.f32 %v4473_v14, %v4475_v57 }
 0x21f   : > { %v1843_v0 = vpop.f32.mrf.mxu0  ;;  %v2230_v3 = vpop.f32.mrf.mxu1 }
 0x220   : > { %v4482_v58 = vmax.f32 %v2530_v45, %v1843_v0 }
 0x221   : > { %v1845_v56 = vpop.f32.mrf.mxu0  ;;  %v4484_v1 = vpop.f32.mrf.mxu1 }
 0x222   : > { %v2532_v11 = vmax.f32 %v4482_v58, %v4484_v1 }
 0x223   : > { %v1848_v19 = vpop.f32.mrf.mxu0  ;;  %v2235_v21 = vpop.f32.mrf.mxu1 }
 0x224   : > { %v4491_v2 = vmax.f32 %v2541_v23, %v1848_v19 }
 0x225   : > { %v1850_v27 = vpop.f32.mrf.mxu0  ;;  %v4493_v60 = vpop.f32.mrf.mxu1 }
 0x226   : > { %v2543_v31 = vmax.f32 %v4491_v2, %v4493_v60 }
 0x227   : > { %v1853_v40 = vpop.f32.mrf.mxu0  ;;  %v2240_v45 = vpop.f32.mrf.mxu1 }
 0x228   : > { %v4500_v63 = vmax.f32 %v2552_v32, %v1853_v40 }
 0x229   : > { %v1855_v9 = vpop.f32.mrf.mxu0  ;;  %v4502_v6 = vpop.f32.mrf.mxu1 }
 0x22a   : > { %v2554_v55 = vmax.f32 %v4500_v63, %v4502_v6 }
 0x22b   : > { %v1858_v18 = vpop.f32.mrf.mxu0  ;;  %v2245_v23 = vpop.f32.mrf.mxu1 }
 0x22c   : > { %v4509_v15 = vmax.f32 %v2563_v41, %v1858_v18 }
 0x22d   : > { %v1860_v38 = vpop.f32.mrf.mxu0  ;;  %v4511_v39 = vpop.f32.mrf.mxu1 }
 0x22e   : > { %v2565_v8 = vmax.f32 %v4509_v15, %v4511_v39 }
 0x22f   : > { %v1863_v26 = vpop.f32.mrf.mxu0  ;;  %v2250_v32 = vpop.f32.mrf.mxu1 }
 0x230   : > { %v4518_v5 = vmax.f32 %v2574_v50, %v1863_v26 }
 0x231   : > { %v1865_v28 = vpop.f32.mrf.mxu0  ;;  %v4520_v34 = vpop.f32.mrf.mxu1 }
 0x232   : > { %v2576_v22 = vmax.f32 %v4518_v5, %v4520_v34 }
 0x233   : > { %v1868_v35 = vpop.f32.mrf.mxu0  ;;  %v2255_v41 = vpop.f32.mrf.mxu1 }
 0x234   : > { %v4527_v36 = vmax.f32 %v2585_v59, %v1868_v35 }
 0x235   : > { %v1870_v52 = vpop.f32.mrf.mxu0  ;;  %v4529_v48 = vpop.f32.mrf.mxu1 }
 0x236   : > { %v2587_v46 = vmax.f32 %v4527_v36, %v4529_v48 }
 0x237   : > { %v1873_v44 = vpop.f32.mrf.mxu0  ;;  %v2260_v50 = vpop.f32.mrf.mxu1 }
 0x238   : > { %v4536_v49 = vmax.f32 %v2596_v4, %v1873_v44 }
 0x239   : > { %v1875_v47 = vpop.f32.mrf.mxu0  ;;  %v4538_v0 = vpop.f32.mrf.mxu1 }
 0x23a   : > { %v2598_v24 = vmax.f32 %v4536_v49, %v4538_v0 }
 0x23b   : > { %v1878_v53 = vpop.f32.mrf.mxu0  ;;  %v2265_v59 = vpop.f32.mrf.mxu1 }
 0x23c   : > { %v4545_v3 = vmax.f32 %v2466_v13, %v1878_v53 }
 0x23d   : > { %v1880_v56 = vpop.f32.mrf.mxu0  ;;  %v4547_v19 = vpop.f32.mrf.mxu1 }
 0x23e   : > { %v2468_v33 = vmax.f32 %v4545_v3, %v4547_v19  ;;  %v4714_v3 = vld [vmem:[%s4814_s2] ss:$0 sm:$0xff] }
 0x23f   : > { %v1883_v62 = vpop.f32.mrf.mxu0  ;;  %v2270_v4 = vpop.f32.mrf.mxu1 }
 0x240   : > { %v4554_v21 = vmax.f32 %v2477_v25, %v1883_v62 }
 0x241   : > { %v1885_v27 = vpop.f32.mrf.mxu0  ;;  %v4556_v40 = vpop.f32.mrf.mxu1 }
 0x242   : > { %v2479_v42 = vmax.f32 %v4554_v21, %v4556_v40 }
 0x243   : > { %v1888_v7 = vpop.f32.mrf.mxu0  ;;  %v2275_v13 = vpop.f32.mrf.mxu1 }
 0x244   : > { %v4563_v45 = vmax.f32 %v2488_v29, %v1888_v7 }
 0x245   : > { %v1890_v9 = vpop.f32.mrf.mxu0  ;;  %v4565_v18 = vpop.f32.mrf.mxu1 }
 0x246   : > { %v4816_v19 = vmax.f32 %v4563_v45, %v4565_v18 }
 0x247   : > { %v1893_v16 = vpop.f32.mrf.mxu0  ;;  %v2280_v25 = vpop.f32.mrf.mxu1 }
 0x248   : > { %v4572_v23 = vmax.f32 %v2499_v20, %v1893_v16 }
 0x249   : > { %v1895_v38 = vpop.f32.mrf.mxu0  ;;  %v4574_v26 = vpop.f32.mrf.mxu1 }
 0x24a   : > { %v4817_v45 = vmax.f32 %v4572_v23, %v4574_v26 }
 0x24b   : > { %v1898_v17 = vpop.f32.mrf.mxu0  ;;  %v2285_v29 = vpop.f32.mrf.mxu1 }
 0x24c   : > { %v4581_v32 = vmax.f32 %v2510_v37, %v1898_v17 }
 0x24d   : > { %v1900_v28 = vpop.f32.mrf.mxu0  ;;  %v4583_v35 = vpop.f32.mrf.mxu1 }
 0x24f   : > { %v1903_v30 = vpop.f32.mrf.mxu0  ;;  %v2290_v20 = vpop.f32.mrf.mxu1 }
 0x250   : > { %v4590_v41 = vmax.f32 %v2521_v61, %v1903_v30 }
 0x251   : > { %v1905_v52 = vpop.f32.mrf.mxu0  ;;  %v4592_v44 = vpop.f32.mrf.mxu1 }
 0x253   : > { %v1908_v54 = vpop.f32.mrf.mxu0  ;;  %v2295_v37 = vpop.f32.mrf.mxu1 }
 0x254   : > { %v4599_v50 = vmax.f32 %v2532_v11, %v1908_v54 }
 0x255   : > { %v1910_v47 = vpop.f32.mrf.mxu0  ;;  %v4601_v53 = vpop.f32.mrf.mxu1 }
 0x257   : > { %v1913_v57 = vpop.f32.mrf.mxu0  ;;  %v2300_v61 = vpop.f32.mrf.mxu1 }
 0x258   : > { %v4608_v59 = vmax.f32 %v2543_v31, %v1913_v57 }
 0x259   : > { %v1915_v56 = vpop.f32.mrf.mxu0  ;;  %v4610_v62 = vpop.f32.mrf.mxu1 }
 0x25b   : > { %v1918_v1 = vpop.f32.mrf.mxu0  ;;  %v2305_v11 = vpop.f32.mrf.mxu1 }
 0x25c   : > { %v4617_v4 = vmax.f32 %v2554_v55, %v1918_v1 }
 0x25d   : > { %v1920_v27 = vpop.f32.mrf.mxu0  ;;  %v4619_v7 = vpop.f32.mrf.mxu1 }
 0x25f   : > { %v1923_v60 = vpop.f32.mrf.mxu0  ;;  %v2310_v31 = vpop.f32.mrf.mxu1 }
 0x260   : > { %v4626_v13 = vmax.f32 %v2565_v8, %v1923_v60 }
 0x261   : > { %v1925_v9 = vpop.f32.mrf.mxu0  ;;  %v4628_v16 = vpop.f32.mrf.mxu1 }
 0x263   : > { %v1928_v6 = vpop.f32.mrf.mxu0  ;;  %v2315_v55 = vpop.f32.mrf.mxu1 }
 0x264   : > { %v4635_v25 = vmax.f32 %v2576_v22, %v1928_v6 }
 0x265   : > { %v1930_v38 = vpop.f32.mrf.mxu0  ;;  %v4637_v17 = vpop.f32.mrf.mxu1 }
 0x267   : > { %v1933_v39 = vpop.f32.mrf.mxu0  ;;  %v2320_v8 = vpop.f32.mrf.mxu1 }
 0x268   : > { %v4644_v29 = vmax.f32 %v2587_v46, %v1933_v39 }
 0x269   : > { %v1935_v28 = vpop.f32.mrf.mxu0  ;;  %v4646_v30 = vpop.f32.mrf.mxu1 }
 0x26b   : > { %v1938_v34 = vpop.f32.mrf.mxu0  ;;  %v2325_v22 = vpop.f32.mrf.mxu1 }
 0x26c   : > { %v4653_v20 = vmax.f32 %v2598_v24, %v1938_v34 }
 0x26d   : > { %v1940_v52 = vpop.f32.mrf.mxu0  ;;  %v4655_v54 = vpop.f32.mrf.mxu1 }
 0x26f   : > { %v1943_v48 = vpop.f32.mrf.mxu0  ;;  %v2330_v46 = vpop.f32.mrf.mxu1 }
 0x271   : > { %v1945_v37 = vpop.f32.mrf.mxu0  ;;  %v2333_v47 = vpop.f32.mrf.mxu1 }
 0x273   : > { %v1948_v57 = vpop.f32.mrf.mxu0  ;;  %v2335_v61 = vpop.f32.mrf.mxu1 }
 0x274   : > { %v2480_v14 = vmax.f32 %v2479_v42, %v1948_v57 }
 0x275   : > { %v1950_v56 = vpop.f32.mrf.mxu0  ;;  %v4659_v1 = vpop.f32.mrf.mxu1 }
 0x277   : > { %v1953_v11 = vpop.f32.mrf.mxu0  ;;  %v2340_v27 = vpop.f32.mrf.mxu1 }
 0x279   : > { %v1955_v49 = vpop.f32.mrf.mxu0  ;;  %v4661_v0 = vpop.f32.mrf.mxu1 }
 0x27b   : > { %v4663_v24 = vpop.f32.mrf.mxu0  ;;  %v2345_v60 = vpop.f32.mrf.mxu1 }
 0x27c   : > { %v2502_v18 = vmax.f32 %v4817_v45, %v4663_v24 }
 0x27d   : > { %v1960_v31 = vpop.f32.mrf.mxu0  ;;  %v4665_v9 = vpop.f32.mrf.mxu1 }
 0x27e   : > { %v2503_v23 = vmax.f32 %v2502_v18, %v4665_v9 }
 0x27f   : > { %v4667_v6 = vpop.f32.mrf.mxu0  ;;  %v2350_v55 = vpop.f32.mrf.mxu1 }
 0x281   : > { %v1965_v38 = vpop.f32.mrf.mxu0  ;;  %v4669_v39 = vpop.f32.mrf.mxu1 }
 0x283   : > { %v4671_v8 = vpop.f32.mrf.mxu0  ;;  %v2355_v28 = vpop.f32.mrf.mxu1 }
 0x285   : > { %v1970_v34 = vpop.f32.mrf.mxu0  ;;  %v4673_v22 = vpop.f32.mrf.mxu1 }
 0x287   : > { %v4675_v52 = vpop.f32.mrf.mxu0  ;;  %v2360_v46 = vpop.f32.mrf.mxu1 }
 0x289   : > { %v1975_v37 = vpop.f32.mrf.mxu0  ;;  %v4677_v61 = vpop.f32.mrf.mxu1 }
 0x28b   : > { %v4679_v56 = vpop.f32.mrf.mxu0  ;;  %v2365_v27 = vpop.f32.mrf.mxu1 }
 0x28d   : > { %v1980_v49 = vpop.f32.mrf.mxu0  ;;  %v4681_v60 = vpop.f32.mrf.mxu1 }
 0x28f   : > { %v4683_v31 = vpop.f32.mrf.mxu0  ;;  %v2370_v55 = vpop.f32.mrf.mxu1 }
 0x291   : > { %v1985_v38 = vpop.f32.mrf.mxu0  ;;  %v4685_v28 = vpop.f32.mrf.mxu1 }
 0x293   : > { %v4687_v34 = vpop.f32.mrf.mxu0  ;;  %v2375_v36 = vpop.f32.mrf.mxu1 }
 0x294   : > { %v2469_v36 = vmax.f32 %v2468_v33, %v1943_v48  ;;  %v2491_v33 = vmax.f32 %v4816_v19, %v1953_v11 }
 0x295   : > { %v1990_v46 = vpop.f32.mrf.mxu0  ;;  %v4689_v37 = vpop.f32.mrf.mxu1 }
 0x296   : > { %v2470_v43 = vmax.f32 %v2469_v36, %v2333_v47 }
 0x297   : > { %v4691_v5 = vpop.f32.mrf.mxu0  ;;  %v2380_v15 = vpop.f32.mrf.mxu1 }
 0x299   : > { %v1995_v63 = vpop.f32.mrf.mxu0  ;;  %v4693_v27 = vpop.f32.mrf.mxu1 }
 0x29b   : > { %v4697_v49 = vpop.f32.mrf.mxu0  ;;  %v2385_v55 = vpop.f32.mrf.mxu1 }
 0x29d   : > { %v2000_v38 = vpop.f32.mrf.mxu0  ;;  %v4699_v2 = vpop.f32.mrf.mxu1 }
 0x29f   : > { %v4704_v46 = vpop.f32.mrf.mxu0  ;;  %v2390_v58 = vpop.f32.mrf.mxu1 }
 0x2a0   : > { %v2481_v58 = vmax.f32 %v2480_v14, %v4659_v1 }
 0x2a1   : > { %v2005_v15 = vpop.f32.mrf.mxu0  ;;  %v4706_v63 = vpop.f32.mrf.mxu1 }
 0x2a3   : > { %v2008_v55 = vpop.f32.mrf.mxu0  ;;  %v2395_v38 = vpop.f32.mrf.mxu1 }
 0x2a4   : > { %v2471_v12 = vmax.f32 %v2470_v43, %v2008_v55  ;;  %v4818_v38 = vmax.f32 %v4581_v32, %v4583_v35 }
 0x2a5   : > { %v2010_v10 = vpop.f32.mrf.mxu0  ;;  %v2398_v51 = vpop.f32.mrf.mxu1 }
 0x2a6   : > { %v2472_v21 = vmax.f32 %v2471_v12, %v2398_v51  ;;  %v2492_v51 = vmax.f32 %v2491_v33, %v4661_v0  ;;  %v2513_v19 = vmax.f32 %v4818_v38, %v4667_v6 }
 0x2a7   : > { %v2013_v40 = vpop.f32.mrf.mxu0  ;;  %v2400_v42 = vpop.f32.mrf.mxu1 }
 0x2a8   : > { %v2482_v48 = vmax.f32 %v2481_v58, %v2013_v40  ;;  %v2612_v43 = vadd.f32 %v4714_v3, %v2472_v21  ;;  %v2514_v32 = vmax.f32 %v2513_v19, %v4669_v39 }
 0x2a9   : > { %v2015_v10 = vpop.f32.mrf.mxu0  ;;  %v2403_v47 = vpop.f32.mrf.mxu1 }
 0x2aa   : > { %v2625_v12 = vmax.f32 %v2612_v43, 0.0  ;;  %v2483_v14 = vmax.f32 %v2482_v48, %v2403_v47  ;;  %v4819_v48 = vmax.f32 %v4590_v41, %v4592_v44 }
 0x2ab   : > { %v2018_v57 = vpop.f32.mrf.mxu0  ;;  %v2405_v1 = vpop.f32.mrf.mxu1 }
 0x2ac   : > { %v2493_v11 = vmax.f32 %v2492_v51, %v2018_v57  ;;  %2638 = vst [vmem:[%s4724_s4] sm:$0xff] %v2625_v12  ;;  %v2613_v36 = vadd.f32 %v4714_v3, %v2483_v14  ;;  %v2524_v43 = vmax.f32 %v4819_v48, %v4671_v8  ;;  %v4820_v12 = vmax.f32 %v4599_v50, %v4601_v53 }
 0x2ad   : > { %v2020_v15 = vpop.f32.mrf.mxu0  ;;  %v2408_v55 = vpop.f32.mrf.mxu1 }
 0x2ae   : > { %v2626_v26 = vmax.f32 %v2613_v36, 0.0  ;;  %v2494_v0 = vmax.f32 %v2493_v11, %v2408_v55  ;;  %v2535_v14 = vmax.f32 %v4820_v12, %v4675_v52  ;;  %v2525_v41 = vmax.f32 %v2524_v43, %v4673_v22 }
 0x2af   : > { %v2023_v24 = vpop.f32.mrf.mxu0  ;;  %v2410_v33 = vpop.f32.mrf.mxu1  ;;  %v4821_v55 = vmax.f32 %v4608_v59, %v4610_v62 }
 0x2b0   : > { %v2504_v58 = vmax.f32 %v2503_v23, %v2023_v24  ;;  %2639 = vst [vmem:[%s4724_s4 + $0x8] sm:$0xff] %v2626_v26  ;;  %v2614_v21 = vadd.f32 %v4714_v3, %v2494_v0  ;;  %v2536_v50 = vmax.f32 %v2535_v14, %v4677_v61  ;;  %v4822_v33 = vmax.f32 %v4617_v4, %v4619_v7 }
 0x2b1   : > { %v2025_v40 = vpop.f32.mrf.mxu0  ;;  %v2413_v42 = vpop.f32.mrf.mxu1  ;;  %v2546_v38 = vmax.f32 %v4821_v55, %v4679_v56 }
 0x2b2   : > { %v2627_v35 = vmax.f32 %v2614_v21, 0.0  ;;  %v2505_v9 = vmax.f32 %v2504_v58, %v2413_v42  ;;  %v2557_v58 = vmax.f32 %v4822_v33, %v4683_v31 }
 0x2b3   : > { %v2028_v6 = vpop.f32.mrf.mxu0  ;;  %v2415_v10 = vpop.f32.mrf.mxu1  ;;  %v2547_v59 = vmax.f32 %v2546_v38, %v4681_v60  ;;  %v4826_v38 = vmax.f32 %v4653_v20, %v4655_v54 }
 0x2b4   : > { %v2515_v47 = vmax.f32 %v2514_v32, %v2028_v6  ;;  %2640 = vst [vmem:[%s4724_s4 + $0x10] sm:$0xff] %v2627_v35  ;;  %v2615_v45 = vadd.f32 %v4714_v3, %v2505_v9  ;;  %v4823_v32 = vmax.f32 %v4626_v13, %v4628_v16  ;;  %v2558_v4 = vmax.f32 %v2557_v58, %v4685_v28 }
 0x2b5   : > { %v2030_v18 = vpop.f32.mrf.mxu0  ;;  %v2418_v51 = vpop.f32.mrf.mxu1 }
 0x2b6   : > { %v2628_v44 = vmax.f32 %v2615_v45, 0.0  ;;  %v2516_v39 = vmax.f32 %v2515_v47, %v2418_v51  ;;  %v2568_v35 = vmax.f32 %v4823_v32, %v4687_v34  ;;  %v4824_v18 = vmax.f32 %v4635_v25, %v4637_v17 }
 0x2b7   : > { %v2033_v8 = vpop.f32.mrf.mxu0  ;;  %v2420_v57 = vpop.f32.mrf.mxu1 }
 0x2b8   : > { %v2526_v1 = vmax.f32 %v2525_v41, %v2033_v8  ;;  %2641 = vst [vmem:[%s4724_s4 + $0x18] sm:$0xff] %v2628_v44  ;;  %v2616_v11 = vadd.f32 %v4714_v3, %v2516_v39  ;;  %v2579_v51 = vmax.f32 %v4824_v18, %v4691_v5  ;;  %v2569_v13 = vmax.f32 %v2568_v35, %v4689_v37 }
 0x2b9   : > { %v2035_v36 = vpop.f32.mrf.mxu0  ;;  %v2423_v15 = vpop.f32.mrf.mxu1  ;;  %v4825_v8 = vmax.f32 %v4644_v29, %v4646_v30 }
 0x2ba   : > { %v2629_v53 = vmax.f32 %v2616_v11, 0.0  ;;  %v2527_v22 = vmax.f32 %v2526_v1, %v2423_v15  ;;  %v2580_v25 = vmax.f32 %v2579_v51, %v4693_v27 }
 0x2bb   : > { %v2038_v52 = vpop.f32.mrf.mxu0  ;;  %v2425_v19 = vpop.f32.mrf.mxu1  ;;  %v2590_v57 = vmax.f32 %v4825_v8, %v4697_v49 }
 0x2bc   : > { %v2537_v23 = vmax.f32 %v2536_v50, %v2038_v52  ;;  %2642 = vst [vmem:[%s4724_s4 + $0x20] sm:$0xff] %v2629_v53  ;;  %v2617_v26 = vadd.f32 %v4714_v3, %v2527_v22  ;;  %v2601_v50 = vmax.f32 %v4826_v38, %v4704_v46 }
 0x2bd   : > { %v2040_v0 = vpop.f32.mrf.mxu0  ;;  %v2428_v24 = vpop.f32.mrf.mxu1  ;;  %v2591_v29 = vmax.f32 %v2590_v57, %v4699_v2 }
 0x2be   : > { %v2630_v62 = vmax.f32 %v2617_v26, 0.0  ;;  %v2538_v61 = vmax.f32 %v2537_v23, %v2428_v24  ;;  %v2602_v26 = vmax.f32 %v2601_v50, %v4706_v63 }
 0x2bf   : > { %v2043_v56 = vpop.f32.mrf.mxu0  ;;  %v2430_v21 = vpop.f32.mrf.mxu1 }
 0x2c0   : > { %v2548_v40 = vmax.f32 %v2547_v59, %v2043_v56  ;;  %2643 = vst [vmem:[%s4724_s4 + $0x28] sm:$0xff] %v2630_v62  ;;  %v2618_v42 = vadd.f32 %v4714_v3, %v2538_v61 }
 0x2c1   : > { %v2045_v48 = vpop.f32.mrf.mxu0  ;;  %v2433_v43 = vpop.f32.mrf.mxu1 }
 0x2c2   : > { %v2631_v7 = vmax.f32 %v2618_v42, 0.0  ;;  %v2549_v60 = vmax.f32 %v2548_v40, %v2433_v43 }
 0x2c3   : > { %v2048_v31 = vpop.f32.mrf.mxu0  ;;  %v2435_v9 = vpop.f32.mrf.mxu1 }
 0x2c4   : > { %v2559_v6 = vmax.f32 %v2558_v4, %v2048_v31  ;;  %2644 = vst [vmem:[%s4724_s4 + $0x30] sm:$0xff] %v2631_v7  ;;  %v2619_v10 = vadd.f32 %v4714_v3, %v2549_v60 }
 0x2c5   : > { %v2050_v47 = vpop.f32.mrf.mxu0  ;;  %v2438_v45 = vpop.f32.mrf.mxu1 }
 0x2c6   : > { %v2632_v16 = vmax.f32 %v2619_v10, 0.0  ;;  %v2560_v28 = vmax.f32 %v2559_v6, %v2438_v45 }
 0x2c7   : > { %v2053_v34 = vpop.f32.mrf.mxu0  ;;  %v2440_v12 = vpop.f32.mrf.mxu1 }
 0x2c8   : > { %v2570_v14 = vmax.f32 %v2569_v13, %v2053_v34  ;;  %2645 = vst [vmem:[%s4724_s4 + $0x38] sm:$0xff] %v2632_v16  ;;  %v2620_v41 = vadd.f32 %v4714_v3, %v2560_v28 }
 0x2c9   : > { %v2055_v44 = vpop.f32.mrf.mxu0  ;;  %v2443_v39 = vpop.f32.mrf.mxu1 }
 0x2ca   : > { %v2633_v17 = vmax.f32 %v2620_v41, 0.0  ;;  %v2571_v5 = vmax.f32 %v2570_v14, %v2443_v39 }
 0x2cb   : > { %v2058_v37 = vpop.f32.mrf.mxu0  ;;  %v2445_v1 = vpop.f32.mrf.mxu1 }
 0x2cc   : > { %v2581_v11 = vmax.f32 %v2580_v25, %v2058_v37  ;;  %2646 = vst [vmem:[%s4724_s4 + $0x40] sm:$0xff] %v2633_v17  ;;  %v2621_v36 = vadd.f32 %v4714_v3, %v2571_v5 }
 0x2cd   : > { %v2060_v15 = vpop.f32.mrf.mxu0  ;;  %v2448_v55 = vpop.f32.mrf.mxu1 }
 0x2ce   : > { %v2634_v30 = vmax.f32 %v2621_v36, 0.0  ;;  %v2582_v27 = vmax.f32 %v2581_v11, %v2448_v55 }
 0x2cf   : > { %v2063_v49 = vpop.f32.mrf.mxu0  ;;  %v2450_v53 = vpop.f32.mrf.mxu1 }
 0x2d0   : > { %v2592_v22 = vmax.f32 %v2591_v29, %v2063_v49  ;;  %2647 = vst [vmem:[%s4724_s4 + $0x48] sm:$0xff] %v2634_v30  ;;  %v2622_v52 = vadd.f32 %v4714_v3, %v2582_v27 }
 0x2d1   : > { %v2065_v19 = vpop.f32.mrf.mxu0  ;;  %v2453_v23 = vpop.f32.mrf.mxu1 }
 0x2d2   : > { %v2635_v0 = vmax.f32 %v2622_v52, 0.0  ;;  %v2593_v20 = vmax.f32 %v2592_v22, %v2453_v23 }
 0x2d3   : > { %v2068_v54 = vpop.f32.mrf.mxu0  ;;  %v2455_v46 = vpop.f32.mrf.mxu1 }
 0x2d4   : > { %v2603_v2 = vmax.f32 %v2602_v26, %v2068_v54  ;;  %2648 = vst [vmem:[%s4724_s4 + $0x50] sm:$0xff] %v2635_v0  ;;  %v2623_v24 = vadd.f32 %v4714_v3, %v2593_v20 }
 0x2d5   : > { %v2070_v33 = vpop.f32.mrf.mxu0  ;;  %v2458_v58 = vpop.f32.mrf.mxu1 }
 0x2d6   : > { %v2636_v59 = vmax.f32 %v2623_v24, 0.0  ;;  %v2604_v62 = vmax.f32 %v2603_v2, %v2458_v58 }
 0x2d7   : > { %v2460_v61 = vpop.f32.mrf.mxu1 }
 0x2d8   : > { %2649 = vst [vmem:[%s4724_s4 + $0x58] sm:$0xff] %v2636_v59  ;;  %v2624_v56 = vadd.f32 %v4714_v3, %v2604_v62 }
 0x2da   : > { %v2637_v21 = vmax.f32 %v2624_v56, 0.0 }
 0x2dc   : > { %2650 = vst [vmem:[%s4724_s4 + $0x60] sm:$0xff] %v2637_v21 }
 0x2dd PF: > { %p10_p9 = scmp.ge.s32.totalorder %s3012_s16, 4   ;;  %s4827_s12 = smov %s2968_s13 }
 0x2de   : > { %s4828_s13 = smov %s3021_s19  ;;  %s4829_s14 = smov %s3012_s16 }
 0x2df   :  { %12 = sbr.rel (!%p10_p9) target bundleno = 2 (0x2), region = 90 }

</bundles_post_ra>
